<compile_context>
chip_gen: v6e
topology: v6e:2x2x1
jax: 0.10.0
libtpu: 0.0.40
codegen_flags: <defaults>
</compile_context>

<pallas_src>
import jax
import jax.numpy as jnp
from jax.experimental import pallas as pl
from jax.experimental.pallas import tpu as pltpu

EPS = 1e-5  # torch InstanceNorm2d default eps (affine=False, no running stats)


def _elu(x):
    # exp argument clamped to <= 0 so the unselected branch never produces inf.
    return jnp.where(x > 0.0, x, jnp.exp(jnp.minimum(x, 0.0)) - 1.0)


def _instance_norm(z, inv_n):
    # z: (H*W, C) f32, per-channel normalization over spatial positions, single-pass stats.
    mean = jnp.sum(z, axis=0, keepdims=True) * inv_n
    msq = jnp.sum(z * z, axis=0, keepdims=True) * inv_n
    var = jnp.maximum(msq - mean * mean, 0.0)
    return (z - mean) * jax.lax.rsqrt(var + EPS)


def _fill_replicate_pad(pad_ref, x):
    """Fill pad_ref (H+2, W+2, C) f32 scratch with replicate-padded x (H, W, C) f32 value."""
    H, W, _ = x.shape
    pad_ref[1:H + 1, 1:W + 1, :] = x
    pad_ref[0:1, 1:W + 1, :] = x[0:1]
    pad_ref[H + 1:H + 2, 1:W + 1, :] = x[H - 1:H]
    # Left / right columns (corners included: rows 0..H+1 of cols 1 / W are already filled).
    pad_ref[:, 0:1, :] = pad_ref[:, 1:2, :]
    pad_ref[:, W + 1:W + 2, :] = pad_ref[:, W:W + 1, :]


def _conv3x3_from_pad(pad_ref, w_ref, H, W):
    """3x3 conv as 9 accumulating matmuls.

    pad_ref: (H+2, W+2, Cin) f32 scratch holding the replicate-padded activation.
    w_ref:   (9, Cin, Cout) bf16 weights, tap order t = dh*3 + dw.
    Returns (H*W, Cout) f32.
    """
    cin = pad_ref.shape[-1]
    acc = None
    for dh in range(3):
        for dw in range(3):
            tap = pad_ref[dh:dh + H, dw:dw + W, :].astype(jnp.bfloat16)
            tap = tap.reshape(H * W, cin)
            p = jnp.dot(tap, w_ref[dh * 3 + dw], preferred_element_type=jnp.float32)
            acc = p if acc is None else acc + p
    return acc


# ---------------------------------------------------------------------------
# Fused kernel: conv1 + IN + ELU + conv2 + IN + SE + maxpool(2) + gate + ELU
# ---------------------------------------------------------------------------
def ginka_encoder_kernel(x_ref, w1_ref, w2_ref, f1w_ref, f1b_ref, f2w_ref, f2b_ref,
                         o_ref, xpad_s, ypad_s):
    _, H, W, _ = x_ref.shape
    C = w1_ref.shape[2]
    H2, W2 = H // 2, W // 2
    inv_n = 1.0 / float(H * W)

    # ---- conv1 (replicate pad) + InstanceNorm + ELU -------------------------------------
    # Conv bias omitted: InstanceNorm(affine=False) cancels any per-channel constant offset.
    _fill_replicate_pad(xpad_s, x_ref[0].astype(jnp.float32))
    y = _conv3x3_from_pad(xpad_s, w1_ref, H, W)                    # (H*W, C) f32
    y = _elu(_instance_norm(y, inv_n))

    # ---- conv2 (replicate pad) + InstanceNorm (conv1 output stays resident in VMEM) -----
    _fill_replicate_pad(ypad_s, y.reshape(H, W, C))
    z = _instance_norm(_conv3x3_from_pad(ypad_s, w2_ref, H, W), inv_n)   # (H*W, C) f32

    # ---- ChannelAttention gate (SE, reduction=4), computed at full resolution -----------
    s = jnp.sum(z, axis=0, keepdims=True) * inv_n                  # (1, C)
    h = jnp.maximum(
        jnp.dot(s, f1w_ref[...], preferred_element_type=jnp.float32) + f1b_ref[...], 0.0)
    g = jax.nn.sigmoid(
        jnp.dot(h, f2w_ref[...], preferred_element_type=jnp.float32) + f2b_ref[...])  # (1, C)

    # ---- 2x2 max-pool FIRST, then gate + ELU (exact: g > 0 and ELU is monotone) ---------
    z4 = z.reshape(H2, 2, W, C)
    zh = jnp.maximum(z4[:, 0], z4[:, 1])                           # (H2, W, C)
    pooled = jnp.concatenate(
        [jnp.maximum(zh[:, 2 * j, :], zh[:, 2 * j + 1, :]) for j in range(W2)],
        axis=-1)                                                   # (H2, W2*C), lane-dense
    gates = jnp.concatenate([g] * W2, axis=-1)                     # (1, W2*C)
    o_ref[0] = _elu(pooled * gates)


# ---------------------------------------------------------------------------
# Wrapper: NCHW <-> NHWC glue, weight repacking, pallas_call
# ---------------------------------------------------------------------------
def ginka_encoder(x_nchw, params):
    B, Cin, H, W = x_nchw.shape
    Cout = params["w1"].shape[0]
    Cr = params["fc1_w"].shape[0]
    assert H % 2 == 0 and W % 2 == 0, "MaxPool2d(2) path assumes even H, W"
    H2, W2 = H // 2, W // 2

    # NHWC, bf16 (halves activation DMA; matmuls run in bf16 with f32 accumulation).
    x = jnp.transpose(x_nchw, (0, 2, 3, 1)).astype(jnp.bfloat16)

    # torch (Cout, Cin, 3, 3) -> (9, Cin, Cout), tap order t = kh*3 + kw, bf16.
    w1t = jnp.transpose(params["w1"], (2, 3, 1, 0)).reshape(9, Cin, Cout).astype(jnp.bfloat16)
    w2t = jnp.transpose(params["w2"], (2, 3, 1, 0)).reshape(9, Cout, Cout).astype(jnp.bfloat16)
    # NOTE: conv biases b1/b2 are NOT passed -- InstanceNorm2d(affine=False) cancels them.
    f1w = params["fc1_w"].T                      # (Cout, Cr)  f32
    f1b = params["fc1_b"].reshape(1, Cr)
    f2w = params["fc2_w"].T                      # (Cr, Cout)  f32
    f2b = params["fc2_b"].reshape(1, Cout)

    out = pl.pallas_call(
        ginka_encoder_kernel,
        out_shape=jax.ShapeDtypeStruct((B, H2, W2 * Cout), jnp.float32),
        grid_spec=pltpu.PrefetchScalarGridSpec(
            num_scalar_prefetch=0,
            grid=(B,),
            in_specs=[
                pl.BlockSpec((1, H, W, Cin), lambda b: (b, 0, 0, 0)),
                pl.BlockSpec((9, Cin, Cout), lambda b: (0, 0, 0)),
                pl.BlockSpec((9, Cout, Cout), lambda b: (0, 0, 0)),
                pl.BlockSpec((Cout, Cr), lambda b: (0, 0)),
                pl.BlockSpec((1, Cr), lambda b: (0, 0)),
                pl.BlockSpec((Cr, Cout), lambda b: (0, 0)),
                pl.BlockSpec((1, Cout), lambda b: (0, 0)),
            ],
            out_specs=pl.BlockSpec((1, H2, W2 * Cout), lambda b: (b, 0, 0)),
            scratch_shapes=[
                pltpu.VMEM((H + 2, W + 2, Cin), jnp.float32),    # padded conv1 input
                pltpu.VMEM((H + 2, W + 2, Cout), jnp.float32),   # padded conv2 input
            ],
        ),
        compiler_params=pltpu.CompilerParams(
            dimension_semantics=("parallel",),
            vmem_limit_bytes=32 * 1024 * 1024,
        ),
    )(x, w1t, w2t, f1w, f1b, f2w, f2b)

    # Lane-dense (B, H2, W2*C) slab -> (B, C, H2, W2) NCHW like PyTorch.
    out = out.reshape(B, H2, W2, Cout)
    return jnp.transpose(out, (0, 3, 1, 2))


# ---------------------------------------------------------------------------
# Deterministic parameter init (PyTorch-like uniform(-1/sqrt(fan_in), +1/sqrt(fan_in)))
# ---------------------------------------------------------------------------
def init_params(key, in_ch, out_ch, reduction=4):
    ks = jax.random.split(key, 8)
    cr = max(out_ch // reduction, 1)

    def u(k, shape, fan_in):
        bound = float(fan_in) ** -0.5
        return jax.random.uniform(k, shape, jnp.float32, -bound, bound)

    return dict(
        w1=u(ks[0], (out_ch, in_ch, 3, 3), in_ch * 9),
        b1=u(ks[1], (out_ch,), in_ch * 9),      # dead: cancelled by InstanceNorm
        w2=u(ks[2], (out_ch, out_ch, 3, 3), out_ch * 9),
        b2=u(ks[3], (out_ch,), out_ch * 9),     # dead: cancelled by InstanceNorm
        fc1_w=u(ks[4], (cr, out_ch), out_ch),
        fc1_b=u(ks[5], (cr,), out_ch),
        fc2_w=u(ks[6], (out_ch, cr), cr),
        fc2_b=u(ks[7], (out_ch,), cr),
    )


if __name__ == "__main__":
    key = jax.random.PRNGKey(0)
    k_param, k_x = jax.random.split(key)

    B, Cin, Cout, H, W = 2, 4, 32, 16, 16
    params = init_params(k_param, Cin, Cout)
    x = jax.random.normal(k_x, (B, Cin, H, W), jnp.float32)         # NCHW like PyTorch

    out = jax.jit(ginka_encoder)(x, params)
    out = jax.block_until_ready(out)

    assert out.shape == (B, Cout, H // 2, W // 2), out.shape
    assert bool(jnp.all(jnp.isfinite(out)))
    print("KERNEL_OK")
</pallas_src>

<mosaic_0001>
module attributes {stable_mosaic.version = 11 : i64} {
  func.func @ginka_encoder_kernel(%arg0: i32, %arg1: memref<1x16x16x4xbf16, #tpu.memory_space<vmem>>, %arg2: memref<9x4x32xbf16, #tpu.memory_space<vmem>>, %arg3: memref<9x32x32xbf16, #tpu.memory_space<vmem>>, %arg4: memref<32x8xf32, #tpu.memory_space<vmem>>, %arg5: memref<1x8xf32, #tpu.memory_space<vmem>>, %arg6: memref<8x32xf32, #tpu.memory_space<vmem>>, %arg7: memref<1x32xf32, #tpu.memory_space<vmem>>, %arg8: memref<1x8x256xf32, #tpu.memory_space<vmem>>, %arg9: memref<18x18x4xf32, #tpu.memory_space<vmem>>, %arg10: memref<18x18x32xf32, #tpu.memory_space<vmem>>) attributes {dimension_semantics = [#tpu.dimension_semantics<parallel>], iteration_bounds = array<i64: 2>, scalar_prefetch = 0 : i64, scratch_operands = 2 : i64, tpu.core_type = #tpu.core_type<tc>, window_params = [{transform_indices = @transform_0, window_bounds = array<i64: 1, 16, 16, 4>}, {pipeline_mode = #tpu.pipeline_mode<synchronous>, transform_indices = @transform_1, window_bounds = array<i64: 9, 4, 32>}, {pipeline_mode = #tpu.pipeline_mode<synchronous>, transform_indices = @transform_2, window_bounds = array<i64: 9, 32, 32>}, {pipeline_mode = #tpu.pipeline_mode<synchronous>, transform_indices = @transform_3, window_bounds = array<i64: 32, 8>}, {pipeline_mode = #tpu.pipeline_mode<synchronous>, transform_indices = @transform_4, window_bounds = array<i64: 1, 8>}, {pipeline_mode = #tpu.pipeline_mode<synchronous>, transform_indices = @transform_5, window_bounds = array<i64: 8, 32>}, {pipeline_mode = #tpu.pipeline_mode<synchronous>, transform_indices = @transform_6, window_bounds = array<i64: 1, 32>}, {transform_indices = @transform_7, window_bounds = array<i64: 1, 8, 256>}]} {
    %c0 = arith.constant 0 : index
    %c0_0 = arith.constant 0 : index
    %c0_1 = arith.constant 0 : index
    %c0_2 = arith.constant 0 : index
    %0 = vector.load %arg1[%c0, %c0_0, %c0_1, %c0_2] : memref<1x16x16x4xbf16, #tpu.memory_space<vmem>>, vector<1x16x16x4xbf16>
    %1 = vector.shape_cast %0 : vector<1x16x16x4xbf16> to vector<16x16x4xbf16>
    %2 = arith.extf %1 : vector<16x16x4xbf16> to vector<16x16x4xf32>
    %c1 = arith.constant 1 : index
    %c1_3 = arith.constant 1 : index
    %c0_4 = arith.constant 0 : index
    %3 = vector.load %arg9[%c1, %c1_3, %c0_4] : memref<18x18x4xf32, #tpu.memory_space<vmem>>, vector<16x16x4xf32>
    tpu.vector_store %arg9[%c1, %c1_3, %c0_4], %2 {strides = array<i32>} : memref<18x18x4xf32, #tpu.memory_space<vmem>>, vector<16x16x4xf32>,
    %4 = vector.extract_strided_slice %2 {offsets = [0, 0, 0], sizes = [1, 16, 4], strides = [1, 1, 1]} : vector<16x16x4xf32> to vector<1x16x4xf32>
    %c0_5 = arith.constant 0 : index
    %c1_6 = arith.constant 1 : index
    %c0_7 = arith.constant 0 : index
    %5 = vector.load %arg9[%c0_5, %c1_6, %c0_7] : memref<18x18x4xf32, #tpu.memory_space<vmem>>, vector<1x16x4xf32>
    tpu.vector_store %arg9[%c0_5, %c1_6, %c0_7], %4 {strides = array<i32>} : memref<18x18x4xf32, #tpu.memory_space<vmem>>, vector<1x16x4xf32>,
    %6 = vector.extract_strided_slice %2 {offsets = [15, 0, 0], sizes = [1, 16, 4], strides = [1, 1, 1]} : vector<16x16x4xf32> to vector<1x16x4xf32>
    %c17 = arith.constant 17 : index
    %c1_8 = arith.constant 1 : index
    %c0_9 = arith.constant 0 : index
    %7 = vector.load %arg9[%c17, %c1_8, %c0_9] : memref<18x18x4xf32, #tpu.memory_space<vmem>>, vector<1x16x4xf32>
    tpu.vector_store %arg9[%c17, %c1_8, %c0_9], %6 {strides = array<i32>} : memref<18x18x4xf32, #tpu.memory_space<vmem>>, vector<1x16x4xf32>,
    %c0_10 = arith.constant 0 : index
    %c1_11 = arith.constant 1 : index
    %c0_12 = arith.constant 0 : index
    %8 = vector.load %arg9[%c0_10, %c1_11, %c0_12] : memref<18x18x4xf32, #tpu.memory_space<vmem>>, vector<18x1x4xf32>
    %c0_13 = arith.constant 0 : index
    %c0_14 = arith.constant 0 : index
    %c0_15 = arith.constant 0 : index
    %9 = vector.load %arg9[%c0_13, %c0_14, %c0_15] : memref<18x18x4xf32, #tpu.memory_space<vmem>>, vector<18x1x4xf32>
    tpu.vector_store %arg9[%c0_13, %c0_14, %c0_15], %8 {strides = array<i32>} : memref<18x18x4xf32, #tpu.memory_space<vmem>>, vector<18x1x4xf32>,
    %c0_16 = arith.constant 0 : index
    %c16 = arith.constant 16 : index
    %c0_17 = arith.constant 0 : index
    %10 = vector.load %arg9[%c0_16, %c16, %c0_17] : memref<18x18x4xf32, #tpu.memory_space<vmem>>, vector<18x1x4xf32>
    %c0_18 = arith.constant 0 : index
    %c17_19 = arith.constant 17 : index
    %c0_20 = arith.constant 0 : index
    %11 = vector.load %arg9[%c0_18, %c17_19, %c0_20] : memref<18x18x4xf32, #tpu.memory_space<vmem>>, vector<18x1x4xf32>
    tpu.vector_store %arg9[%c0_18, %c17_19, %c0_20], %10 {strides = array<i32>} : memref<18x18x4xf32, #tpu.memory_space<vmem>>, vector<18x1x4xf32>,
    %c0_21 = arith.constant 0 : index
    %c0_22 = arith.constant 0 : index
    %c0_23 = arith.constant 0 : index
    %12 = vector.load %arg9[%c0_21, %c0_22, %c0_23] : memref<18x18x4xf32, #tpu.memory_space<vmem>>, vector<16x16x4xf32>
    %13 = arith.truncf %12 : vector<16x16x4xf32> to vector<16x16x4xbf16>
    %14 = vector.shape_cast %13 : vector<16x16x4xbf16> to vector<256x4xbf16>
    %c0_24 = arith.constant 0 : index
    %c0_25 = arith.constant 0 : index
    %c0_26 = arith.constant 0 : index
    %15 = vector.load %arg2[%c0_24, %c0_25, %c0_26] : memref<9x4x32xbf16, #tpu.memory_space<vmem>>, vector<1x4x32xbf16>
    %16 = vector.shape_cast %15 : vector<1x4x32xbf16> to vector<4x32xbf16>
    %cst = arith.constant dense<0.000000e+00> : vector<256x32xf32>
    %17 = tpu.matmul %14, %16, %cst {dimension_numbers = #tpu.dot_dimension_numbers<[1], [0], [0], [1], [0, 0, 1, 1], [], []>} : vector<256x4xbf16>, vector<4x32xbf16>, vector<256x32xf32> -> vector<256x32xf32>
    %c0_27 = arith.constant 0 : index
    %c1_28 = arith.constant 1 : index
    %c0_29 = arith.constant 0 : index
    %18 = vector.load %arg9[%c0_27, %c1_28, %c0_29] : memref<18x18x4xf32, #tpu.memory_space<vmem>>, vector<16x16x4xf32>
    %19 = arith.truncf %18 : vector<16x16x4xf32> to vector<16x16x4xbf16>
    %20 = vector.shape_cast %19 : vector<16x16x4xbf16> to vector<256x4xbf16>
    %c1_30 = arith.constant 1 : index
    %c0_31 = arith.constant 0 : index
    %c0_32 = arith.constant 0 : index
    %21 = vector.load %arg2[%c1_30, %c0_31, %c0_32] : memref<9x4x32xbf16, #tpu.memory_space<vmem>>, vector<1x4x32xbf16>
    %22 = vector.shape_cast %21 : vector<1x4x32xbf16> to vector<4x32xbf16>
    %cst_33 = arith.constant dense<0.000000e+00> : vector<256x32xf32>
    %23 = tpu.matmul %20, %22, %cst_33 {dimension_numbers = #tpu.dot_dimension_numbers<[1], [0], [0], [1], [0, 0, 1, 1], [], []>} : vector<256x4xbf16>, vector<4x32xbf16>, vector<256x32xf32> -> vector<256x32xf32>
    %24 = arith.addf %17, %23 : vector<256x32xf32>
    %c0_34 = arith.constant 0 : index
    %c2 = arith.constant 2 : index
    %c0_35 = arith.constant 0 : index
    %25 = vector.load %arg9[%c0_34, %c2, %c0_35] : memref<18x18x4xf32, #tpu.memory_space<vmem>>, vector<16x16x4xf32>
    %26 = arith.truncf %25 : vector<16x16x4xf32> to vector<16x16x4xbf16>
    %27 = vector.shape_cast %26 : vector<16x16x4xbf16> to vector<256x4xbf16>
    %c2_36 = arith.constant 2 : index
    %c0_37 = arith.constant 0 : index
    %c0_38 = arith.constant 0 : index
    %28 = vector.load %arg2[%c2_36, %c0_37, %c0_38] : memref<9x4x32xbf16, #tpu.memory_space<vmem>>, vector<1x4x32xbf16>
    %29 = vector.shape_cast %28 : vector<1x4x32xbf16> to vector<4x32xbf16>
    %cst_39 = arith.constant dense<0.000000e+00> : vector<256x32xf32>
    %30 = tpu.matmul %27, %29, %cst_39 {dimension_numbers = #tpu.dot_dimension_numbers<[1], [0], [0], [1], [0, 0, 1, 1], [], []>} : vector<256x4xbf16>, vector<4x32xbf16>, vector<256x32xf32> -> vector<256x32xf32>
    %31 = arith.addf %24, %30 : vector<256x32xf32>
    %c1_40 = arith.constant 1 : index
    %c0_41 = arith.constant 0 : index
    %c0_42 = arith.constant 0 : index
    %32 = vector.load %arg9[%c1_40, %c0_41, %c0_42] : memref<18x18x4xf32, #tpu.memory_space<vmem>>, vector<16x16x4xf32>
    %33 = arith.truncf %32 : vector<16x16x4xf32> to vector<16x16x4xbf16>
    %34 = vector.shape_cast %33 : vector<16x16x4xbf16> to vector<256x4xbf16>
    %c3 = arith.constant 3 : index
    %c0_43 = arith.constant 0 : index
    %c0_44 = arith.constant 0 : index
    %35 = vector.load %arg2[%c3, %c0_43, %c0_44] : memref<9x4x32xbf16, #tpu.memory_space<vmem>>, vector<1x4x32xbf16>
    %36 = vector.shape_cast %35 : vector<1x4x32xbf16> to vector<4x32xbf16>
    %cst_45 = arith.constant dense<0.000000e+00> : vector<256x32xf32>
    %37 = tpu.matmul %34, %36, %cst_45 {dimension_numbers = #tpu.dot_dimension_numbers<[1], [0], [0], [1], [0, 0, 1, 1], [], []>} : vector<256x4xbf16>, vector<4x32xbf16>, vector<256x32xf32> -> vector<256x32xf32>
    %38 = arith.addf %31, %37 : vector<256x32xf32>
    %c1_46 = arith.constant 1 : index
    %c1_47 = arith.constant 1 : index
    %c0_48 = arith.constant 0 : index
    %39 = vector.load %arg9[%c1_46, %c1_47, %c0_48] : memref<18x18x4xf32, #tpu.memory_space<vmem>>, vector<16x16x4xf32>
    %40 = arith.truncf %39 : vector<16x16x4xf32> to vector<16x16x4xbf16>
    %41 = vector.shape_cast %40 : vector<16x16x4xbf16> to vector<256x4xbf16>
    %c4 = arith.constant 4 : index
    %c0_49 = arith.constant 0 : index
    %c0_50 = arith.constant 0 : index
    %42 = vector.load %arg2[%c4, %c0_49, %c0_50] : memref<9x4x32xbf16, #tpu.memory_space<vmem>>, vector<1x4x32xbf16>
    %43 = vector.shape_cast %42 : vector<1x4x32xbf16> to vector<4x32xbf16>
    %cst_51 = arith.constant dense<0.000000e+00> : vector<256x32xf32>
    %44 = tpu.matmul %41, %43, %cst_51 {dimension_numbers = #tpu.dot_dimension_numbers<[1], [0], [0], [1], [0, 0, 1, 1], [], []>} : vector<256x4xbf16>, vector<4x32xbf16>, vector<256x32xf32> -> vector<256x32xf32>
    %45 = arith.addf %38, %44 : vector<256x32xf32>
    %c1_52 = arith.constant 1 : index
    %c2_53 = arith.constant 2 : index
    %c0_54 = arith.constant 0 : index
    %46 = vector.load %arg9[%c1_52, %c2_53, %c0_54] : memref<18x18x4xf32, #tpu.memory_space<vmem>>, vector<16x16x4xf32>
    %47 = arith.truncf %46 : vector<16x16x4xf32> to vector<16x16x4xbf16>
    %48 = vector.shape_cast %47 : vector<16x16x4xbf16> to vector<256x4xbf16>
    %c5 = arith.constant 5 : index
    %c0_55 = arith.constant 0 : index
    %c0_56 = arith.constant 0 : index
    %49 = vector.load %arg2[%c5, %c0_55, %c0_56] : memref<9x4x32xbf16, #tpu.memory_space<vmem>>, vector<1x4x32xbf16>
    %50 = vector.shape_cast %49 : vector<1x4x32xbf16> to vector<4x32xbf16>
    %cst_57 = arith.constant dense<0.000000e+00> : vector<256x32xf32>
    %51 = tpu.matmul %48, %50, %cst_57 {dimension_numbers = #tpu.dot_dimension_numbers<[1], [0], [0], [1], [0, 0, 1, 1], [], []>} : vector<256x4xbf16>, vector<4x32xbf16>, vector<256x32xf32> -> vector<256x32xf32>
    %52 = arith.addf %45, %51 : vector<256x32xf32>
    %c2_58 = arith.constant 2 : index
    %c0_59 = arith.constant 0 : index
    %c0_60 = arith.constant 0 : index
    %53 = vector.load %arg9[%c2_58, %c0_59, %c0_60] : memref<18x18x4xf32, #tpu.memory_space<vmem>>, vector<16x16x4xf32>
    %54 = arith.truncf %53 : vector<16x16x4xf32> to vector<16x16x4xbf16>
    %55 = vector.shape_cast %54 : vector<16x16x4xbf16> to vector<256x4xbf16>
    %c6 = arith.constant 6 : index
    %c0_61 = arith.constant 0 : index
    %c0_62 = arith.constant 0 : index
    %56 = vector.load %arg2[%c6, %c0_61, %c0_62] : memref<9x4x32xbf16, #tpu.memory_space<vmem>>, vector<1x4x32xbf16>
    %57 = vector.shape_cast %56 : vector<1x4x32xbf16> to vector<4x32xbf16>
    %cst_63 = arith.constant dense<0.000000e+00> : vector<256x32xf32>
    %58 = tpu.matmul %55, %57, %cst_63 {dimension_numbers = #tpu.dot_dimension_numbers<[1], [0], [0], [1], [0, 0, 1, 1], [], []>} : vector<256x4xbf16>, vector<4x32xbf16>, vector<256x32xf32> -> vector<256x32xf32>
    %59 = arith.addf %52, %58 : vector<256x32xf32>
    %c2_64 = arith.constant 2 : index
    %c1_65 = arith.constant 1 : index
    %c0_66 = arith.constant 0 : index
    %60 = vector.load %arg9[%c2_64, %c1_65, %c0_66] : memref<18x18x4xf32, #tpu.memory_space<vmem>>, vector<16x16x4xf32>
    %61 = arith.truncf %60 : vector<16x16x4xf32> to vector<16x16x4xbf16>
    %62 = vector.shape_cast %61 : vector<16x16x4xbf16> to vector<256x4xbf16>
    %c7 = arith.constant 7 : index
    %c0_67 = arith.constant 0 : index
    %c0_68 = arith.constant 0 : index
    %63 = vector.load %arg2[%c7, %c0_67, %c0_68] : memref<9x4x32xbf16, #tpu.memory_space<vmem>>, vector<1x4x32xbf16>
    %64 = vector.shape_cast %63 : vector<1x4x32xbf16> to vector<4x32xbf16>
    %cst_69 = arith.constant dense<0.000000e+00> : vector<256x32xf32>
    %65 = tpu.matmul %62, %64, %cst_69 {dimension_numbers = #tpu.dot_dimension_numbers<[1], [0], [0], [1], [0, 0, 1, 1], [], []>} : vector<256x4xbf16>, vector<4x32xbf16>, vector<256x32xf32> -> vector<256x32xf32>
    %66 = arith.addf %59, %65 : vector<256x32xf32>
    %c2_70 = arith.constant 2 : index
    %c2_71 = arith.constant 2 : index
    %c0_72 = arith.constant 0 : index
    %67 = vector.load %arg9[%c2_70, %c2_71, %c0_72] : memref<18x18x4xf32, #tpu.memory_space<vmem>>, vector<16x16x4xf32>
    %68 = arith.truncf %67 : vector<16x16x4xf32> to vector<16x16x4xbf16>
    %69 = vector.shape_cast %68 : vector<16x16x4xbf16> to vector<256x4xbf16>
    %c8 = arith.constant 8 : index
    %c0_73 = arith.constant 0 : index
    %c0_74 = arith.constant 0 : index
    %70 = vector.load %arg2[%c8, %c0_73, %c0_74] : memref<9x4x32xbf16, #tpu.memory_space<vmem>>, vector<1x4x32xbf16>
    %71 = vector.shape_cast %70 : vector<1x4x32xbf16> to vector<4x32xbf16>
    %cst_75 = arith.constant dense<0.000000e+00> : vector<256x32xf32>
    %72 = tpu.matmul %69, %71, %cst_75 {dimension_numbers = #tpu.dot_dimension_numbers<[1], [0], [0], [1], [0, 0, 1, 1], [], []>} : vector<256x4xbf16>, vector<4x32xbf16>, vector<256x32xf32> -> vector<256x32xf32>
    %73 = arith.addf %66, %72 : vector<256x32xf32>
    %cst_76 = arith.constant dense<0.000000e+00> : vector<32xf32>
    %74 = vector.multi_reduction <add>, %73, %cst_76 [0] : vector<256x32xf32> to vector<32xf32>
    %75 = vector.shape_cast %74 : vector<32xf32> to vector<1x32xf32>
    %cst_77 = arith.constant 3.906250e-03 : f32
    %76 = vector.broadcast %cst_77 : f32 to vector<1x32xf32>
    %77 = arith.mulf %75, %76 : vector<1x32xf32>
    %78 = arith.mulf %73, %73 : vector<256x32xf32>
    %cst_78 = arith.constant dense<0.000000e+00> : vector<32xf32>
    %79 = vector.multi_reduction <add>, %78, %cst_78 [0] : vector<256x32xf32> to vector<32xf32>
    %80 = vector.shape_cast %79 : vector<32xf32> to vector<1x32xf32>
    %cst_79 = arith.constant 3.906250e-03 : f32
    %81 = vector.broadcast %cst_79 : f32 to vector<1x32xf32>
    %82 = arith.mulf %80, %81 : vector<1x32xf32>
    %83 = arith.mulf %77, %77 : vector<1x32xf32>
    %84 = arith.subf %82, %83 : vector<1x32xf32>
    %cst_80 = arith.constant 0.000000e+00 : f32
    %85 = vector.broadcast %cst_80 : f32 to vector<1x32xf32>
    %86 = arith.maximumf %84, %85 : vector<1x32xf32>
    %87 = vector.broadcast %77 : vector<1x32xf32> to vector<256x32xf32>
    %88 = arith.subf %73, %87 : vector<256x32xf32>
    %cst_81 = arith.constant 9.99999974E-6 : f32
    %89 = vector.broadcast %cst_81 : f32 to vector<1x32xf32>
    %90 = arith.addf %86, %89 : vector<1x32xf32>
    %91 = math.rsqrt %90 : vector<1x32xf32>
    %92 = vector.broadcast %91 : vector<1x32xf32> to vector<256x32xf32>
    %93 = arith.mulf %88, %92 : vector<256x32xf32>
    %cst_82 = arith.constant 0.000000e+00 : f32
    %94 = vector.broadcast %cst_82 : f32 to vector<256x32xf32>
    %95 = arith.cmpf ogt, %93, %94 : vector<256x32xf32>
    %cst_83 = arith.constant 0.000000e+00 : f32
    %96 = vector.broadcast %cst_83 : f32 to vector<256x32xf32>
    %97 = arith.minimumf %93, %96 : vector<256x32xf32>
    %98 = math.exp %97 : vector<256x32xf32>
    %cst_84 = arith.constant 1.000000e+00 : f32
    %99 = vector.broadcast %cst_84 : f32 to vector<256x32xf32>
    %100 = arith.subf %98, %99 : vector<256x32xf32>
    %101 = arith.select %95, %93, %100 : vector<256x32xi1>, vector<256x32xf32>
    %102 = vector.shape_cast %101 : vector<256x32xf32> to vector<16x16x32xf32>
    %c1_85 = arith.constant 1 : index
    %c1_86 = arith.constant 1 : index
    %c0_87 = arith.constant 0 : index
    %103 = vector.load %arg10[%c1_85, %c1_86, %c0_87] : memref<18x18x32xf32, #tpu.memory_space<vmem>>, vector<16x16x32xf32>
    tpu.vector_store %arg10[%c1_85, %c1_86, %c0_87], %102 {strides = array<i32>} : memref<18x18x32xf32, #tpu.memory_space<vmem>>, vector<16x16x32xf32>,
    %104 = vector.extract_strided_slice %102 {offsets = [0, 0, 0], sizes = [1, 16, 32], strides = [1, 1, 1]} : vector<16x16x32xf32> to vector<1x16x32xf32>
    %c0_88 = arith.constant 0 : index
    %c1_89 = arith.constant 1 : index
    %c0_90 = arith.constant 0 : index
    %105 = vector.load %arg10[%c0_88, %c1_89, %c0_90] : memref<18x18x32xf32, #tpu.memory_space<vmem>>, vector<1x16x32xf32>
    tpu.vector_store %arg10[%c0_88, %c1_89, %c0_90], %104 {strides = array<i32>} : memref<18x18x32xf32, #tpu.memory_space<vmem>>, vector<1x16x32xf32>,
    %106 = vector.extract_strided_slice %102 {offsets = [15, 0, 0], sizes = [1, 16, 32], strides = [1, 1, 1]} : vector<16x16x32xf32> to vector<1x16x32xf32>
    %c17_91 = arith.constant 17 : index
    %c1_92 = arith.constant 1 : index
    %c0_93 = arith.constant 0 : index
    %107 = vector.load %arg10[%c17_91, %c1_92, %c0_93] : memref<18x18x32xf32, #tpu.memory_space<vmem>>, vector<1x16x32xf32>
    tpu.vector_store %arg10[%c17_91, %c1_92, %c0_93], %106 {strides = array<i32>} : memref<18x18x32xf32, #tpu.memory_space<vmem>>, vector<1x16x32xf32>,
    %c0_94 = arith.constant 0 : index
    %c1_95 = arith.constant 1 : index
    %c0_96 = arith.constant 0 : index
    %108 = vector.load %arg10[%c0_94, %c1_95, %c0_96] : memref<18x18x32xf32, #tpu.memory_space<vmem>>, vector<18x1x32xf32>
    %c0_97 = arith.constant 0 : index
    %c0_98 = arith.constant 0 : index
    %c0_99 = arith.constant 0 : index
    %109 = vector.load %arg10[%c0_97, %c0_98, %c0_99] : memref<18x18x32xf32, #tpu.memory_space<vmem>>, vector<18x1x32xf32>
    tpu.vector_store %arg10[%c0_97, %c0_98, %c0_99], %108 {strides = array<i32>} : memref<18x18x32xf32, #tpu.memory_space<vmem>>, vector<18x1x32xf32>,
    %c0_100 = arith.constant 0 : index
    %c16_101 = arith.constant 16 : index
    %c0_102 = arith.constant 0 : index
    %110 = vector.load %arg10[%c0_100, %c16_101, %c0_102] : memref<18x18x32xf32, #tpu.memory_space<vmem>>, vector<18x1x32xf32>
    %c0_103 = arith.constant 0 : index
    %c17_104 = arith.constant 17 : index
    %c0_105 = arith.constant 0 : index
    %111 = vector.load %arg10[%c0_103, %c17_104, %c0_105] : memref<18x18x32xf32, #tpu.memory_space<vmem>>, vector<18x1x32xf32>
    tpu.vector_store %arg10[%c0_103, %c17_104, %c0_105], %110 {strides = array<i32>} : memref<18x18x32xf32, #tpu.memory_space<vmem>>, vector<18x1x32xf32>,
    %c0_106 = arith.constant 0 : index
    %c0_107 = arith.constant 0 : index
    %c0_108 = arith.constant 0 : index
    %112 = vector.load %arg10[%c0_106, %c0_107, %c0_108] : memref<18x18x32xf32, #tpu.memory_space<vmem>>, vector<16x16x32xf32>
    %113 = arith.truncf %112 : vector<16x16x32xf32> to vector<16x16x32xbf16>
    %114 = vector.shape_cast %113 : vector<16x16x32xbf16> to vector<256x32xbf16>
    %c0_109 = arith.constant 0 : index
    %c0_110 = arith.constant 0 : index
    %c0_111 = arith.constant 0 : index
    %115 = vector.load %arg3[%c0_109, %c0_110, %c0_111] : memref<9x32x32xbf16, #tpu.memory_space<vmem>>, vector<1x32x32xbf16>
    %116 = vector.shape_cast %115 : vector<1x32x32xbf16> to vector<32x32xbf16>
    %cst_112 = arith.constant dense<0.000000e+00> : vector<256x32xf32>
    %117 = tpu.matmul %114, %116, %cst_112 {dimension_numbers = #tpu.dot_dimension_numbers<[1], [0], [0], [1], [0, 0, 1, 1], [], []>} : vector<256x32xbf16>, vector<32x32xbf16>, vector<256x32xf32> -> vector<256x32xf32>
    %c0_113 = arith.constant 0 : index
    %c1_114 = arith.constant 1 : index
    %c0_115 = arith.constant 0 : index
    %118 = vector.load %arg10[%c0_113, %c1_114, %c0_115] : memref<18x18x32xf32, #tpu.memory_space<vmem>>, vector<16x16x32xf32>
    %119 = arith.truncf %118 : vector<16x16x32xf32> to vector<16x16x32xbf16>
    %120 = vector.shape_cast %119 : vector<16x16x32xbf16> to vector<256x32xbf16>
    %c1_116 = arith.constant 1 : index
    %c0_117 = arith.constant 0 : index
    %c0_118 = arith.constant 0 : index
    %121 = vector.load %arg3[%c1_116, %c0_117, %c0_118] : memref<9x32x32xbf16, #tpu.memory_space<vmem>>, vector<1x32x32xbf16>
    %122 = vector.shape_cast %121 : vector<1x32x32xbf16> to vector<32x32xbf16>
    %cst_119 = arith.constant dense<0.000000e+00> : vector<256x32xf32>
    %123 = tpu.matmul %120, %122, %cst_119 {dimension_numbers = #tpu.dot_dimension_numbers<[1], [0], [0], [1], [0, 0, 1, 1], [], []>} : vector<256x32xbf16>, vector<32x32xbf16>, vector<256x32xf32> -> vector<256x32xf32>
    %124 = arith.addf %117, %123 : vector<256x32xf32>
    %c0_120 = arith.constant 0 : index
    %c2_121 = arith.constant 2 : index
    %c0_122 = arith.constant 0 : index
    %125 = vector.load %arg10[%c0_120, %c2_121, %c0_122] : memref<18x18x32xf32, #tpu.memory_space<vmem>>, vector<16x16x32xf32>
    %126 = arith.truncf %125 : vector<16x16x32xf32> to vector<16x16x32xbf16>
    %127 = vector.shape_cast %126 : vector<16x16x32xbf16> to vector<256x32xbf16>
    %c2_123 = arith.constant 2 : index
    %c0_124 = arith.constant 0 : index
    %c0_125 = arith.constant 0 : index
    %128 = vector.load %arg3[%c2_123, %c0_124, %c0_125] : memref<9x32x32xbf16, #tpu.memory_space<vmem>>, vector<1x32x32xbf16>
    %129 = vector.shape_cast %128 : vector<1x32x32xbf16> to vector<32x32xbf16>
    %cst_126 = arith.constant dense<0.000000e+00> : vector<256x32xf32>
    %130 = tpu.matmul %127, %129, %cst_126 {dimension_numbers = #tpu.dot_dimension_numbers<[1], [0], [0], [1], [0, 0, 1, 1], [], []>} : vector<256x32xbf16>, vector<32x32xbf16>, vector<256x32xf32> -> vector<256x32xf32>
    %131 = arith.addf %124, %130 : vector<256x32xf32>
    %c1_127 = arith.constant 1 : index
    %c0_128 = arith.constant 0 : index
    %c0_129 = arith.constant 0 : index
    %132 = vector.load %arg10[%c1_127, %c0_128, %c0_129] : memref<18x18x32xf32, #tpu.memory_space<vmem>>, vector<16x16x32xf32>
    %133 = arith.truncf %132 : vector<16x16x32xf32> to vector<16x16x32xbf16>
    %134 = vector.shape_cast %133 : vector<16x16x32xbf16> to vector<256x32xbf16>
    %c3_130 = arith.constant 3 : index
    %c0_131 = arith.constant 0 : index
    %c0_132 = arith.constant 0 : index
    %135 = vector.load %arg3[%c3_130, %c0_131, %c0_132] : memref<9x32x32xbf16, #tpu.memory_space<vmem>>, vector<1x32x32xbf16>
    %136 = vector.shape_cast %135 : vector<1x32x32xbf16> to vector<32x32xbf16>
    %cst_133 = arith.constant dense<0.000000e+00> : vector<256x32xf32>
    %137 = tpu.matmul %134, %136, %cst_133 {dimension_numbers = #tpu.dot_dimension_numbers<[1], [0], [0], [1], [0, 0, 1, 1], [], []>} : vector<256x32xbf16>, vector<32x32xbf16>, vector<256x32xf32> -> vector<256x32xf32>
    %138 = arith.addf %131, %137 : vector<256x32xf32>
    %c1_134 = arith.constant 1 : index
    %c1_135 = arith.constant 1 : index
    %c0_136 = arith.constant 0 : index
    %139 = vector.load %arg10[%c1_134, %c1_135, %c0_136] : memref<18x18x32xf32, #tpu.memory_space<vmem>>, vector<16x16x32xf32>
    %140 = arith.truncf %139 : vector<16x16x32xf32> to vector<16x16x32xbf16>
    %141 = vector.shape_cast %140 : vector<16x16x32xbf16> to vector<256x32xbf16>
    %c4_137 = arith.constant 4 : index
    %c0_138 = arith.constant 0 : index
    %c0_139 = arith.constant 0 : index
    %142 = vector.load %arg3[%c4_137, %c0_138, %c0_139] : memref<9x32x32xbf16, #tpu.memory_space<vmem>>, vector<1x32x32xbf16>
    %143 = vector.shape_cast %142 : vector<1x32x32xbf16> to vector<32x32xbf16>
    %cst_140 = arith.constant dense<0.000000e+00> : vector<256x32xf32>
    %144 = tpu.matmul %141, %143, %cst_140 {dimension_numbers = #tpu.dot_dimension_numbers<[1], [0], [0], [1], [0, 0, 1, 1], [], []>} : vector<256x32xbf16>, vector<32x32xbf16>, vector<256x32xf32> -> vector<256x32xf32>
    %145 = arith.addf %138, %144 : vector<256x32xf32>
    %c1_141 = arith.constant 1 : index
    %c2_142 = arith.constant 2 : index
    %c0_143 = arith.constant 0 : index
    %146 = vector.load %arg10[%c1_141, %c2_142, %c0_143] : memref<18x18x32xf32, #tpu.memory_space<vmem>>, vector<16x16x32xf32>
    %147 = arith.truncf %146 : vector<16x16x32xf32> to vector<16x16x32xbf16>
    %148 = vector.shape_cast %147 : vector<16x16x32xbf16> to vector<256x32xbf16>
    %c5_144 = arith.constant 5 : index
    %c0_145 = arith.constant 0 : index
    %c0_146 = arith.constant 0 : index
    %149 = vector.load %arg3[%c5_144, %c0_145, %c0_146] : memref<9x32x32xbf16, #tpu.memory_space<vmem>>, vector<1x32x32xbf16>
    %150 = vector.shape_cast %149 : vector<1x32x32xbf16> to vector<32x32xbf16>
    %cst_147 = arith.constant dense<0.000000e+00> : vector<256x32xf32>
    %151 = tpu.matmul %148, %150, %cst_147 {dimension_numbers = #tpu.dot_dimension_numbers<[1], [0], [0], [1], [0, 0, 1, 1], [], []>} : vector<256x32xbf16>, vector<32x32xbf16>, vector<256x32xf32> -> vector<256x32xf32>
    %152 = arith.addf %145, %151 : vector<256x32xf32>
    %c2_148 = arith.constant 2 : index
    %c0_149 = arith.constant 0 : index
    %c0_150 = arith.constant 0 : index
    %153 = vector.load %arg10[%c2_148, %c0_149, %c0_150] : memref<18x18x32xf32, #tpu.memory_space<vmem>>, vector<16x16x32xf32>
    %154 = arith.truncf %153 : vector<16x16x32xf32> to vector<16x16x32xbf16>
    %155 = vector.shape_cast %154 : vector<16x16x32xbf16> to vector<256x32xbf16>
    %c6_151 = arith.constant 6 : index
    %c0_152 = arith.constant 0 : index
    %c0_153 = arith.constant 0 : index
    %156 = vector.load %arg3[%c6_151, %c0_152, %c0_153] : memref<9x32x32xbf16, #tpu.memory_space<vmem>>, vector<1x32x32xbf16>
    %157 = vector.shape_cast %156 : vector<1x32x32xbf16> to vector<32x32xbf16>
    %cst_154 = arith.constant dense<0.000000e+00> : vector<256x32xf32>
    %158 = tpu.matmul %155, %157, %cst_154 {dimension_numbers = #tpu.dot_dimension_numbers<[1], [0], [0], [1], [0, 0, 1, 1], [], []>} : vector<256x32xbf16>, vector<32x32xbf16>, vector<256x32xf32> -> vector<256x32xf32>
    %159 = arith.addf %152, %158 : vector<256x32xf32>
    %c2_155 = arith.constant 2 : index
    %c1_156 = arith.constant 1 : index
    %c0_157 = arith.constant 0 : index
    %160 = vector.load %arg10[%c2_155, %c1_156, %c0_157] : memref<18x18x32xf32, #tpu.memory_space<vmem>>, vector<16x16x32xf32>
    %161 = arith.truncf %160 : vector<16x16x32xf32> to vector<16x16x32xbf16>
    %162 = vector.shape_cast %161 : vector<16x16x32xbf16> to vector<256x32xbf16>
    %c7_158 = arith.constant 7 : index
    %c0_159 = arith.constant 0 : index
    %c0_160 = arith.constant 0 : index
    %163 = vector.load %arg3[%c7_158, %c0_159, %c0_160] : memref<9x32x32xbf16, #tpu.memory_space<vmem>>, vector<1x32x32xbf16>
    %164 = vector.shape_cast %163 : vector<1x32x32xbf16> to vector<32x32xbf16>
    %cst_161 = arith.constant dense<0.000000e+00> : vector<256x32xf32>
    %165 = tpu.matmul %162, %164, %cst_161 {dimension_numbers = #tpu.dot_dimension_numbers<[1], [0], [0], [1], [0, 0, 1, 1], [], []>} : vector<256x32xbf16>, vector<32x32xbf16>, vector<256x32xf32> -> vector<256x32xf32>
    %166 = arith.addf %159, %165 : vector<256x32xf32>
    %c2_162 = arith.constant 2 : index
    %c2_163 = arith.constant 2 : index
    %c0_164 = arith.constant 0 : index
    %167 = vector.load %arg10[%c2_162, %c2_163, %c0_164] : memref<18x18x32xf32, #tpu.memory_space<vmem>>, vector<16x16x32xf32>
    %168 = arith.truncf %167 : vector<16x16x32xf32> to vector<16x16x32xbf16>
    %169 = vector.shape_cast %168 : vector<16x16x32xbf16> to vector<256x32xbf16>
    %c8_165 = arith.constant 8 : index
    %c0_166 = arith.constant 0 : index
    %c0_167 = arith.constant 0 : index
    %170 = vector.load %arg3[%c8_165, %c0_166, %c0_167] : memref<9x32x32xbf16, #tpu.memory_space<vmem>>, vector<1x32x32xbf16>
    %171 = vector.shape_cast %170 : vector<1x32x32xbf16> to vector<32x32xbf16>
    %cst_168 = arith.constant dense<0.000000e+00> : vector<256x32xf32>
    %172 = tpu.matmul %169, %171, %cst_168 {dimension_numbers = #tpu.dot_dimension_numbers<[1], [0], [0], [1], [0, 0, 1, 1], [], []>} : vector<256x32xbf16>, vector<32x32xbf16>, vector<256x32xf32> -> vector<256x32xf32>
    %173 = arith.addf %166, %172 : vector<256x32xf32>
    %cst_169 = arith.constant dense<0.000000e+00> : vector<32xf32>
    %174 = vector.multi_reduction <add>, %173, %cst_169 [0] : vector<256x32xf32> to vector<32xf32>
    %175 = vector.shape_cast %174 : vector<32xf32> to vector<1x32xf32>
    %cst_170 = arith.constant 3.906250e-03 : f32
    %176 = vector.broadcast %cst_170 : f32 to vector<1x32xf32>
    %177 = arith.mulf %175, %176 : vector<1x32xf32>
    %178 = arith.mulf %173, %173 : vector<256x32xf32>
    %cst_171 = arith.constant dense<0.000000e+00> : vector<32xf32>
    %179 = vector.multi_reduction <add>, %178, %cst_171 [0] : vector<256x32xf32> to vector<32xf32>
    %180 = vector.shape_cast %179 : vector<32xf32> to vector<1x32xf32>
    %cst_172 = arith.constant 3.906250e-03 : f32
    %181 = vector.broadcast %cst_172 : f32 to vector<1x32xf32>
    %182 = arith.mulf %180, %181 : vector<1x32xf32>
    %183 = arith.mulf %177, %177 : vector<1x32xf32>
    %184 = arith.subf %182, %183 : vector<1x32xf32>
    %cst_173 = arith.constant 0.000000e+00 : f32
    %185 = vector.broadcast %cst_173 : f32 to vector<1x32xf32>
    %186 = arith.maximumf %184, %185 : vector<1x32xf32>
    %187 = vector.broadcast %177 : vector<1x32xf32> to vector<256x32xf32>
    %188 = arith.subf %173, %187 : vector<256x32xf32>
    %cst_174 = arith.constant 9.99999974E-6 : f32
    %189 = vector.broadcast %cst_174 : f32 to vector<1x32xf32>
    %190 = arith.addf %186, %189 : vector<1x32xf32>
    %191 = math.rsqrt %190 : vector<1x32xf32>
    %192 = vector.broadcast %191 : vector<1x32xf32> to vector<256x32xf32>
    %193 = arith.mulf %188, %192 : vector<256x32xf32>
    %cst_175 = arith.constant dense<0.000000e+00> : vector<32xf32>
    %194 = vector.multi_reduction <add>, %193, %cst_175 [0] : vector<256x32xf32> to vector<32xf32>
    %195 = vector.shape_cast %194 : vector<32xf32> to vector<1x32xf32>
    %cst_176 = arith.constant 3.906250e-03 : f32
    %196 = vector.broadcast %cst_176 : f32 to vector<1x32xf32>
    %197 = arith.mulf %195, %196 : vector<1x32xf32>
    %c0_177 = arith.constant 0 : index
    %c0_178 = arith.constant 0 : index
    %198 = vector.load %arg4[%c0_177, %c0_178] : memref<32x8xf32, #tpu.memory_space<vmem>>, vector<32x8xf32>
    %cst_179 = arith.constant dense<0.000000e+00> : vector<1x8xf32>
    %199 = tpu.matmul %197, %198, %cst_179 {dimension_numbers = #tpu.dot_dimension_numbers<[1], [0], [0], [1], [0, 0, 1, 1], [], []>} : vector<1x32xf32>, vector<32x8xf32>, vector<1x8xf32> -> vector<1x8xf32>
    %c0_180 = arith.constant 0 : index
    %c0_181 = arith.constant 0 : index
    %200 = vector.load %arg5[%c0_180, %c0_181] : memref<1x8xf32, #tpu.memory_space<vmem>>, vector<1x8xf32>
    %201 = arith.addf %199, %200 : vector<1x8xf32>
    %cst_182 = arith.constant 0.000000e+00 : f32
    %202 = vector.broadcast %cst_182 : f32 to vector<1x8xf32>
    %203 = arith.maximumf %201, %202 : vector<1x8xf32>
    %c0_183 = arith.constant 0 : index
    %c0_184 = arith.constant 0 : index
    %204 = vector.load %arg6[%c0_183, %c0_184] : memref<8x32xf32, #tpu.memory_space<vmem>>, vector<8x32xf32>
    %cst_185 = arith.constant dense<0.000000e+00> : vector<1x32xf32>
    %205 = tpu.matmul %203, %204, %cst_185 {dimension_numbers = #tpu.dot_dimension_numbers<[1], [0], [0], [1], [0, 0, 1, 1], [], []>} : vector<1x8xf32>, vector<8x32xf32>, vector<1x32xf32> -> vector<1x32xf32>
    %c0_186 = arith.constant 0 : index
    %c0_187 = arith.constant 0 : index
    %206 = vector.load %arg7[%c0_186, %c0_187] : memref<1x32xf32, #tpu.memory_space<vmem>>, vector<1x32xf32>
    %207 = arith.addf %205, %206 : vector<1x32xf32>
    %208 = arith.negf %207 : vector<1x32xf32>
    %209 = math.exp %208 : vector<1x32xf32>
    %cst_188 = arith.constant 1.000000e+00 : f32
    %210 = vector.broadcast %cst_188 : f32 to vector<1x32xf32>
    %211 = arith.addf %210, %209 : vector<1x32xf32>
    %212 = arith.divf %210, %211 : vector<1x32xf32>
    %213 = vector.shape_cast %193 : vector<256x32xf32> to vector<8x2x16x32xf32>
    %214 = vector.extract_strided_slice %213 {offsets = [0, 0, 0, 0], sizes = [8, 1, 16, 32], strides = [1, 1, 1, 1]} : vector<8x2x16x32xf32> to vector<8x1x16x32xf32>
    %215 = vector.shape_cast %214 : vector<8x1x16x32xf32> to vector<8x16x32xf32>
    %216 = vector.extract_strided_slice %213 {offsets = [0, 1, 0, 0], sizes = [8, 1, 16, 32], strides = [1, 1, 1, 1]} : vector<8x2x16x32xf32> to vector<8x1x16x32xf32>
    %217 = vector.shape_cast %216 : vector<8x1x16x32xf32> to vector<8x16x32xf32>
    %218 = arith.maximumf %215, %217 : vector<8x16x32xf32>
    %219 = vector.extract_strided_slice %218 {offsets = [0, 0, 0], sizes = [8, 1, 32], strides = [1, 1, 1]} : vector<8x16x32xf32> to vector<8x1x32xf32>
    %220 = vector.shape_cast %219 : vector<8x1x32xf32> to vector<8x32xf32>
    %221 = vector.extract_strided_slice %218 {offsets = [0, 1, 0], sizes = [8, 1, 32], strides = [1, 1, 1]} : vector<8x16x32xf32> to vector<8x1x32xf32>
    %222 = vector.shape_cast %221 : vector<8x1x32xf32> to vector<8x32xf32>
    %223 = arith.maximumf %220, %222 : vector<8x32xf32>
    %224 = vector.extract_strided_slice %218 {offsets = [0, 2, 0], sizes = [8, 1, 32], strides = [1, 1, 1]} : vector<8x16x32xf32> to vector<8x1x32xf32>
    %225 = vector.shape_cast %224 : vector<8x1x32xf32> to vector<8x32xf32>
    %226 = vector.extract_strided_slice %218 {offsets = [0, 3, 0], sizes = [8, 1, 32], strides = [1, 1, 1]} : vector<8x16x32xf32> to vector<8x1x32xf32>
    %227 = vector.shape_cast %226 : vector<8x1x32xf32> to vector<8x32xf32>
    %228 = arith.maximumf %225, %227 : vector<8x32xf32>
    %229 = vector.extract_strided_slice %218 {offsets = [0, 4, 0], sizes = [8, 1, 32], strides = [1, 1, 1]} : vector<8x16x32xf32> to vector<8x1x32xf32>
    %230 = vector.shape_cast %229 : vector<8x1x32xf32> to vector<8x32xf32>
    %231 = vector.extract_strided_slice %218 {offsets = [0, 5, 0], sizes = [8, 1, 32], strides = [1, 1, 1]} : vector<8x16x32xf32> to vector<8x1x32xf32>
    %232 = vector.shape_cast %231 : vector<8x1x32xf32> to vector<8x32xf32>
    %233 = arith.maximumf %230, %232 : vector<8x32xf32>
    %234 = vector.extract_strided_slice %218 {offsets = [0, 6, 0], sizes = [8, 1, 32], strides = [1, 1, 1]} : vector<8x16x32xf32> to vector<8x1x32xf32>
    %235 = vector.shape_cast %234 : vector<8x1x32xf32> to vector<8x32xf32>
    %236 = vector.extract_strided_slice %218 {offsets = [0, 7, 0], sizes = [8, 1, 32], strides = [1, 1, 1]} : vector<8x16x32xf32> to vector<8x1x32xf32>
    %237 = vector.shape_cast %236 : vector<8x1x32xf32> to vector<8x32xf32>
    %238 = arith.maximumf %235, %237 : vector<8x32xf32>
    %239 = vector.extract_strided_slice %218 {offsets = [0, 8, 0], sizes = [8, 1, 32], strides = [1, 1, 1]} : vector<8x16x32xf32> to vector<8x1x32xf32>
    %240 = vector.shape_cast %239 : vector<8x1x32xf32> to vector<8x32xf32>
    %241 = vector.extract_strided_slice %218 {offsets = [0, 9, 0], sizes = [8, 1, 32], strides = [1, 1, 1]} : vector<8x16x32xf32> to vector<8x1x32xf32>
    %242 = vector.shape_cast %241 : vector<8x1x32xf32> to vector<8x32xf32>
    %243 = arith.maximumf %240, %242 : vector<8x32xf32>
    %244 = vector.extract_strided_slice %218 {offsets = [0, 10, 0], sizes = [8, 1, 32], strides = [1, 1, 1]} : vector<8x16x32xf32> to vector<8x1x32xf32>
    %245 = vector.shape_cast %244 : vector<8x1x32xf32> to vector<8x32xf32>
    %246 = vector.extract_strided_slice %218 {offsets = [0, 11, 0], sizes = [8, 1, 32], strides = [1, 1, 1]} : vector<8x16x32xf32> to vector<8x1x32xf32>
    %247 = vector.shape_cast %246 : vector<8x1x32xf32> to vector<8x32xf32>
    %248 = arith.maximumf %245, %247 : vector<8x32xf32>
    %249 = vector.extract_strided_slice %218 {offsets = [0, 12, 0], sizes = [8, 1, 32], strides = [1, 1, 1]} : vector<8x16x32xf32> to vector<8x1x32xf32>
    %250 = vector.shape_cast %249 : vector<8x1x32xf32> to vector<8x32xf32>
    %251 = vector.extract_strided_slice %218 {offsets = [0, 13, 0], sizes = [8, 1, 32], strides = [1, 1, 1]} : vector<8x16x32xf32> to vector<8x1x32xf32>
    %252 = vector.shape_cast %251 : vector<8x1x32xf32> to vector<8x32xf32>
    %253 = arith.maximumf %250, %252 : vector<8x32xf32>
    %254 = vector.extract_strided_slice %218 {offsets = [0, 14, 0], sizes = [8, 1, 32], strides = [1, 1, 1]} : vector<8x16x32xf32> to vector<8x1x32xf32>
    %255 = vector.shape_cast %254 : vector<8x1x32xf32> to vector<8x32xf32>
    %256 = vector.extract_strided_slice %218 {offsets = [0, 15, 0], sizes = [8, 1, 32], strides = [1, 1, 1]} : vector<8x16x32xf32> to vector<8x1x32xf32>
    %257 = vector.shape_cast %256 : vector<8x1x32xf32> to vector<8x32xf32>
    %258 = arith.maximumf %255, %257 : vector<8x32xf32>
    %259 = tpu.concatenate %223, %228, %233, %238, %243, %248, %253, %258 in 1 : vector<8x32xf32>, vector<8x32xf32>, vector<8x32xf32>, vector<8x32xf32>, vector<8x32xf32>, vector<8x32xf32>, vector<8x32xf32>, vector<8x32xf32> -> vector<8x256xf32>
    %260 = tpu.concatenate %212, %212, %212, %212, %212, %212, %212, %212 in 1 : vector<1x32xf32>, vector<1x32xf32>, vector<1x32xf32>, vector<1x32xf32>, vector<1x32xf32>, vector<1x32xf32>, vector<1x32xf32>, vector<1x32xf32> -> vector<1x256xf32>
    %261 = vector.broadcast %260 : vector<1x256xf32> to vector<8x256xf32>
    %262 = arith.mulf %259, %261 : vector<8x256xf32>
    %cst_189 = arith.constant 0.000000e+00 : f32
    %263 = vector.broadcast %cst_189 : f32 to vector<8x256xf32>
    %264 = arith.cmpf ogt, %262, %263 : vector<8x256xf32>
    %cst_190 = arith.constant 0.000000e+00 : f32
    %265 = vector.broadcast %cst_190 : f32 to vector<8x256xf32>
    %266 = arith.minimumf %262, %265 : vector<8x256xf32>
    %267 = math.exp %266 : vector<8x256xf32>
    %cst_191 = arith.constant 1.000000e+00 : f32
    %268 = vector.broadcast %cst_191 : f32 to vector<8x256xf32>
    %269 = arith.subf %267, %268 : vector<8x256xf32>
    %270 = arith.select %264, %262, %269 : vector<8x256xi1>, vector<8x256xf32>
    %c0_192 = arith.constant 0 : index
    %c0_193 = arith.constant 0 : index
    %c0_194 = arith.constant 0 : index
    %271 = vector.load %arg8[%c0_192, %c0_193, %c0_194] : memref<1x8x256xf32, #tpu.memory_space<vmem>>, vector<1x8x256xf32>
    %272 = vector.shape_cast %271 : vector<1x8x256xf32> to vector<8x256xf32>
    %273 = vector.shape_cast %270 : vector<8x256xf32> to vector<1x8x256xf32>
    tpu.vector_store %arg8[%c0_192, %c0_193, %c0_194], %273 {strides = array<i32>} : memref<1x8x256xf32, #tpu.memory_space<vmem>>, vector<1x8x256xf32>,
    return
  }
  func.func @transform_0(%arg0: i32) -> (i32, i32, i32, i32) {
    %c0_i32 = arith.constant 0 : i32
    %c0_i32_0 = arith.constant 0 : i32
    %c0_i32_1 = arith.constant 0 : i32
    %c0_i32_2 = arith.constant 0 : i32
    return %arg0, %c0_i32, %c0_i32_0, %c0_i32_1 : i32, i32, i32, i32
  }
  func.func @transform_1(%arg0: i32) -> (i32, i32, i32) {
    %c0_i32 = arith.constant 0 : i32
    %c0_i32_0 = arith.constant 0 : i32
    %c0_i32_1 = arith.constant 0 : i32
    %c0_i32_2 = arith.constant 0 : i32
    return %c0_i32, %c0_i32_0, %c0_i32_1 : i32, i32, i32
  }
  func.func @transform_2(%arg0: i32) -> (i32, i32, i32) {
    %c0_i32 = arith.constant 0 : i32
    %c0_i32_0 = arith.constant 0 : i32
    %c0_i32_1 = arith.constant 0 : i32
    %c0_i32_2 = arith.constant 0 : i32
    return %c0_i32, %c0_i32_0, %c0_i32_1 : i32, i32, i32
  }
  func.func @transform_3(%arg0: i32) -> (i32, i32) {
    %c0_i32 = arith.constant 0 : i32
    %c0_i32_0 = arith.constant 0 : i32
    %c0_i32_1 = arith.constant 0 : i32
    return %c0_i32, %c0_i32_0 : i32, i32
  }
  func.func @transform_4(%arg0: i32) -> (i32, i32) {
    %c0_i32 = arith.constant 0 : i32
    %c0_i32_0 = arith.constant 0 : i32
    %c0_i32_1 = arith.constant 0 : i32
    return %c0_i32, %c0_i32_0 : i32, i32
  }
  func.func @transform_5(%arg0: i32) -> (i32, i32) {
    %c0_i32 = arith.constant 0 : i32
    %c0_i32_0 = arith.constant 0 : i32
    %c0_i32_1 = arith.constant 0 : i32
    return %c0_i32, %c0_i32_0 : i32, i32
  }
  func.func @transform_6(%arg0: i32) -> (i32, i32) {
    %c0_i32 = arith.constant 0 : i32
    %c0_i32_0 = arith.constant 0 : i32
    %c0_i32_1 = arith.constant 0 : i32
    return %c0_i32, %c0_i32_0 : i32, i32
  }
  func.func @transform_7(%arg0: i32) -> (i32, i32, i32) {
    %c0_i32 = arith.constant 0 : i32
    %c0_i32_0 = arith.constant 0 : i32
    %c0_i32_1 = arith.constant 0 : i32
    return %arg0, %c0_i32, %c0_i32_0 : i32, i32, i32
  }
}

</mosaic_0001>

<bundles_post_ra>
// kernel: ginka_encoder.1
= control target key start
LH: loop header
LB: loop body
LE: loop exit
PB: predicated region body
PF: predicated region fallthrough
CT: control target
= control target key end

     0   :  { %s8689_s24 = smov 0   ;;  %s11860_s0 = inlined_call_operand.vmem [shape: bf16[2,16,16,4], index: 0, kind: input, shape index: {}]   ;;  %s11861_s1 = inlined_call_operand.vmem [shape: bf16[9,4,32], index: 1, kind: input, shape index: {}]   ;;  %s11862_s2 = inlined_call_operand.vmem [shape: bf16[9,32,32], index: 2, kind: input, shape index: {}]   ;;  %s11863_s3 = inlined_call_operand.vmem [shape: f32[32,8], index: 3, kind: input, shape index: {}]   ;;  %s11864_s4 = inlined_call_operand.vmem [shape: f32[1,8], index: 4, kind: input, shape index: {}]   ;;  %s11865_s5 = inlined_call_operand.vmem [shape: f32[8,32], index: 5, kind: input, shape index: {}]   ;;  %s11866_s6 = inlined_call_operand.vmem [shape: f32[1,32], index: 6, kind: input, shape index: {}]   ;;  %s11867_s7 = inlined_call_operand.vmem [shape: f32[2,8,256], index: 7, kind: output, shape index: {}]  }
   0x1 LB: > { %s7077_s25 = sadd.s32 4294967295, %s8642_s24   ;;  %p7081_p0 = scmp.ge.s32.totalorder %s8642_s24, 1  ;;  %s8642_s24 = sphi %s8689_s24, %s17_s24  }
   0x2   : > { %p237_p1 = scmp.lt.s32.totalorder %s8642_s24, 3 }
   0x4   : > { %p238_p2 = pnand %p7081_p0, %p237_p1 }
   0x6   : > { %241 = sbr.rel (%p238_p2) target bundleno = 1852 (0x73c), region = 48 }
   0xb   : > { %v7086_v0 = vld [vmem:[%s11861_s1 + $0x2] sm:$0x3]  ;;  %vm603_vm0 = vcmask 1041408   ;;  %p269_p3 = scmp.lt.s32.totalorder %s7077_s25, 1  ;;  %v8705_v2 = vld [vmem:[%s11861_s1 + $0x4] sm:$0x3] }
   0xc   : > { %8520 = vmatprep.subr.msk.bf16.mxu0 %vm603_vm0, %v7086_v0  ;;  %v605_v1 = vsel %vm603_vm0, %v7086_v0, 0  ;;  %v504_v3 = vld [vmem:[%s11861_s1] sm:$0x3]  ;;  %v8717_v5 = vld [vmem:[%s11861_s1 + $0x6] sm:$0x3]  ;;  %vm345_vm1 = vcmask 31744  }
   0xd   : > { %7875 = vmatpush3.bf16.msra.mxu0 %v605_v1  ;;  %s12025_s25 = smov (!%p269_p3, %s7077_s25), 1  ;;  %8521 = vmatprep.subr.msk.bf16.mxu1 %vm603_vm0, %v504_v3  ;;  %v817_v4 = vsel %vm603_vm0, %v504_v3, 0  ;;  %vm401_vm2 = vcmask 24576   ;;  %v1079_v62 = vsel %vm603_vm0, %v8705_v2, 0  ;;  %v8792_v3 = vld [vmem:[%s11861_s1 + $0x8] sm:$0x3] }
   0xe   : > { %8522 = vmatprep.subr.msk.bf16.mxu0 %vm603_vm0, %v8705_v2  ;;  %7909 = vmatpush3.bf16.msra.mxu1 %v817_v4  ;;  %s7471_s11 = sshll.u32 %s12025_s25, 7  ;;  %vm3039_vm3 = vcmask 261120   ;;  %vm3529_vm5 = vcmask 253952   ;;  %s8646_s29 = smov 64  }
   0xf   : > { %8523 = vmatprep.subr.msk.bf16.mxu1 %vm603_vm0, %v8717_v5  ;;  %s8727_s14 = scalar_lea.vmem %s11860_s0, %s7471_s11  ;;  %s8647_s9 = smov 32  }
  0x10   : > { %v7474_v6 = vld [vmem:[%s8727_s14] sm:$0xff]   ;;  %v7537_v7 = vld [vmem:[%s8727_s14 + $0x8] sm:$0xff]   ;;  %v7538_v8 = vld [vmem:[%s8727_s14 + $0x10] sm:$0xff]   ;;  %s8648_s10 = smov 96   ;;  %s7472_s15 = sshll.u32 %s12025_s25, 4 }
  0x11   : > { %v7475_v9 = vunpack.c.l.bf16 %v7474_v6  ;;  %v7476_v10 = vunpack.c.h.bf16 %v7474_v6  ;;  %v7479_v11 = vunpack.c.l.bf16 %v7537_v7  ;;  %v7480_v12 = vunpack.c.h.bf16 %v7537_v7  ;;  %v7539_v13 = vld [vmem:[%s8727_s14 + $0x18] sm:$0xff]   ;;  %v7540_v14 = vld [vmem:[%s8727_s14 + $0x20] sm:$0xff]   ;;  %v7541_v15 = vld [vmem:[%s8727_s14 + $0x28] sm:$0xff]   ;;  %s278_s18 = scalar_lea.vmem %s11867_s7, %s7472_s15 }
  0x12   : > { %v7483_v16 = vunpack.c.l.bf16 %v7538_v8  ;;  %v7484_v17 = vunpack.c.h.bf16 %v7538_v8  ;;  %v7487_v18 = vunpack.c.l.bf16 %v7539_v13  ;;  %v7488_v19 = vunpack.c.h.bf16 %v7539_v13  ;;  %v7542_v20 = vld [vmem:[%s8727_s14 + $0x30] sm:$0xff]   ;;  %v7543_v21 = vld [vmem:[%s8727_s14 + $0x38] sm:$0xff]   ;;  %v7544_v22 = vld [vmem:[%s8727_s14 + $0x40] sm:$0xff]  }
  0x13   : > { %346 = vst.msk [vmem:[#allocation2 + $0x19] sm:$0xff] %vm345_vm1, %v7475_v9  ;;  %347 = vst.msk [vmem:[#allocation2 + $0x21] sm:$0xff] %vm345_vm1, %v7476_v10  ;;  %v7491_v23 = vunpack.c.l.bf16 %v7540_v14  ;;  %v7492_v24 = vunpack.c.h.bf16 %v7540_v14  ;;  %v7495_v25 = vunpack.c.l.bf16 %v7541_v15  ;;  %v7496_v26 = vunpack.c.h.bf16 %v7541_v15  ;;  %v7545_v27 = vld [vmem:[%s8727_s14 + $0x48] sm:$0xff]   ;;  %v7546_v28 = vld [vmem:[%s8727_s14 + $0x50] sm:$0xff]  }
  0x14   : > { %378 = vst.msk [vmem:[#allocation2 + $0x1] sm:$0xff] %vm345_vm1, %v7475_v9  ;;  %379 = vst.msk [vmem:[#allocation2 + $0x9] sm:$0xff] %vm345_vm1, %v7476_v10  ;;  %v7547_v29 = vld [vmem:[%s8727_s14 + $0x58] sm:$0xff]   ;;  %v7499_v30 = vunpack.c.l.bf16 %v7542_v20  ;;  %v7500_v31 = vunpack.c.h.bf16 %v7542_v20  ;;  %v7503_v32 = vunpack.c.l.bf16 %v7543_v21  ;;  %v7504_v33 = vunpack.c.h.bf16 %v7543_v21  ;;  %v7548_v34 = vld [vmem:[%s8727_s14 + $0x60] sm:$0xff]  }
  0x15   : > { %348 = vst.msk [vmem:[#allocation2 + $0x31] sm:$0xff] %vm345_vm1, %v7479_v11  ;;  %349 = vst.msk [vmem:[#allocation2 + $0x39] sm:$0xff] %vm345_vm1, %v7480_v12  ;;  %v7549_v35 = vld [vmem:[%s8727_s14 + $0x68] sm:$0xff]   ;;  %v7550_v36 = vld [vmem:[%s8727_s14 + $0x70] sm:$0xff]   ;;  %v7507_v37 = vunpack.c.l.bf16 %v7544_v22  ;;  %v7508_v38 = vunpack.c.h.bf16 %v7544_v22  ;;  %v7511_v39 = vunpack.c.l.bf16 %v7545_v27  ;;  %v7512_v40 = vunpack.c.h.bf16 %v7545_v27 }
  0x16   : > { %350 = vst.msk [vmem:[#allocation2 + $0x49] sm:$0xff] %vm345_vm1, %v7483_v16  ;;  %351 = vst.msk [vmem:[#allocation2 + $0x51] sm:$0xff] %vm345_vm1, %v7484_v17  ;;  %v7551_v41 = vld [vmem:[%s8727_s14 + $0x78] sm:$0xff]   ;;  %v7515_v42 = vunpack.c.l.bf16 %v7546_v28  ;;  %v7516_v43 = vunpack.c.h.bf16 %v7546_v28  ;;  %v7519_v44 = vunpack.c.l.bf16 %v7547_v29  ;;  %v7520_v45 = vunpack.c.h.bf16 %v7547_v29 }
  0x17   : > { %352 = vst.msk [vmem:[#allocation2 + $0x61] sm:$0xff] %vm345_vm1, %v7487_v18  ;;  %353 = vst.msk [vmem:[#allocation2 + $0x69] sm:$0xff] %vm345_vm1, %v7488_v19  ;;  %v7523_v46 = vunpack.c.l.bf16 %v7548_v34  ;;  %v7524_v47 = vunpack.c.h.bf16 %v7548_v34  ;;  %v7527_v48 = vunpack.c.l.bf16 %v7549_v35  ;;  %v7528_v49 = vunpack.c.h.bf16 %v7549_v35 }
  0x18   : > { %354 = vst.msk [vmem:[#allocation2 + $0x79] sm:$0xff] %vm345_vm1, %v7491_v23  ;;  %355 = vst.msk [vmem:[#allocation2 + $0x81] sm:$0xff] %vm345_vm1, %v7492_v24  ;;  %v7531_v50 = vunpack.c.l.bf16 %v7550_v36  ;;  %v7532_v51 = vunpack.c.h.bf16 %v7550_v36  ;;  %v7535_v52 = vunpack.c.l.bf16 %v7551_v41  ;;  %v7536_v53 = vunpack.c.h.bf16 %v7551_v41 }
  0x19   : > { %356 = vst.msk [vmem:[#allocation2 + $0x91] sm:$0xff] %vm345_vm1, %v7495_v25  ;;  %357 = vst.msk [vmem:[#allocation2 + $0x99] sm:$0xff] %vm345_vm1, %v7496_v26  ;;  %v1373_v24 = vsel %vm603_vm0, %v8717_v5, 0  ;;  %v8819_v25 = vld [vmem:[%s11861_s1 + $0xa] sm:$0x3] }
  0x1a   : > { %358 = vst.msk [vmem:[#allocation2 + $0xa9] sm:$0xff] %vm345_vm1, %v7499_v30  ;;  %359 = vst.msk [vmem:[#allocation2 + $0xb1] sm:$0xff] %vm345_vm1, %v7500_v31  ;;  %v507_v56 = vld [vmem:[#allocation2 + $0x19] sm:$0xff]  ;;  %v508_v58 = vld [vmem:[#allocation2 + $0x21] sm:$0xff] }
  0x1b   : > { %360 = vst.msk [vmem:[#allocation2 + $0xc1] sm:$0xff] %vm345_vm1, %v7503_v32  ;;  %361 = vst.msk [vmem:[#allocation2 + $0xc9] sm:$0xff] %vm345_vm1, %v7504_v33  ;;  %v505_v54 = vld [vmem:[#allocation2 + $0x1] sm:$0xff]  ;;  %v506_v55 = vld [vmem:[#allocation2 + $0x9] sm:$0xff]  ;;  %v8781_v61 = vpack.c.bf16 %v508_v58, %v507_v56 }
  0x1c   : > { %362 = vst.msk [vmem:[#allocation2 + $0xd9] sm:$0xff] %vm345_vm1, %v7507_v37  ;;  %363 = vst.msk [vmem:[#allocation2 + $0xe1] sm:$0xff] %vm345_vm1, %v7508_v38  ;;  %v537_v57 = vpack.c.bf16 %v506_v55, %v505_v54  ;;  %v509_v59 = vld [vmem:[#allocation2 + $0x31] sm:$0xff]  ;;  %v510_v60 = vld [vmem:[#allocation2 + $0x39] sm:$0xff] }
  0x1d   : > { %364 = vst.msk [vmem:[#allocation2 + $0xf1] sm:$0xff] %vm345_vm1, %v7511_v39  ;;  %365 = vst.msk [vmem:[#allocation2 + $0xf9] sm:$0xff] %vm345_vm1, %v7512_v40  ;;  %v8785_v63 = vpack.c.bf16 %v510_v60, %v509_v59  ;;  %v383_v0 = vld [vmem:[#allocation2 + $0x1] sm:$0x1]  ;;  %v384_v1 = vld [vmem:[#allocation2 + $0x19] sm:$0x1] }
  0x1e   : > { %366 = vst.msk [vmem:[#allocation2 + $0x109] sm:$0xff] %vm345_vm1, %v7515_v42  ;;  %367 = vst.msk [vmem:[#allocation2 + $0x111] sm:$0xff] %vm345_vm1, %v7516_v43  ;;  %7876 = vmatprep.mubr.msk.bf16.mxu0 %vm345_vm1, %v537_v57  ;;  %v385_v4 = vld [vmem:[#allocation2 + $0x31] sm:$0x1]  ;;  %v511_v2 = vld [vmem:[#allocation2 + $0x49] sm:$0xff] }
  0x1f   : > { %368 = vst.msk [vmem:[#allocation2 + $0x121] sm:$0xff] %vm345_vm1, %v7519_v44  ;;  %369 = vst.msk [vmem:[#allocation2 + $0x129] sm:$0xff] %vm345_vm1, %v7520_v45  ;;  %7877 = vmatmul.mubr.msk.bf16.vlgmr.msra.gmra.mxu0 %vm345_vm1, %v8781_v61  ;;  %v512_v6 = vld [vmem:[#allocation2 + $0x51] sm:$0xff]  ;;  %v513_v7 = vld [vmem:[#allocation2 + $0x61] sm:$0xff] }
  0x20   : > { %370 = vst.msk [vmem:[#allocation2 + $0x139] sm:$0xff] %vm345_vm1, %v7523_v46  ;;  %371 = vst.msk [vmem:[#allocation2 + $0x141] sm:$0xff] %vm345_vm1, %v7524_v47  ;;  %7943 = vmatpush3.bf16.msra.mxu0 %v1079_v62  ;;  %7880 = vmatprep.mubr.msk.bf16.mxu0 %vm345_vm1, %v8785_v63  ;;  %v514_v8 = vld [vmem:[#allocation2 + $0x69] sm:$0xff]  ;;  %v387_v10 = vld [vmem:[#allocation2 + $0x61] sm:$0x1]  ;;  %v8803_v12 = vpack.c.bf16 %v512_v6, %v511_v2 }
  0x21   : > { %372 = vst.msk [vmem:[#allocation2 + $0x151] sm:$0xff] %vm345_vm1, %v7527_v48  ;;  %373 = vst.msk [vmem:[#allocation2 + $0x159] sm:$0xff] %vm345_vm1, %v7528_v49  ;;  %v386_v9 = vld [vmem:[#allocation2 + $0x49] sm:$0x1]  ;;  %8524 = vmatprep.subr.msk.bf16.mxu0 %vm603_vm0, %v8792_v3  ;;  %v388_v13 = vld [vmem:[#allocation2 + $0x79] sm:$0x1]  ;;  %v8806_v15 = vpack.c.bf16 %v514_v8, %v513_v7 }
  0x22   : > { %374 = vst.msk [vmem:[#allocation2 + $0x169] sm:$0xff] %vm345_vm1, %v7531_v50  ;;  %375 = vst.msk [vmem:[#allocation2 + $0x171] sm:$0xff] %vm345_vm1, %v7532_v51  ;;  %v457_v11 = vld [vmem:[#allocation2 + $0x8] sm:$0xff]  ;;  %v459_v14 = vld [vmem:[#allocation2 + $0x20] sm:$0xff] }
  0x23   : > { %376 = vst.msk [vmem:[#allocation2 + $0x181] sm:$0xff] %vm345_vm1, %v7535_v52  ;;  %377 = vst.msk [vmem:[#allocation2 + $0x189] sm:$0xff] %vm345_vm1, %v7536_v53  ;;  %v461_v17 = vld [vmem:[#allocation2 + $0x38] sm:$0xff]  ;;  %v389_v18 = vld [vmem:[#allocation2 + $0x91] sm:$0x1] }
  0x24   : > { %381 = vst.msk [vmem:[#allocation2 + $0x199] sm:$0xff] %vm345_vm1, %v7535_v52  ;;  %382 = vst.msk [vmem:[#allocation2 + $0x1a1] sm:$0xff] %vm345_vm1, %v7536_v53  ;;  %v390_v23 = vld [vmem:[#allocation2 + $0xa9] sm:$0x1]  ;;  %v515_v27 = vld [vmem:[#allocation2 + $0x79] sm:$0xff] }
  0x25   : > { %402 = vst.msk [vmem:[#allocation2] sm:$0x1] %vm401_vm2, %v383_v0  ;;  %403 = vst.msk [vmem:[#allocation2 + $0x18] sm:$0x1] %vm401_vm2, %v384_v1  ;;  %v516_v28 = vld [vmem:[#allocation2 + $0x81] sm:$0xff]  ;;  %v517_v5 = vld [vmem:[#allocation2 + $0x91] sm:$0xff] }
  0x26   : > { %404 = vst.msk [vmem:[#allocation2 + $0x30] sm:$0x1] %vm401_vm2, %v385_v4  ;;  %405 = vst.msk [vmem:[#allocation2 + $0x48] sm:$0x1] %vm401_vm2, %v386_v9  ;;  %v391_v29 = vld [vmem:[#allocation2 + $0xc1] sm:$0x1]  ;;  %v8832_v34 = vpack.c.bf16 %v516_v28, %v515_v27 }
  0x27   : > { %406 = vst.msk [vmem:[#allocation2 + $0x60] sm:$0x1] %vm401_vm2, %v387_v10  ;;  %407 = vst.msk [vmem:[#allocation2 + $0x78] sm:$0x1] %vm401_vm2, %v388_v13  ;;  %7881 = vmatmul.mubr.msk.bf16.gmra.mxu0 %vm345_vm1, %v8803_v12  ;;  %v518_v30 = vld [vmem:[#allocation2 + $0x99] sm:$0xff]  ;;  %v463_v32 = vld [vmem:[#allocation2 + $0x50] sm:$0xff] }
  0x28   : > { %408 = vst.msk [vmem:[#allocation2 + $0x90] sm:$0x1] %vm401_vm2, %v389_v18  ;;  %7884 = vmatprep.mubr.msk.bf16.mxu0 %vm345_vm1, %v8806_v15  ;;  %409 = vst.msk [vmem:[#allocation2 + $0xa8] sm:$0x1] %vm401_vm2, %v390_v23  ;;  %v392_v33 = vld [vmem:[#allocation2 + $0xd9] sm:$0x1]  ;;  %v8837_v37 = vpack.c.bf16 %v518_v30, %v517_v5 }
  0x29   : > { %410 = vst.msk [vmem:[#allocation2 + $0xc0] sm:$0x1] %vm401_vm2, %v391_v29  ;;  %v465_v36 = vld [vmem:[#allocation2 + $0x68] sm:$0xff]  ;;  %411 = vst.msk [vmem:[#allocation2 + $0xd8] sm:$0x1] %vm401_vm2, %v392_v33  ;;  %v520_v44 = vld [vmem:[#allocation2 + $0xb1] sm:$0xff] }
  0x2a   : > { %v393_v38 = vld [vmem:[#allocation2 + $0xf1] sm:$0x1]  ;;  %v394_v41 = vld [vmem:[#allocation2 + $0x109] sm:$0x1]  ;;  %v395_v42 = vld [vmem:[#allocation2 + $0x121] sm:$0x1] }
  0x2b   : > { %412 = vst.msk [vmem:[#allocation2 + $0xf0] sm:$0x1] %vm401_vm2, %v393_v38  ;;  %413 = vst.msk [vmem:[#allocation2 + $0x108] sm:$0x1] %vm401_vm2, %v394_v41  ;;  %v519_v43 = vld [vmem:[#allocation2 + $0xa9] sm:$0xff]  ;;  %v467_v45 = vld [vmem:[#allocation2 + $0x80] sm:$0xff] }
  0x2c   : > { %v456_v16 = vld [vmem:[#allocation2] sm:$0xff]  ;;  %v458_v20 = vld [vmem:[#allocation2 + $0x18] sm:$0xff]  ;;  %414 = vst.msk [vmem:[#allocation2 + $0x120] sm:$0x1] %vm401_vm2, %v395_v42  ;;  %v522_v47 = vld [vmem:[#allocation2 + $0xc9] sm:$0xff]  ;;  %v8855_v52 = vpack.c.bf16 %v520_v44, %v519_v43 }
  0x2d   : > { %v488_v19 = vpack.c.bf16 %v457_v11, %v456_v16  ;;  %v8812_v21 = vpack.c.bf16 %v459_v14, %v458_v20  ;;  %v460_v22 = vld [vmem:[#allocation2 + $0x30] sm:$0xff]  ;;  %v462_v31 = vld [vmem:[#allocation2 + $0x48] sm:$0xff]  ;;  %v396_v48 = vld [vmem:[#allocation2 + $0x139] sm:$0x1] }
  0x2e   : > { %v8824_v26 = vpack.c.bf16 %v461_v17, %v460_v22  ;;  %v464_v35 = vld [vmem:[#allocation2 + $0x60] sm:$0xff]  ;;  %v8839_v39 = vpack.c.bf16 %v463_v32, %v462_v31  ;;  %v466_v49 = vld [vmem:[#allocation2 + $0x78] sm:$0xff]  ;;  %415 = vst.msk [vmem:[#allocation2 + $0x138] sm:$0x1] %vm401_vm2, %v396_v48  ;;  %v397_v51 = vld [vmem:[#allocation2 + $0x151] sm:$0x1] }
  0x2f   : > { %7910 = vmatprep.mubr.msk.bf16.mxu1 %vm345_vm1, %v488_v19  ;;  %v8842_v40 = vpack.c.bf16 %v465_v36, %v464_v35  ;;  %7885 = vmatmul.mubr.msk.bf16.gmra.mxu0 %vm345_vm1, %v8832_v34  ;;  %v521_v46 = vld [vmem:[#allocation2 + $0xc1] sm:$0xff]  ;;  %v469_v50 = vld [vmem:[#allocation2 + $0x98] sm:$0xff]  ;;  %v468_v53 = vld [vmem:[#allocation2 + $0x90] sm:$0xff]  ;;  %416 = vst.msk [vmem:[#allocation2 + $0x150] sm:$0x1] %vm401_vm2, %v397_v51  ;;  %v8862_v58 = vpack.c.bf16 %v467_v45, %v466_v49 }
  0x30   : > { %7911 = vmatmul.mubr.msk.bf16.vlgmr.msra.gmra.mxu1 %vm345_vm1, %v8812_v21  ;;  %7888 = vmatprep.mubr.msk.bf16.mxu0 %vm345_vm1, %v8837_v37  ;;  %v420_v54 = vld [vmem:[#allocation2 + $0x10] sm:$0x1]  ;;  %v398_v55 = vld [vmem:[#allocation2 + $0x169] sm:$0x1]  ;;  %v8858_v56 = vpack.c.bf16 %v522_v47, %v521_v46  ;;  %v421_v57 = vld [vmem:[#allocation2 + $0x28] sm:$0x1]  ;;  %v8865_v60 = vpack.c.bf16 %v469_v50, %v468_v53 }
  0x31   : > { %7914 = vmatprep.mubr.msk.bf16.mxu1 %vm345_vm1, %v8824_v26  ;;  %7977 = vmatpush3.bf16.msra.mxu1 %v1373_v24  ;;  %438 = vst.msk [vmem:[#allocation2 + $0x11] sm:$0x1] %vm401_vm2, %v420_v54  ;;  %417 = vst.msk [vmem:[#allocation2 + $0x168] sm:$0x1] %vm401_vm2, %v398_v55  ;;  %v422_v59 = vld [vmem:[#allocation2 + $0x40] sm:$0x1] }
  0x32   : > { %8525 = vmatprep.subr.msk.bf16.mxu1 %vm603_vm0, %v8819_v25  ;;  %439 = vst.msk [vmem:[#allocation2 + $0x29] sm:$0x1] %vm401_vm2, %v421_v57  ;;  %440 = vst.msk [vmem:[#allocation2 + $0x41] sm:$0x1] %vm401_vm2, %v422_v59  ;;  %v423_v62 = vld [vmem:[#allocation2 + $0x58] sm:$0x1] }
  0x33   : > { %v523_v0 = vld [vmem:[#allocation2 + $0xd9] sm:$0xff]  ;;  %441 = vst.msk [vmem:[#allocation2 + $0x59] sm:$0x1] %vm401_vm2, %v423_v62  ;;  %v424_v1 = vld [vmem:[#allocation2 + $0x70] sm:$0x1]  ;;  %v524_v4 = vld [vmem:[#allocation2 + $0xe1] sm:$0xff] }
  0x34   : > { %442 = vst.msk [vmem:[#allocation2 + $0x71] sm:$0x1] %vm401_vm2, %v424_v1  ;;  %v425_v2 = vld [vmem:[#allocation2 + $0x88] sm:$0x1]  ;;  %v426_v6 = vld [vmem:[#allocation2 + $0xa0] sm:$0x1]  ;;  %v8881_v14 = vpack.c.bf16 %v524_v4, %v523_v0 }
  0x35   : > { %v525_v7 = vld [vmem:[#allocation2 + $0xf1] sm:$0xff]  ;;  %v526_v8 = vld [vmem:[#allocation2 + $0xf9] sm:$0xff]  ;;  %443 = vst.msk [vmem:[#allocation2 + $0x89] sm:$0x1] %vm401_vm2, %v425_v2  ;;  %444 = vst.msk [vmem:[#allocation2 + $0xa1] sm:$0x1] %vm401_vm2, %v426_v6 }
  0x36   : > { %v427_v9 = vld [vmem:[#allocation2 + $0xb8] sm:$0x1]  ;;  %v470_v10 = vld [vmem:[#allocation2 + $0xa8] sm:$0xff]  ;;  %v471_v11 = vld [vmem:[#allocation2 + $0xb0] sm:$0xff]  ;;  %v8884_v18 = vpack.c.bf16 %v526_v8, %v525_v7 }
  0x37   : > { %7889 = vmatmul.mubr.msk.bf16.gmra.mxu0 %vm345_vm1, %v8855_v52  ;;  %445 = vst.msk [vmem:[#allocation2 + $0xb9] sm:$0x1] %vm401_vm2, %v427_v9  ;;  %v428_v13 = vld [vmem:[#allocation2 + $0xd0] sm:$0x1]  ;;  %v472_v16 = vld [vmem:[#allocation2 + $0xc0] sm:$0xff]  ;;  %v473_v17 = vld [vmem:[#allocation2 + $0xc8] sm:$0xff]  ;;  %v8886_v20 = vpack.c.bf16 %v471_v11, %v470_v10 }
  0x38   : > { %7915 = vmatmul.mubr.msk.bf16.gmra.mxu1 %vm345_vm1, %v8839_v39  ;;  %7892 = vmatprep.mubr.msk.bf16.mxu0 %vm345_vm1, %v8858_v56  ;;  %446 = vst.msk [vmem:[#allocation2 + $0xd1] sm:$0x1] %vm401_vm2, %v428_v13  ;;  %v429_v19 = vld [vmem:[#allocation2 + $0xe8] sm:$0x1]  ;;  %v430_v22 = vld [vmem:[#allocation2 + $0x100] sm:$0x1]  ;;  %v8889_v23 = vpack.c.bf16 %v473_v17, %v472_v16 }
  0x39   : > { %7918 = vmatprep.mubr.msk.bf16.mxu1 %vm345_vm1, %v8842_v40  ;;  %447 = vst.msk [vmem:[#allocation2 + $0xe9] sm:$0x1] %vm401_vm2, %v429_v19  ;;  %448 = vst.msk [vmem:[#allocation2 + $0x101] sm:$0x1] %vm401_vm2, %v430_v22  ;;  %v431_v24 = vld [vmem:[#allocation2 + $0x118] sm:$0x1] }
  0x3a   : > { %449 = vst.msk [vmem:[#allocation2 + $0x119] sm:$0x1] %vm401_vm2, %v431_v24  ;;  %v432_v27 = vld [vmem:[#allocation2 + $0x130] sm:$0x1]  ;;  %v528_v29 = vld [vmem:[#allocation2 + $0x111] sm:$0xff]  ;;  %v529_v30 = vld [vmem:[#allocation2 + $0x121] sm:$0xff] }
  0x3b   : > { %v527_v28 = vld [vmem:[#allocation2 + $0x109] sm:$0xff]  ;;  %450 = vst.msk [vmem:[#allocation2 + $0x131] sm:$0x1] %vm401_vm2, %v432_v27  ;;  %v433_v5 = vld [vmem:[#allocation2 + $0x148] sm:$0x1]  ;;  %v474_v33 = vld [vmem:[#allocation2 + $0xd8] sm:$0xff] }
  0x3c   : > { %v530_v31 = vld [vmem:[#allocation2 + $0x129] sm:$0xff]  ;;  %451 = vst.msk [vmem:[#allocation2 + $0x149] sm:$0x1] %vm401_vm2, %v433_v5  ;;  %v434_v32 = vld [vmem:[#allocation2 + $0x160] sm:$0x1]  ;;  %v8904_v38 = vpack.c.bf16 %v528_v29, %v527_v28  ;;  %v477_v42 = vld [vmem:[#allocation2 + $0xf8] sm:$0xff] }
  0x3d   : > { %v475_v35 = vld [vmem:[#allocation2 + $0xe0] sm:$0xff]  ;;  %452 = vst.msk [vmem:[#allocation2 + $0x161] sm:$0x1] %vm401_vm2, %v434_v32  ;;  %v435_v36 = vld [vmem:[#allocation2 + $0x178] sm:$0x1]  ;;  %v476_v41 = vld [vmem:[#allocation2 + $0xf0] sm:$0xff]  ;;  %v8907_v44 = vpack.c.bf16 %v530_v31, %v529_v30 }
  0x3e   : > { %453 = vst.msk [vmem:[#allocation2 + $0x179] sm:$0x1] %vm401_vm2, %v435_v36  ;;  %v399_v43 = vld [vmem:[#allocation2 + $0x181] sm:$0x1]  ;;  %v8910_v45 = vpack.c.bf16 %v475_v35, %v474_v33  ;;  %v8912_v46 = vpack.c.bf16 %v477_v42, %v476_v41  ;;  %v531_v47 = vld [vmem:[#allocation2 + $0x139] sm:$0xff]  ;;  %v533_v49 = vld [vmem:[#allocation2 + $0x151] sm:$0xff] }
  0x3f   : > { %7893 = vmatmul.mubr.msk.bf16.gmra.mxu0 %vm345_vm1, %v8881_v14  ;;  %418 = vst.msk [vmem:[#allocation2 + $0x180] sm:$0x1] %vm401_vm2, %v399_v43  ;;  %v532_v48 = vld [vmem:[#allocation2 + $0x141] sm:$0xff]  ;;  %v479_v50 = vld [vmem:[#allocation2 + $0x110] sm:$0xff]  ;;  %v534_v51 = vld [vmem:[#allocation2 + $0x159] sm:$0xff]  ;;  %v1667_v33 = vsel %vm603_vm0, %v8792_v3, 0 }
  0x40   : > { %7919 = vmatmul.mubr.msk.bf16.gmra.mxu1 %vm345_vm1, %v8862_v58  ;;  %7896 = vmatprep.mubr.msk.bf16.mxu0 %vm345_vm1, %v8884_v18  ;;  %v481_v53 = vld [vmem:[#allocation2 + $0x128] sm:$0xff]  ;;  %v8922_v55 = vpack.c.bf16 %v532_v48, %v531_v47  ;;  %v480_v57 = vld [vmem:[#allocation2 + $0x120] sm:$0xff]  ;;  %v8924_v59 = vpack.c.bf16 %v534_v51, %v533_v49  ;;  %v536_v4 = vld [vmem:[#allocation2 + $0x171] sm:$0xff]  ;;  %v1961_v48 = vsel %vm603_vm0, %v8819_v25, 0 }
  0x41   : > { %7922 = vmatprep.mubr.msk.bf16.mxu1 %vm345_vm1, %v8865_v60  ;;  %v478_v54 = vld [vmem:[#allocation2 + $0x108] sm:$0xff]  ;;  %v8928_v0 = vpack.c.bf16 %v481_v53, %v480_v57  ;;  %v482_v7 = vld [vmem:[#allocation2 + $0x138] sm:$0xff]  ;;  %v483_v8 = vld [vmem:[#allocation2 + $0x140] sm:$0xff] }
  0x42   : > { %v8926_v62 = vpack.c.bf16 %v479_v50, %v478_v54  ;;  %v535_v1 = vld [vmem:[#allocation2 + $0x169] sm:$0xff]  ;;  %v485_v11 = vld [vmem:[#allocation2 + $0x158] sm:$0xff]  ;;  %v8940_v16 = vpack.c.bf16 %v483_v8, %v482_v7 }
  0x43   : > { %v980_v2 = vld [vmem:[#allocation2 + $0x2] sm:$0xff]  ;;  %v981_v6 = vld [vmem:[#allocation2 + $0xa] sm:$0xff]  ;;  %v8938_v9 = vpack.c.bf16 %v536_v4, %v535_v1  ;;  %v982_v22 = vld [vmem:[#allocation2 + $0x1a] sm:$0xff] }
  0x44   : > { %v484_v10 = vld [vmem:[#allocation2 + $0x150] sm:$0xff]  ;;  %v1012_v13 = vpack.c.bf16 %v981_v6, %v980_v2  ;;  %v983_v24 = vld [vmem:[#allocation2 + $0x22] sm:$0xff]  ;;  %v985_v28 = vld [vmem:[#allocation2 + $0x3a] sm:$0xff] }
  0x45   : > { %v8942_v17 = vpack.c.bf16 %v485_v11, %v484_v10  ;;  %v436_v19 = vld [vmem:[#allocation2 + $0x190] sm:$0x1]  ;;  %v984_v27 = vld [vmem:[#allocation2 + $0x32] sm:$0xff]  ;;  %v486_v29 = vld [vmem:[#allocation2 + $0x168] sm:$0xff]  ;;  %v8952_v30 = vpack.c.bf16 %v983_v24, %v982_v22 }
  0x46   : > { %454 = vst.msk [vmem:[#allocation2 + $0x191] sm:$0x1] %vm401_vm2, %v436_v19  ;;  %v487_v5 = vld [vmem:[#allocation2 + $0x170] sm:$0xff]  ;;  %v8954_v31 = vpack.c.bf16 %v985_v28, %v984_v27  ;;  %v8963_v35 = vld [vmem:[%s11861_s1 + $0xc] sm:$0x3]  ;;  %v988_v42 = vld [vmem:[#allocation2 + $0x62] sm:$0xff] }
  0x47   : > { %7897 = vmatmul.mubr.msk.bf16.gmra.mxu0 %vm345_vm1, %v8904_v38  ;;  %v8956_v32 = vpack.c.bf16 %v487_v5, %v486_v29  ;;  %v986_v36 = vld [vmem:[#allocation2 + $0x4a] sm:$0xff]  ;;  %v987_v41 = vld [vmem:[#allocation2 + $0x52] sm:$0xff]  ;;  %v990_v49 = vld [vmem:[#allocation2 + $0x7a] sm:$0xff] }
  0x48   : > { %7923 = vmatmul.mubr.msk.bf16.gmra.mxu1 %vm345_vm1, %v8886_v20  ;;  %7900 = vmatprep.mubr.msk.bf16.mxu0 %vm345_vm1, %v8907_v44  ;;  %v989_v43 = vld [vmem:[#allocation2 + $0x6a] sm:$0xff]  ;;  %v8975_v3 = vpack.c.bf16 %v987_v41, %v986_v36  ;;  %v991_v50 = vld [vmem:[#allocation2 + $0x82] sm:$0xff]  ;;  %v993_v53 = vld [vmem:[#allocation2 + $0x9a] sm:$0xff] }
  0x49   : > { %7926 = vmatprep.mubr.msk.bf16.mxu1 %vm345_vm1, %v8889_v23  ;;  %v8977_v47 = vpack.c.bf16 %v989_v43, %v988_v42  ;;  %v8988_v51 = vld [vmem:[%s11861_s1 + $0xe] sm:$0x3]  ;;  %v8994_v25 = vpack.c.bf16 %v991_v50, %v990_v49  ;;  %v995_v1 = vld [vmem:[#allocation2 + $0xb2] sm:$0xff]  ;;  %v996_v4 = vld [vmem:[#allocation2 + $0xc2] sm:$0xff] }
  0x4a   : > { %v994_v57 = vld [vmem:[#allocation2 + $0xaa] sm:$0xff]  ;;  %v998_v8 = vld [vmem:[#allocation2 + $0xda] sm:$0xff]  ;;  %v999_v10 = vld [vmem:[#allocation2 + $0xe2] sm:$0xff] }
  0x4b   : > { %v997_v2 = vld [vmem:[#allocation2 + $0xca] sm:$0xff]  ;;  %v9008_v6 = vpack.c.bf16 %v995_v1, %v994_v57  ;;  %v1000_v11 = vld [vmem:[#allocation2 + $0xf2] sm:$0xff]  ;;  %v9020_v19 = vpack.c.bf16 %v999_v10, %v998_v8  ;;  %v1004_v28 = vld [vmem:[#allocation2 + $0x122] sm:$0xff]  ;;  %v2256_v8 = vsel %vm603_vm0, %v8963_v35, 0 }
  0x4c   : > { %v9010_v7 = vpack.c.bf16 %v997_v2, %v996_v4  ;;  %v1002_v24 = vld [vmem:[#allocation2 + $0x10a] sm:$0xff]  ;;  %v1003_v27 = vld [vmem:[#allocation2 + $0x112] sm:$0xff]  ;;  %v1006_v36 = vld [vmem:[#allocation2 + $0x13a] sm:$0xff] }
  0x4d   : > { %v1005_v29 = vld [vmem:[#allocation2 + $0x12a] sm:$0xff]  ;;  %v1023_v5 = vpack.c.bf16 %v1003_v27, %v1002_v24  ;;  %v1007_v41 = vld [vmem:[#allocation2 + $0x142] sm:$0xff]  ;;  %v1008_v42 = vld [vmem:[#allocation2 + $0x152] sm:$0xff] }
  0x4e   : > { %v1009_v43 = vld [vmem:[#allocation2 + $0x15a] sm:$0xff]  ;;  %v400_v50 = vld [vmem:[#allocation2 + $0x199] sm:$0x1]  ;;  %v1305_v4 = vld [vmem:[#allocation2 + $0x188] sm:$0xff] }
  0x4f   : > { %7901 = vmatmul.mubr.msk.bf16.gmra.mxu0 %vm345_vm1, %v8922_v55  ;;  %v1026_v49 = vpack.c.bf16 %v1009_v43, %v1008_v42  ;;  %419 = vst.msk [vmem:[#allocation2 + $0x198] sm:$0x1] %vm401_vm2, %v400_v50  ;;  %v1304_v1 = vld [vmem:[#allocation2 + $0x180] sm:$0xff]  ;;  %v7221_v10 = vld [vmem:[%s11861_s1 + $0x10] sm:$0x3] }
  0x50   : > { %7927 = vmatmul.mubr.msk.bf16.gmra.mxu1 %vm345_vm1, %v8910_v45  ;;  %7904 = vmatprep.mubr.msk.bf16.mxu0 %vm345_vm1, %v8924_v59  ;;  %v9055_v2 = vpack.c.bf16 %v1305_v4, %v1304_v1 }
  0x51   : > { %7930 = vmatprep.mubr.msk.bf16.mxu1 %vm345_vm1, %v8912_v46 }
  0x57   : > { %7905 = vmatmul.mubr.msk.bf16.gmra.mxu0 %vm345_vm1, %v8938_v9 }
  0x58   : > { %7931 = vmatmul.mubr.msk.bf16.gmra.mxu1 %vm345_vm1, %v8926_v62  ;;  %7944 = vmatprep.mubr.msk.bf16.mxu0 %vm345_vm1, %v1012_v13  ;;  %v1001_v13 = vld [vmem:[#allocation2 + $0xfa] sm:$0xff] }
  0x59   : > { %7934 = vmatprep.mubr.msk.bf16.mxu1 %vm345_vm1, %v8928_v0  ;;  %v9022_v22 = vpack.c.bf16 %v1001_v13, %v1000_v11 }
  0x5f   : > { %7945 = vmatmul.mubr.msk.bf16.vlgmr.msra.gmra.mxu0 %vm345_vm1, %v8952_v30 }
  0x60   : > { %7935 = vmatmul.mubr.msk.bf16.gmra.mxu1 %vm345_vm1, %v8940_v16  ;;  %8011 = vmatpush3.bf16.msra.mxu0 %v1667_v33  ;;  %v9032_v33 = vpack.c.bf16 %v1005_v29, %v1004_v28 }
  0x61   : > { %7938 = vmatprep.mubr.msk.bf16.mxu1 %vm345_vm1, %v8942_v17  ;;  %7948 = vmatprep.mubr.msk.bf16.mxu0 %vm345_vm1, %v8954_v31 }
  0x62   : > { %8526 = vmatprep.subr.msk.bf16.mxu0 %vm603_vm0, %v8963_v35  ;;  %v2456_v35 = vld [vmem:[#allocation2 + $0x69] sm:$0xff] }
  0x67   : > { %7949 = vmatmul.mubr.msk.bf16.gmra.mxu0 %vm345_vm1, %v8975_v3 }
  0x68   : > { %7939 = vmatmul.mubr.msk.bf16.gmra.mxu1 %vm345_vm1, %v8956_v32  ;;  %7952 = vmatprep.mubr.msk.bf16.mxu0 %vm345_vm1, %v8977_v47 }
  0x69   : > { %7978 = vmatprep.mubr.msk.bf16.mxu1 %vm345_vm1, %v8812_v21  ;;  %v992_v21 = vld [vmem:[#allocation2 + $0x92] sm:$0xff] }
  0x6a   : > { %v8998_v54 = vpack.c.bf16 %v993_v53, %v992_v21  ;;  %v1010_v21 = vld [vmem:[#allocation2 + $0x16a] sm:$0xff]  ;;  %v1011_v53 = vld [vmem:[#allocation2 + $0x172] sm:$0xff] }
  0x6b   : > { %v1027_v57 = vpack.c.bf16 %v1011_v53, %v1010_v21  ;;  %v2463_v53 = vld [vmem:[#allocation2 + $0xc1] sm:$0xff] }
  0x6f   : > { %7953 = vmatmul.mubr.msk.bf16.gmra.mxu0 %vm345_vm1, %v8994_v25 }
  0x70   : > { %7979 = vmatmul.mubr.msk.bf16.vlgmr.msra.gmra.mxu1 %vm345_vm1, %v8824_v26  ;;  %7956 = vmatprep.mubr.msk.bf16.mxu0 %vm345_vm1, %v8998_v54 }
  0x71   : > { %7982 = vmatprep.mubr.msk.bf16.mxu1 %vm345_vm1, %v8839_v39  ;;  %8045 = vmatpush3.bf16.msra.mxu1 %v1961_v48  ;;  %v1025_v48 = vpack.c.bf16 %v1007_v41, %v1006_v36 }
  0x72   : > { %8527 = vmatprep.subr.msk.bf16.mxu1 %vm603_vm0, %v8988_v51 }
  0x77   : > { %7957 = vmatmul.mubr.msk.bf16.gmra.mxu0 %vm345_vm1, %v9008_v6 }
  0x78   : > { %7983 = vmatmul.mubr.msk.bf16.gmra.mxu1 %vm345_vm1, %v8842_v40  ;;  %7960 = vmatprep.mubr.msk.bf16.mxu0 %vm345_vm1, %v9010_v7 }
  0x79   : > { %7986 = vmatprep.mubr.msk.bf16.mxu1 %vm345_vm1, %v8862_v58 }
  0x7f   : > { %7961 = vmatmul.mubr.msk.bf16.gmra.mxu0 %vm345_vm1, %v9020_v19 }
  0x80   : > { %7987 = vmatmul.mubr.msk.bf16.gmra.mxu1 %vm345_vm1, %v8865_v60  ;;  %7964 = vmatprep.mubr.msk.bf16.mxu0 %vm345_vm1, %v9022_v22 }
  0x81   : > { %7990 = vmatprep.mubr.msk.bf16.mxu1 %vm345_vm1, %v8886_v20 }
  0x87   : > { %7965 = vmatmul.mubr.msk.bf16.gmra.mxu0 %vm345_vm1, %v1023_v5 }
  0x88   : > { %7991 = vmatmul.mubr.msk.bf16.gmra.mxu1 %vm345_vm1, %v8889_v23  ;;  %7968 = vmatprep.mubr.msk.bf16.mxu0 %vm345_vm1, %v9032_v33 }
  0x89   : > { %7994 = vmatprep.mubr.msk.bf16.mxu1 %vm345_vm1, %v8910_v45 }
  0x8f   : > { %7969 = vmatmul.mubr.msk.bf16.gmra.mxu0 %vm345_vm1, %v1025_v48 }
  0x90   : > { %7995 = vmatmul.mubr.msk.bf16.gmra.mxu1 %vm345_vm1, %v8912_v46  ;;  %7972 = vmatprep.mubr.msk.bf16.mxu0 %vm345_vm1, %v1026_v49 }
  0x91   : > { %7998 = vmatprep.mubr.msk.bf16.mxu1 %vm345_vm1, %v8926_v62 }
  0x97   : > { %7973 = vmatmul.mubr.msk.bf16.gmra.mxu0 %vm345_vm1, %v1027_v57 }
  0x98   : > { %7999 = vmatmul.mubr.msk.bf16.gmra.mxu1 %vm345_vm1, %v8928_v0  ;;  %8012 = vmatprep.mubr.msk.bf16.mxu0 %vm345_vm1, %v8781_v61  ;;  %v2550_v61 = vsel %vm603_vm0, %v8988_v51, 0 }
  0x99   : > { %8002 = vmatprep.mubr.msk.bf16.mxu1 %vm345_vm1, %v8940_v16 }
  0x9f   : > { %8013 = vmatmul.mubr.msk.bf16.vlgmr.msra.gmra.mxu0 %vm345_vm1, %v8785_v63  ;;  %v437_v63 = vld [vmem:[#allocation2 + $0x1a8] sm:$0x1] }
  0xa0   : > { %8003 = vmatmul.mubr.msk.bf16.gmra.mxu1 %vm345_vm1, %v8942_v17  ;;  %8079 = vmatpush3.bf16.msra.mxu0 %v2256_v8  ;;  %455 = vst.msk [vmem:[#allocation2 + $0x1a9] sm:$0x1] %vm401_vm2, %v437_v63 }
  0xa1   : > { %8006 = vmatprep.mubr.msk.bf16.mxu1 %vm345_vm1, %v8956_v32  ;;  %8016 = vmatprep.mubr.msk.bf16.mxu0 %vm345_vm1, %v8803_v12  ;;  %v1598_v12 = vld [vmem:[#allocation2 + $0x181] sm:$0xff] }
  0xa2   : > { %8528 = vmatprep.subr.msk.bf16.mxu0 %vm603_vm0, %v7221_v10 }
  0xa7   : > { %8017 = vmatmul.mubr.msk.bf16.gmra.mxu0 %vm345_vm1, %v8806_v15  ;;  %v1599_v15 = vld [vmem:[#allocation2 + $0x189] sm:$0xff] }
  0xa8   : > { %8007 = vmatmul.mubr.msk.bf16.gmra.mxu1 %vm345_vm1, %v9055_v2  ;;  %8020 = vmatprep.mubr.msk.bf16.mxu0 %vm345_vm1, %v8832_v34  ;;  %v9120_v34 = vpack.c.bf16 %v1599_v15, %v1598_v12 }
  0xa9   : > { %8046 = vmatprep.mubr.msk.bf16.mxu1 %vm345_vm1, %v8952_v30 }
  0xaf   : > { %8021 = vmatmul.mubr.msk.bf16.gmra.mxu0 %vm345_vm1, %v8837_v37  ;;  %v1892_v37 = vld [vmem:[#allocation2 + $0x182] sm:$0xff] }
  0xb0   : > { %8047 = vmatmul.mubr.msk.bf16.vlgmr.msra.gmra.mxu1 %vm345_vm1, %v8954_v31  ;;  %8024 = vmatprep.mubr.msk.bf16.mxu0 %vm345_vm1, %v8855_v52  ;;  %v1893_v52 = vld [vmem:[#allocation2 + $0x18a] sm:$0xff]  ;;  %v2455_v31 = vld [vmem:[#allocation2 + $0x61] sm:$0xff] }
  0xb1   : > { %8050 = vmatprep.mubr.msk.bf16.mxu1 %vm345_vm1, %v8975_v3  ;;  %8113 = vmatpush3.bf16.msra.mxu1 %v2550_v61  ;;  %v2485_v51 = vpack.c.bf16 %v2456_v35, %v2455_v31 }
  0xb7   : > { %8025 = vmatmul.mubr.msk.bf16.gmra.mxu0 %vm345_vm1, %v8858_v56  ;;  %v2451_v56 = vld [vmem:[#allocation2 + $0x31] sm:$0xff] }
  0xb8   : > { %8051 = vmatmul.mubr.msk.bf16.gmra.mxu1 %vm345_vm1, %v8977_v47  ;;  %8028 = vmatprep.mubr.msk.bf16.mxu0 %vm345_vm1, %v8881_v14  ;;  %v2452_v14 = vld [vmem:[#allocation2 + $0x39] sm:$0xff] }
  0xb9   : > { %8054 = vmatprep.mubr.msk.bf16.mxu1 %vm345_vm1, %v8994_v25 }
  0xbf   : > { %8029 = vmatmul.mubr.msk.bf16.gmra.mxu0 %vm345_vm1, %v8884_v18  ;;  %v9128_v18 = vpack.c.bf16 %v1893_v52, %v1892_v37 }
  0xc0   : > { %8055 = vmatmul.mubr.msk.bf16.gmra.mxu1 %vm345_vm1, %v8998_v54  ;;  %8032 = vmatprep.mubr.msk.bf16.mxu0 %vm345_vm1, %v8904_v38  ;;  %v2844_v38 = vsel %vm603_vm0, %v7221_v10, 0 }
  0xc1   : > { %8058 = vmatprep.mubr.msk.bf16.mxu1 %vm345_vm1, %v9008_v6  ;;  %v2457_v6 = vld [vmem:[#allocation2 + $0x79] sm:$0xff] }
  0xc7   : > { %8033 = vmatmul.mubr.msk.bf16.gmra.mxu0 %vm345_vm1, %v8907_v44  ;;  %v2483_v44 = vpack.c.bf16 %v2452_v14, %v2451_v56  ;;  %v2465_v56 = vld [vmem:[#allocation2 + $0xd9] sm:$0xff]  ;;  %v2466_v14 = vld [vmem:[#allocation2 + $0xe1] sm:$0xff] }
  0xc8   : > { %8059 = vmatmul.mubr.msk.bf16.gmra.mxu1 %vm345_vm1, %v9010_v7  ;;  %8036 = vmatprep.mubr.msk.bf16.mxu0 %vm345_vm1, %v8922_v55  ;;  %v2458_v7 = vld [vmem:[#allocation2 + $0x81] sm:$0xff] }
  0xc9   : > { %8062 = vmatprep.mubr.msk.bf16.mxu1 %vm345_vm1, %v9020_v19  ;;  %v2459_v19 = vld [vmem:[#allocation2 + $0x91] sm:$0xff]  ;;  %v2486_v28 = vpack.c.bf16 %v2458_v7, %v2457_v6 }
  0xca   : > { %v2470_v6 = vld [vmem:[#allocation2 + $0x111] sm:$0xff] }
  0xcf   : > { %8037 = vmatmul.mubr.msk.bf16.gmra.mxu0 %vm345_vm1, %v8924_v59  ;;  %v2453_v59 = vld [vmem:[#allocation2 + $0x49] sm:$0xff] }
  0xd0   : > { %8063 = vmatmul.mubr.msk.bf16.gmra.mxu1 %vm345_vm1, %v9022_v22  ;;  %8040 = vmatprep.mubr.msk.bf16.mxu0 %vm345_vm1, %v8938_v9  ;;  %v2454_v9 = vld [vmem:[#allocation2 + $0x51] sm:$0xff]  ;;  %v2460_v22 = vld [vmem:[#allocation2 + $0x99] sm:$0xff] }
  0xd1   : > { %8066 = vmatprep.mubr.msk.bf16.mxu1 %vm345_vm1, %v1023_v5  ;;  %v2484_v47 = vpack.c.bf16 %v2454_v9, %v2453_v59  ;;  %v2487_v29 = vpack.c.bf16 %v2460_v22, %v2459_v19  ;;  %v2472_v19 = vld [vmem:[#allocation2 + $0x129] sm:$0xff] }
  0xd7   : > { %8041 = vmatmul.mubr.msk.bf16.gmra.mxu0 %vm345_vm1, %v9120_v34 }
  0xd8   : > { %8067 = vmatmul.mubr.msk.bf16.gmra.mxu1 %vm345_vm1, %v9032_v33  ;;  %8080 = vmatprep.mubr.msk.bf16.mxu0 %vm345_vm1, %v8824_v26 }
  0xd9   : > { %8070 = vmatprep.mubr.msk.bf16.mxu1 %vm345_vm1, %v1025_v48  ;;  %v2461_v48 = vld [vmem:[#allocation2 + $0xa9] sm:$0xff] }
  0xdf   : > { %v7878_v55 = vpop.f32.mrf.mxu0  ;;  %8081 = vmatmul.mubr.msk.bf16.vlgmr.msra.gmra.mxu0 %vm345_vm1, %v8839_v39 }
  0xe0   : > { %8071 = vmatmul.mubr.msk.bf16.gmra.mxu1 %vm345_vm1, %v1026_v49  ;;  %8147 = vmatpush3.bf16.msra.mxu0 %v2844_v38  ;;  %v2462_v49 = vld [vmem:[#allocation2 + $0xb1] sm:$0xff] }
  0xe1   : > { %8074 = vmatprep.mubr.msk.bf16.mxu1 %vm345_vm1, %v1027_v57  ;;  %8084 = vmatprep.mubr.msk.bf16.mxu0 %vm345_vm1, %v8842_v40  ;;  %v641_v26 = vpop.f32.mrf.mxu0  ;;  %v2464_v57 = vld [vmem:[#allocation2 + $0xc9] sm:$0xff]  ;;  %v2488_v8 = vpack.c.bf16 %v2462_v49, %v2461_v48  ;;  %v2473_v49 = vld [vmem:[#allocation2 + $0x139] sm:$0xff] }
  0xe2   : > { %v2489_v10 = vpack.c.bf16 %v2464_v57, %v2463_v53  ;;  %v2475_v57 = vld [vmem:[#allocation2 + $0x151] sm:$0xff] }
  0xe3   : > { %v7879_v30 = vpop.f32.mrf.mxu0 }
  0xe5   : > { %v644_v3 = vpop.f32.mrf.mxu0 }
  0xe7   : > { %v7882_v25 = vpop.f32.mrf.mxu0  ;;  %8085 = vmatmul.mubr.msk.bf16.gmra.mxu0 %vm345_vm1, %v8862_v58 }
  0xe8   : > { %8075 = vmatmul.mubr.msk.bf16.gmra.mxu1 %vm345_vm1, %v9128_v18  ;;  %8088 = vmatprep.mubr.msk.bf16.mxu0 %vm345_vm1, %v8865_v60 }
  0xe9   : > { %8114 = vmatprep.mubr.msk.bf16.mxu1 %vm345_vm1, %v2483_v44  ;;  %v657_v40 = vpop.f32.mrf.mxu0 }
  0xeb   : > { %v7883_v13 = vpop.f32.mrf.mxu0 }
  0xed   : > { %v660_v27 = vpop.f32.mrf.mxu0 }
  0xef   : > { %v7886_v33 = vpop.f32.mrf.mxu0  ;;  %8089 = vmatmul.mubr.msk.bf16.gmra.mxu0 %vm345_vm1, %v8886_v20 }
  0xf0   : > { %v7912_v39 = vpop.f32.mrf.mxu1  ;;  %8115 = vmatmul.mubr.msk.bf16.vlgmr.msra.gmra.mxu1 %vm345_vm1, %v2484_v47  ;;  %8092 = vmatprep.mubr.msk.bf16.mxu0 %vm345_vm1, %v8889_v23 }
  0xf1   : > { %v9143_v54 = vadd.f32 %v7912_v39, %v7878_v55  ;;  %8118 = vmatprep.mubr.msk.bf16.mxu1 %vm345_vm1, %v2485_v51  ;;  %v673_v42 = vpop.f32.mrf.mxu0  ;;  %v2467_v55 = vld [vmem:[#allocation2 + $0xf1] sm:$0xff] }
  0xf2   : > { %v853_v11 = vpop.f32.mrf.mxu1 }
  0xf3   : > { %v9146_v24 = vadd.f32 %v853_v11, %v641_v26  ;;  %v7887_v21 = vpop.f32.mrf.mxu0  ;;  %v2468_v26 = vld [vmem:[#allocation2 + $0xf9] sm:$0xff] }
  0xf4   : > { %v7913_v58 = vpop.f32.mrf.mxu1  ;;  %v2491_v31 = vpack.c.bf16 %v2468_v26, %v2467_v55  ;;  %v2746_v55 = vld [vmem:[#allocation2 + $0x3a] sm:$0xff] }
  0xf5   : > { %v9148_v60 = vadd.f32 %v7913_v58, %v7879_v30  ;;  %v676_v4 = vpop.f32.mrf.mxu0  ;;  %v2490_v30 = vpack.c.bf16 %v2466_v14, %v2465_v56  ;;  %v2188_v56 = vld [vmem:[#allocation2 + $0x1a0] sm:$0xff] }
  0xf6   : > { %v856_v5 = vpop.f32.mrf.mxu1 }
  0xf7   : > { %v9152_v36 = vadd.f32 %v856_v5, %v644_v3  ;;  %v7890_v63 = vpop.f32.mrf.mxu0  ;;  %8093 = vmatmul.mubr.msk.bf16.gmra.mxu0 %vm345_vm1, %v8910_v45 }
  0xf8   : > { %v7916_v41 = vpop.f32.mrf.mxu1  ;;  %8119 = vmatmul.mubr.msk.bf16.gmra.mxu1 %vm345_vm1, %v2486_v28  ;;  %8096 = vmatprep.mubr.msk.bf16.mxu0 %vm345_vm1, %v8912_v46 }
  0xf9   : > { %v9157_v43 = vadd.f32 %v7916_v41, %v7882_v25  ;;  %8122 = vmatprep.mubr.msk.bf16.mxu1 %vm345_vm1, %v2487_v29  ;;  %v689_v37 = vpop.f32.mrf.mxu0 }
  0xfa   : > { %v869_v50 = vpop.f32.mrf.mxu1 }
  0xfb   : > { %v9160_v20 = vadd.f32 %v869_v50, %v657_v40  ;;  %v7891_v44 = vpop.f32.mrf.mxu0  ;;  %v2469_v40 = vld [vmem:[#allocation2 + $0x109] sm:$0xff]  ;;  %v2474_v50 = vld [vmem:[#allocation2 + $0x141] sm:$0xff] }
  0xfc   : > { %v7917_v1 = vpop.f32.mrf.mxu1 }
  0xfd   : > { %v9162_v23 = vadd.f32 %v7917_v1, %v7883_v13  ;;  %v692_v9 = vpop.f32.mrf.mxu0  ;;  %v2471_v13 = vld [vmem:[#allocation2 + $0x121] sm:$0xff]  ;;  %v2476_v1 = vld [vmem:[#allocation2 + $0x159] sm:$0xff] }
  0xfe   : > { %v872_v61 = vpop.f32.mrf.mxu1  ;;  %v2493_v28 = vpack.c.bf16 %v2472_v19, %v2471_v13  ;;  %v2748_v13 = vld [vmem:[#allocation2 + $0x52] sm:$0xff] }
  0xff   : > { %v9166_v12 = vadd.f32 %v872_v61, %v660_v27  ;;  %v7894_v3 = vpop.f32.mrf.mxu0  ;;  %8097 = vmatmul.mubr.msk.bf16.gmra.mxu0 %vm345_vm1, %v8926_v62  ;;  %v2495_v61 = vpack.c.bf16 %v2476_v1, %v2475_v57 }
 0x100   : > { %v7920_v15 = vpop.f32.mrf.mxu1  ;;  %8123 = vmatmul.mubr.msk.bf16.gmra.mxu1 %vm345_vm1, %v2488_v8  ;;  %8100 = vmatprep.mubr.msk.bf16.mxu0 %vm345_vm1, %v8928_v0  ;;  %v2492_v0 = vpack.c.bf16 %v2470_v6, %v2469_v40 }
 0x101   : > { %v9171_v52 = vadd.f32 %v7920_v15, %v7886_v33  ;;  %8126 = vmatprep.mubr.msk.bf16.mxu1 %vm345_vm1, %v2489_v10  ;;  %v705_v25 = vpop.f32.mrf.mxu0 }
 0x102   : > { %v885_v38 = vpop.f32.mrf.mxu1 }
 0x103   : > { %v9174_v45 = vadd.f32 %v885_v38, %v673_v42  ;;  %v7895_v11 = vpop.f32.mrf.mxu0 }
 0x104   : > { %v7921_v59 = vpop.f32.mrf.mxu1 }
 0x105   : > { %v9176_v46 = vadd.f32 %v7921_v59, %v7887_v21  ;;  %v9190_v58 = vpop.f32.mrf.mxu0  ;;  %v2477_v59 = vld [vmem:[#allocation2 + $0x169] sm:$0xff] }
 0x106   : > { %v888_v35 = vpop.f32.mrf.mxu1 }
 0x107   : > { %v9180_v47 = vadd.f32 %v888_v35, %v676_v4  ;;  %v7898_v5 = vpop.f32.mrf.mxu0  ;;  %8101 = vmatmul.mubr.msk.bf16.gmra.mxu0 %vm345_vm1, %v8940_v16 }
 0x108   : > { %v7924_v51 = vpop.f32.mrf.mxu1  ;;  %8127 = vmatmul.mubr.msk.bf16.gmra.mxu1 %vm345_vm1, %v2490_v30  ;;  %8104 = vmatprep.mubr.msk.bf16.mxu0 %vm345_vm1, %v8942_v17  ;;  %v2494_v17 = vpack.c.bf16 %v2474_v50, %v2473_v49 }
 0x109   : > { %v9185_v39 = vadd.f32 %v7924_v51, %v7890_v63  ;;  %8130 = vmatprep.mubr.msk.bf16.mxu1 %vm345_vm1, %v2491_v31  ;;  %v721_v42 = vpop.f32.mrf.mxu0 }
 0x10a   : > { %v901_v7 = vpop.f32.mrf.mxu1 }
 0x10b   : > { %v9188_v62 = vadd.f32 %v901_v7, %v689_v37  ;;  %v7899_v53 = vpop.f32.mrf.mxu0  ;;  %v2187_v37 = vld [vmem:[#allocation2 + $0x198] sm:$0xff] }
 0x10c   : > { %v7925_v22 = vpop.f32.mrf.mxu1 }
 0x10d   : > { %v9192_v27 = vadd.f32 %v7925_v22, %v7891_v44  ;;  %v9206_v8 = vpop.f32.mrf.mxu0  ;;  %v2745_v44 = vld [vmem:[#allocation2 + $0x32] sm:$0xff] }
 0x10e   : > { %v904_v29 = vpop.f32.mrf.mxu1 }
 0x10f   : > { %v9196_v33 = vadd.f32 %v904_v29, %v692_v9  ;;  %v7902_v15 = vpop.f32.mrf.mxu0  ;;  %8105 = vmatmul.mubr.msk.bf16.gmra.mxu0 %vm345_vm1, %v8956_v32  ;;  %v2478_v9 = vld [vmem:[#allocation2 + $0x171] sm:$0xff]  ;;  %v2204_v32 = vpack.c.bf16 %v2188_v56, %v2187_v37  ;;  %v2751_v37 = vld [vmem:[#allocation2 + $0x7a] sm:$0xff]  ;;  %v2752_v56 = vld [vmem:[#allocation2 + $0x82] sm:$0xff] }
 0x110   : > { %v7928_v41 = vpop.f32.mrf.mxu1  ;;  %8131 = vmatmul.mubr.msk.bf16.gmra.mxu1 %vm345_vm1, %v2492_v0  ;;  %8108 = vmatprep.mubr.msk.bf16.mxu0 %vm345_vm1, %v9055_v2  ;;  %v2777_v2 = vpack.c.bf16 %v2746_v55, %v2745_v44  ;;  %v2749_v0 = vld [vmem:[#allocation2 + $0x62] sm:$0xff]  ;;  %v2753_v44 = vld [vmem:[#allocation2 + $0x92] sm:$0xff]  ;;  %v2754_v55 = vld [vmem:[#allocation2 + $0x9a] sm:$0xff] }
 0x111   : > { %v9201_v48 = vadd.f32 %v7928_v41, %v7894_v3  ;;  %8134 = vmatprep.mubr.msk.bf16.mxu1 %vm345_vm1, %v2493_v28  ;;  %v737_v38 = vpop.f32.mrf.mxu0  ;;  %v2750_v28 = vld [vmem:[#allocation2 + $0x6a] sm:$0xff]  ;;  %v2482_v41 = vld [vmem:[#allocation2 + $0x1a1] sm:$0xff] }
 0x112   : > { %v917_v21 = vpop.f32.mrf.mxu1 }
 0x113   : > { %v9204_v16 = vadd.f32 %v917_v21, %v705_v25  ;;  %v7903_v31 = vpop.f32.mrf.mxu0  ;;  %v2496_v25 = vpack.c.bf16 %v2478_v9, %v2477_v59 }
 0x114   : > { %v7929_v4 = vpop.f32.mrf.mxu1 }
 0x115   : > { %v9208_v10 = vadd.f32 %v7929_v4, %v7895_v11  ;;  %v9222_v51 = vpop.f32.mrf.mxu0  ;;  %v2747_v11 = vld [vmem:[#allocation2 + $0x4a] sm:$0xff] }
 0x116   : > { %v9210_v63 = vpop.f32.mrf.mxu1  ;;  %v2778_v50 = vpack.c.bf16 %v2748_v13, %v2747_v11 }
 0x117   : > { %v7906_v7 = vpop.f32.mrf.mxu0  ;;  %8109 = vmatmul.mubr.msk.bf16.gmra.mxu0 %vm345_vm1, %v2204_v32  ;;  %v2780_v32 = vpack.c.bf16 %v2752_v56, %v2751_v37 }
 0x118   : > { %v7932_v14 = vpop.f32.mrf.mxu1  ;;  %8135 = vmatmul.mubr.msk.bf16.gmra.mxu1 %vm345_vm1, %v2494_v17  ;;  %8148 = vmatprep.mubr.msk.bf16.mxu0 %vm345_vm1, %v2777_v2 }
 0x119   : > { %v9217_v26 = vadd.f32 %v7932_v14, %v7898_v5  ;;  %8138 = vmatprep.mubr.msk.bf16.mxu1 %vm345_vm1, %v2495_v61  ;;  %v753_v22 = vpop.f32.mrf.mxu0  ;;  %v2481_v5 = vld [vmem:[#allocation2 + $0x199] sm:$0xff] }
 0x11a   : > { %v933_v30 = vpop.f32.mrf.mxu1  ;;  %v2498_v4 = vpack.c.bf16 %v2482_v41, %v2481_v5  ;;  %v2757_v41 = vld [vmem:[#allocation2 + $0xc2] sm:$0xff] }
 0x11b   : > { %v9220_v35 = vadd.f32 %v933_v30, %v721_v42  ;;  %v7907_v49 = vpop.f32.mrf.mxu0 }
 0x11c   : > { %v7933_v3 = vpop.f32.mrf.mxu1 }
 0x11d   : > { %v9224_v40 = vadd.f32 %v7933_v3, %v7899_v53  ;;  %v2779_v53 = vpack.c.bf16 %v2750_v28, %v2749_v0  ;;  %v9237_v1 = vpop.f32.mrf.mxu0  ;;  %v2781_v3 = vpack.c.bf16 %v2754_v55, %v2753_v44  ;;  %v2756_v28 = vld [vmem:[#allocation2 + $0xb2] sm:$0xff]  ;;  %v2759_v55 = vld [vmem:[#allocation2 + $0xda] sm:$0xff] }
 0x11e   : > { %v9226_v6 = vpop.f32.mrf.mxu1 }
 0x11f   : > { %8149 = vmatmul.mubr.msk.bf16.vlgmr.msra.gmra.mxu0 %vm345_vm1, %v2778_v50 }
 0x120   : > { %v7936_v19 = vpop.f32.mrf.mxu1  ;;  %8139 = vmatmul.mubr.msk.bf16.gmra.mxu1 %vm345_vm1, %v2496_v25  ;;  %8152 = vmatprep.mubr.msk.bf16.mxu0 %vm345_vm1, %v2779_v53 }
 0x121   : > { %v9231_v29 = vadd.f32 %v7936_v19, %v7902_v15  ;;  %8142 = vmatprep.mubr.msk.bf16.mxu1 %vm345_vm1, %v9120_v34  ;;  %v7946_v15 = vpop.f32.mrf.mxu0 }
 0x122   : > { %v949_v42 = vpop.f32.mrf.mxu1  ;;  %v1244_v34 = vadd.f32 %v7946_v15, %v9143_v54 }
 0x123   : > { %v9235_v21 = vadd.f32 %v949_v42, %v737_v38  ;;  %v1115_v38 = vpop.f32.mrf.mxu0  ;;  %v2758_v42 = vld [vmem:[#allocation2 + $0xca] sm:$0xff] }
 0x124   : > { %v7937_v57 = vpop.f32.mrf.mxu1  ;;  %v1242_v9 = vadd.f32 %v1115_v38, %v9146_v24 }
 0x125   : > { %v9239_v17 = vadd.f32 %v7937_v57, %v7903_v31  ;;  %v7947_v31 = vpop.f32.mrf.mxu0 }
 0x126   : > { %v9241_v61 = vpop.f32.mrf.mxu1  ;;  %v1245_v54 = vadd.f32 %v7947_v31, %v9148_v60  ;;  %v2761_v31 = vld [vmem:[#allocation2 + $0xf2] sm:$0xff] }
 0x127   : > { %v1118_v11 = vpop.f32.mrf.mxu0  ;;  %8153 = vmatmul.mubr.msk.bf16.gmra.mxu0 %vm345_vm1, %v2780_v32  ;;  %v2762_v32 = vld [vmem:[#allocation2 + $0xfa] sm:$0xff] }
 0x128   : > { %v7940_v14 = vpop.f32.mrf.mxu1  ;;  %8143 = vmatmul.mubr.msk.bf16.gmra.mxu1 %vm345_vm1, %v2498_v4  ;;  %v9256_v19 = vadd.f32 %v1118_v11, %v9152_v36  ;;  %8156 = vmatprep.mubr.msk.bf16.mxu0 %vm345_vm1, %v2781_v3 }
 0x129   : > { %v9247_v59 = vadd.f32 %v7940_v14, %v7906_v7  ;;  %v7950_v7 = vpop.f32.mrf.mxu0 }
 0x12a   : > { %v965_v30 = vpop.f32.mrf.mxu1  ;;  %v1248_v24 = vadd.f32 %v7950_v7, %v9157_v43  ;;  %v2783_v43 = vpack.c.bf16 %v2758_v42, %v2757_v41 }
 0x12b   : > { %v9250_v2 = vadd.f32 %v965_v30, %v753_v22  ;;  %v2755_v22 = vld [vmem:[#allocation2 + $0xaa] sm:$0xff]  ;;  %v1131_v5 = vpop.f32.mrf.mxu0 }
 0x12c   : > { %v7941_v25 = vpop.f32.mrf.mxu1  ;;  %v1246_v36 = vadd.f32 %v1131_v5, %v9160_v20  ;;  %v2782_v57 = vpack.c.bf16 %v2756_v28, %v2755_v22 }
 0x12d   : > { %v9253_v13 = vadd.f32 %v7941_v25, %v7907_v49  ;;  %v7951_v53 = vpop.f32.mrf.mxu0 }
 0x12e   : > { %v9258_v0 = vpop.f32.mrf.mxu1  ;;  %v1249_v15 = vadd.f32 %v7951_v53, %v9162_v23 }
 0x12f   : > { %v1134_v56 = vpop.f32.mrf.mxu0  ;;  %8157 = vmatmul.mubr.msk.bf16.gmra.mxu0 %vm345_vm1, %v2782_v57  ;;  %v2765_v57 = vld [vmem:[#allocation2 + $0x122] sm:$0xff] }
 0x130   : > { %v7980_v60 = vpop.f32.mrf.mxu1  ;;  %v9272_v38 = vadd.f32 %v1134_v56, %v9166_v12  ;;  %8160 = vmatprep.mubr.msk.bf16.mxu0 %vm345_vm1, %v2783_v43  ;;  %v2766_v43 = vld [vmem:[#allocation2 + $0x12a] sm:$0xff] }
 0x131   : > { %v9263_v49 = vadd.f32 %v7980_v60, %v1244_v34  ;;  %v7954_v34 = vpop.f32.mrf.mxu0 }
 0x132   : > { %v1409_v50 = vpop.f32.mrf.mxu1  ;;  %v1252_v20 = vadd.f32 %v7954_v34, %v9171_v52  ;;  %v2785_v52 = vpack.c.bf16 %v2762_v32, %v2761_v31 }
 0x133   : > { %v9266_v4 = vadd.f32 %v1409_v50, %v1242_v9  ;;  %v2760_v9 = vld [vmem:[#allocation2 + $0xe2] sm:$0xff]  ;;  %v1147_v30 = vpop.f32.mrf.mxu0  ;;  %v2764_v50 = vld [vmem:[#allocation2 + $0x112] sm:$0xff] }
 0x134   : > { %v7981_v37 = vpop.f32.mrf.mxu1  ;;  %v1250_v12 = vadd.f32 %v1147_v30, %v9174_v45  ;;  %v2784_v11 = vpack.c.bf16 %v2760_v9, %v2759_v55 }
 0x135   : > { %v9269_v14 = vadd.f32 %v7981_v37, %v1245_v54  ;;  %v7955_v25 = vpop.f32.mrf.mxu0 }
 0x136   : > { %v9274_v44 = vpop.f32.mrf.mxu1  ;;  %v1253_v22 = vadd.f32 %v7955_v25, %v9176_v46  ;;  %v2768_v25 = vld [vmem:[#allocation2 + $0x142] sm:$0xff] }
 0x137   : > { %v1150_v60 = vpop.f32.mrf.mxu0  ;;  %8161 = vmatmul.mubr.msk.bf16.gmra.mxu0 %vm345_vm1, %v2784_v11 }
 0x138   : > { %v7984_v23 = vpop.f32.mrf.mxu1  ;;  %v9288_v41 = vadd.f32 %v1150_v60, %v9180_v47  ;;  %8164 = vmatprep.mubr.msk.bf16.mxu0 %vm345_vm1, %v2785_v52  ;;  %v2769_v52 = vld [vmem:[#allocation2 + $0x152] sm:$0xff] }
 0x139   : > { %v9279_v54 = vadd.f32 %v7984_v23, %v1248_v24  ;;  %v7958_v24 = vpop.f32.mrf.mxu0 }
 0x13a   : > { %v1425_v3 = vpop.f32.mrf.mxu1  ;;  %v1256_v45 = vadd.f32 %v7958_v24, %v9185_v39  ;;  %v2787_v39 = vpack.c.bf16 %v2766_v43, %v2765_v57 }
 0x13b   : > { %v9282_v7 = vadd.f32 %v1425_v3, %v1246_v36  ;;  %v2763_v36 = vld [vmem:[#allocation2 + $0x10a] sm:$0xff]  ;;  %v1163_v53 = vpop.f32.mrf.mxu0 }
 0x13c   : > { %v7985_v28 = vpop.f32.mrf.mxu1  ;;  %v1254_v47 = vadd.f32 %v1163_v53, %v9188_v62  ;;  %v2786_v34 = vpack.c.bf16 %v2764_v50, %v2763_v36 }
 0x13d   : > { %v9285_v5 = vadd.f32 %v7985_v28, %v1249_v15  ;;  %v7959_v56 = vpop.f32.mrf.mxu0  ;;  %v2770_v28 = vld [vmem:[#allocation2 + $0x15a] sm:$0xff] }
 0x13e   : > { %v9290_v42 = vpop.f32.mrf.mxu1  ;;  %v1257_v9 = vadd.f32 %v7959_v56, %v9192_v27 }
 0x13f   : > { %v1166_v30 = vpop.f32.mrf.mxu0  ;;  %8165 = vmatmul.mubr.msk.bf16.gmra.mxu0 %vm345_vm1, %v2786_v34 }
 0x140   : > { %v7988_v46 = vpop.f32.mrf.mxu1  ;;  %v9304_v32 = vadd.f32 %v1166_v30, %v9196_v33  ;;  %8168 = vmatprep.mubr.msk.bf16.mxu0 %vm345_vm1, %v2787_v39 }
 0x141   : > { %v9295_v15 = vadd.f32 %v7988_v46, %v1252_v20  ;;  %v7962_v20 = vpop.f32.mrf.mxu0 }
 0x142   : > { %v1441_v37 = vpop.f32.mrf.mxu1  ;;  %v1260_v62 = vadd.f32 %v7962_v20, %v9201_v48  ;;  %v2789_v48 = vpack.c.bf16 %v2770_v28, %v2769_v52 }
 0x143   : > { %v9298_v55 = vadd.f32 %v1441_v37, %v1250_v12  ;;  %v2767_v12 = vld [vmem:[#allocation2 + $0x13a] sm:$0xff]  ;;  %v1179_v11 = vpop.f32.mrf.mxu0 }
 0x144   : > { %v7989_v23 = vpop.f32.mrf.mxu1  ;;  %v1258_v33 = vadd.f32 %v1179_v11, %v9204_v16  ;;  %v2788_v36 = vpack.c.bf16 %v2768_v25, %v2767_v12 }
 0x145   : > { %v9301_v31 = vadd.f32 %v7989_v23, %v1253_v22  ;;  %v7963_v24 = vpop.f32.mrf.mxu0 }
 0x146   : > { %v9306_v3 = vpop.f32.mrf.mxu1  ;;  %v1261_v46 = vadd.f32 %v7963_v24, %v9208_v10 }
 0x147   : > { %v9317_v57 = vpop.f32.mrf.mxu0  ;;  %8169 = vmatmul.mubr.msk.bf16.gmra.mxu0 %vm345_vm1, %v2788_v36 }
 0x148   : > { %v7992_v27 = vpop.f32.mrf.mxu1  ;;  %8172 = vmatprep.mubr.msk.bf16.mxu0 %vm345_vm1, %v2789_v48 }
 0x149   : > { %v9311_v22 = vadd.f32 %v7992_v27, %v1256_v45  ;;  %v7966_v56 = vpop.f32.mrf.mxu0  ;;  %v2771_v45 = vld [vmem:[#allocation2 + $0x16a] sm:$0xff] }
 0x14a   : > { %v1457_v60 = vpop.f32.mrf.mxu1  ;;  %v1264_v16 = vadd.f32 %v7966_v56, %v9217_v26 }
 0x14b   : > { %v9314_v50 = vadd.f32 %v1457_v60, %v1254_v47  ;;  %v2772_v47 = vld [vmem:[#allocation2 + $0x172] sm:$0xff]  ;;  %v1195_v39 = vpop.f32.mrf.mxu0 }
 0x14c   : > { %v7993_v53 = vpop.f32.mrf.mxu1  ;;  %v1262_v23 = vadd.f32 %v1195_v39, %v9220_v35  ;;  %v2790_v20 = vpack.c.bf16 %v2772_v47, %v2771_v45  ;;  %v2775_v35 = vld [vmem:[#allocation2 + $0x19a] sm:$0xff] }
 0x14d   : > { %v9319_v43 = vadd.f32 %v7993_v53, %v1257_v9  ;;  %v7967_v9 = vpop.f32.mrf.mxu0 }
 0x14e   : > { %v9321_v37 = vpop.f32.mrf.mxu1  ;;  %v1265_v25 = vadd.f32 %v7967_v9, %v9224_v40 }
 0x14f   : > { %v9332_v11 = vpop.f32.mrf.mxu0  ;;  %8173 = vmatmul.mubr.msk.bf16.gmra.mxu0 %vm345_vm1, %v2790_v20 }
 0x150   : > { %v7996_v34 = vpop.f32.mrf.mxu1  ;;  %8176 = vmatprep.mubr.msk.bf16.mxu0 %vm345_vm1, %v9128_v18 }
 0x151   : > { %v9326_v10 = vadd.f32 %v7996_v34, %v1260_v62  ;;  %v7970_v28 = vpop.f32.mrf.mxu0 }
 0x152   : > { %v1473_v30 = vpop.f32.mrf.mxu1  ;;  %v1268_v62 = vadd.f32 %v7970_v28, %v9231_v29 }
 0x153   : > { %v9329_v12 = vadd.f32 %v1473_v30, %v1258_v33  ;;  %v2776_v33 = vld [vmem:[#allocation2 + $0x1a2] sm:$0xff]  ;;  %v1211_v24 = vpop.f32.mrf.mxu0 }
 0x154   : > { %v7997_v27 = vpop.f32.mrf.mxu1  ;;  %v1266_v36 = vadd.f32 %v1211_v24, %v9235_v21  ;;  %v2792_v53 = vpack.c.bf16 %v2776_v33, %v2775_v35 }
 0x155   : > { %v9334_v26 = vadd.f32 %v7997_v27, %v1261_v46  ;;  %v7971_v48 = vpop.f32.mrf.mxu0 }
 0x156   : > { %v9336_v52 = vpop.f32.mrf.mxu1  ;;  %v1269_v45 = vadd.f32 %v7971_v48, %v9239_v17 }
 0x157   : > { %v9348_v29 = vpop.f32.mrf.mxu0  ;;  %8177 = vmatmul.mubr.msk.bf16.gmra.mxu0 %vm345_vm1, %v2792_v53 }
 0x158   : > { %v8000_v60 = vpop.f32.mrf.mxu1 }
 0x159   : > { %v9342_v40 = vadd.f32 %v8000_v60, %v1264_v16  ;;  %v7974_v39 = vpop.f32.mrf.mxu0 }
 0x15a   : > { %v1489_v46 = vpop.f32.mrf.mxu1  ;;  %v1272_v16 = vadd.f32 %v7974_v39, %v9247_v59 }
 0x15b   : > { %v9345_v56 = vadd.f32 %v1489_v46, %v1262_v23  ;;  %v1227_v30 = vpop.f32.mrf.mxu0 }
 0x15c   : > { %v8001_v47 = vpop.f32.mrf.mxu1  ;;  %v1270_v23 = vadd.f32 %v1227_v30, %v9250_v2 }
 0x15d   : > { %v9350_v34 = vadd.f32 %v8001_v47, %v1265_v25  ;;  %v7975_v17 = vpop.f32.mrf.mxu0 }
 0x15e   : > { %v9352_v18 = vpop.f32.mrf.mxu1  ;;  %v1273_v25 = vadd.f32 %v7975_v17, %v9253_v13 }
 0x15f   : > { %v9362_v35 = vpop.f32.mrf.mxu0 }
 0x160   : > { %v8004_v21 = vpop.f32.mrf.mxu1 }
 0x161   : > { %v9356_v9 = vadd.f32 %v8004_v21, %v1268_v62  ;;  %v8014_v59 = vpop.f32.mrf.mxu0 }
 0x162   : > { %v1505_v20 = vpop.f32.mrf.mxu1  ;;  %v1832_v24 = vadd.f32 %v8014_v59, %v9263_v49 }
 0x163   : > { %v9359_v27 = vadd.f32 %v1505_v20, %v1266_v36  ;;  %v1703_v46 = vpop.f32.mrf.mxu0 }
 0x164   : > { %v8005_v28 = vpop.f32.mrf.mxu1  ;;  %v1830_v2 = vadd.f32 %v1703_v46, %v9266_v4 }
 0x165   : > { %v9364_v33 = vadd.f32 %v8005_v28, %v1269_v45  ;;  %v8015_v53 = vpop.f32.mrf.mxu0 }
 0x166   : > { %v9366_v60 = vpop.f32.mrf.mxu1  ;;  %v1833_v13 = vadd.f32 %v8015_v53, %v9269_v14 }
 0x167   : > { %v9375_v45 = vpop.f32.mrf.mxu0 }
 0x168   : > { %v8008_v62 = vpop.f32.mrf.mxu1 }
 0x169   : > { %v9369_v48 = vadd.f32 %v8008_v62, %v1272_v16  ;;  %v8018_v49 = vpop.f32.mrf.mxu0 }
 0x16a   : > { %v1521_v36 = vpop.f32.mrf.mxu1  ;;  %v1836_v20 = vadd.f32 %v8018_v49, %v9279_v54 }
 0x16b   : > { %v9372_v47 = vadd.f32 %v1521_v36, %v1270_v23  ;;  %v1719_v17 = vpop.f32.mrf.mxu0 }
 0x16c   : > { %v8009_v39 = vpop.f32.mrf.mxu1  ;;  %v9385_v4 = vadd.f32 %v1719_v17, %v9282_v7 }
 0x16d   : > { %v9377_v21 = vadd.f32 %v8009_v39, %v1273_v25  ;;  %v8019_v59 = vpop.f32.mrf.mxu0 }
 0x16e   : > { %v9379_v30 = vpop.f32.mrf.mxu1  ;;  %v1837_v62 = vadd.f32 %v8019_v59, %v9285_v5 }
 0x16f   : > { %11868 = vst [vmem:[#allocation4_spill] sm:$0xff] %v9379_v30  ;;  %v9390_v46 = vpop.f32.mrf.mxu0 }
 0x170   : > { %v8048_v16 = vpop.f32.mrf.mxu1 }
 0x171   : > { %v9382_v28 = vadd.f32 %v8048_v16, %v1832_v24  ;;  %v8022_v54 = vpop.f32.mrf.mxu0 }
 0x172   : > { %v1997_v23 = vpop.f32.mrf.mxu1  ;;  %v1840_v24 = vadd.f32 %v8022_v54, %v9295_v15 }
 0x173   : > { %v9387_v14 = vadd.f32 %v1997_v23, %v1830_v2  ;;  %v1735_v49 = vpop.f32.mrf.mxu0 }
 0x174   : > { %v8049_v25 = vpop.f32.mrf.mxu1  ;;  %v9400_v16 = vadd.f32 %v1735_v49, %v9298_v55 }
 0x175   : > { %v9392_v36 = vadd.f32 %v8049_v25, %v1833_v13  ;;  %v8023_v5 = vpop.f32.mrf.mxu0 }
 0x176   : > { %v9394_v53 = vpop.f32.mrf.mxu1  ;;  %11869 = vst [vmem:[#allocation5_spill] sm:$0xff] %v9400_v16  ;;  %v1841_v17 = vadd.f32 %v8023_v5, %v9301_v31 }
 0x177   : > { %v9405_v13 = vpop.f32.mrf.mxu0 }
 0x178   : > { %v8052_v39 = vpop.f32.mrf.mxu1  ;;  %11870 = vst [vmem:[#allocation6_spill] sm:$0xff] %v9405_v13 }
 0x179   : > { %v9397_v7 = vadd.f32 %v8052_v39, %v1836_v20  ;;  %v8026_v15 = vpop.f32.mrf.mxu0 }
 0x17a   : > { %v9402_v2 = vpop.f32.mrf.mxu1  ;;  %v1844_v54 = vadd.f32 %v8026_v15, %v9311_v22 }
 0x17b   : > { %v1751_v39 = vpop.f32.mrf.mxu0 }
 0x17c   : > { %v8053_v23 = vpop.f32.mrf.mxu1  ;;  %v9415_v55 = vadd.f32 %v1751_v39, %v9314_v50 }
 0x17d   : > { %v9407_v59 = vadd.f32 %v8053_v23, %v1837_v62  ;;  %v8027_v31 = vpop.f32.mrf.mxu0 }
 0x17e   : > { %v9409_v25 = vpop.f32.mrf.mxu1  ;;  %11872 = vst [vmem:[#allocation8_spill] sm:$0xff] %v9415_v55  ;;  %v1845_v5 = vadd.f32 %v8027_v31, %v9319_v43 }
 0x17f   : > { %11871 = vst [vmem:[#allocation7_spill] sm:$0xff] %v9409_v25  ;;  %v9420_v62 = vpop.f32.mrf.mxu0 }
 0x180   : > { %v8056_v20 = vpop.f32.mrf.mxu1  ;;  %11873 = vst [vmem:[#allocation9_spill] sm:$0xff] %v9420_v62 }
 0x181   : > { %v9412_v30 = vadd.f32 %v8056_v20, %v1840_v24  ;;  %v8030_v22 = vpop.f32.mrf.mxu0 }
 0x182   : > { %v9417_v49 = vpop.f32.mrf.mxu1  ;;  %v1848_v15 = vadd.f32 %v8030_v22, %v9326_v10 }
 0x183   : > { %v1767_v20 = vpop.f32.mrf.mxu0 }
 0x184   : > { %v8057_v16 = vpop.f32.mrf.mxu1  ;;  %v9430_v50 = vadd.f32 %v1767_v20, %v9329_v12 }
 0x185   : > { %v9422_v23 = vadd.f32 %v8057_v16, %v1841_v17  ;;  %v8031_v43 = vpop.f32.mrf.mxu0 }
 0x186   : > { %v9424_v25 = vpop.f32.mrf.mxu1  ;;  %11875 = vst [vmem:[#allocation11_spill] sm:$0xff] %v9430_v50  ;;  %v1849_v31 = vadd.f32 %v8031_v43, %v9334_v26 }
 0x187   : > { %11874 = vst [vmem:[#allocation10_spill] sm:$0xff] %v9424_v25  ;;  %v9435_v16 = vpop.f32.mrf.mxu0 }
 0x188   : > { %v8060_v24 = vpop.f32.mrf.mxu1  ;;  %11876 = vst [vmem:[#allocation12_spill] sm:$0xff] %v9435_v16 }
 0x189   : > { %v9427_v13 = vadd.f32 %v8060_v24, %v1844_v54  ;;  %v8034_v10 = vpop.f32.mrf.mxu0 }
 0x18a   : > { %v9432_v39 = vpop.f32.mrf.mxu1  ;;  %v1852_v22 = vadd.f32 %v8034_v10, %v9342_v40 }
 0x18b   : > { %v1783_v24 = vpop.f32.mrf.mxu0 }
 0x18c   : > { %v8061_v55 = vpop.f32.mrf.mxu1  ;;  %v9445_v12 = vadd.f32 %v1783_v24, %v9345_v56 }
 0x18d   : > { %v9437_v17 = vadd.f32 %v8061_v55, %v1845_v5  ;;  %v8035_v26 = vpop.f32.mrf.mxu0 }
 0x18e   : > { %v9439_v25 = vpop.f32.mrf.mxu1  ;;  %11878 = vst [vmem:[#allocation14_spill] sm:$0xff] %v9445_v12  ;;  %v1853_v43 = vadd.f32 %v8035_v26, %v9350_v34 }
 0x18f   : > { %11877 = vst [vmem:[#allocation13_spill] sm:$0xff] %v9439_v25  ;;  %v9450_v55 = vpop.f32.mrf.mxu0 }
 0x190   : > { %v8064_v54 = vpop.f32.mrf.mxu1  ;;  %11880 = vst [vmem:[#allocation16_spill] sm:$0xff] %v9450_v55 }
 0x191   : > { %v9442_v62 = vadd.f32 %v8064_v54, %v1848_v15  ;;  %v8038_v40 = vpop.f32.mrf.mxu0 }
 0x192   : > { %v9447_v20 = vpop.f32.mrf.mxu1  ;;  %v1856_v10 = vadd.f32 %v8038_v40, %v9356_v9 }
 0x193   : > { %11879 = vst [vmem:[#allocation15_spill] sm:$0xff] %v9447_v20  ;;  %v1799_v54 = vpop.f32.mrf.mxu0 }
 0x194   : > { %v8065_v50 = vpop.f32.mrf.mxu1  ;;  %v9460_v56 = vadd.f32 %v1799_v54, %v9359_v27 }
 0x195   : > { %v9452_v5 = vadd.f32 %v8065_v50, %v1849_v31  ;;  %v8039_v34 = vpop.f32.mrf.mxu0 }
 0x196   : > { %v9454_v25 = vpop.f32.mrf.mxu1  ;;  %11882 = vst [vmem:[#allocation18_spill] sm:$0xff] %v9460_v56  ;;  %v1857_v26 = vadd.f32 %v8039_v34, %v9364_v33 }
 0x197   : > { %11881 = vst [vmem:[#allocation17_spill] sm:$0xff] %v9454_v25  ;;  %v9465_v50 = vpop.f32.mrf.mxu0 }
 0x198   : > { %v8068_v15 = vpop.f32.mrf.mxu1  ;;  %11884 = vst [vmem:[#allocation20_spill] sm:$0xff] %v9465_v50 }
 0x199   : > { %v9457_v16 = vadd.f32 %v8068_v15, %v1852_v22  ;;  %v8042_v9 = vpop.f32.mrf.mxu0 }
 0x19a   : > { %v9462_v24 = vpop.f32.mrf.mxu1  ;;  %v1860_v40 = vadd.f32 %v8042_v9, %v9369_v48 }
 0x19b   : > { %11883 = vst [vmem:[#allocation19_spill] sm:$0xff] %v9462_v24  ;;  %v1815_v15 = vpop.f32.mrf.mxu0 }
 0x19c   : > { %v8069_v12 = vpop.f32.mrf.mxu1  ;;  %v9475_v27 = vadd.f32 %v1815_v15, %v9372_v47 }
 0x19d   : > { %v9467_v31 = vadd.f32 %v8069_v12, %v1853_v43  ;;  %v8043_v33 = vpop.f32.mrf.mxu0 }
 0x19e   : > { %v9469_v25 = vpop.f32.mrf.mxu1  ;;  %11886 = vst [vmem:[#allocation22_spill] sm:$0xff] %v9475_v27  ;;  %v1861_v34 = vadd.f32 %v8043_v33, %v9377_v21 }
 0x19f   : > { %11885 = vst [vmem:[#allocation21_spill] sm:$0xff] %v9469_v25  ;;  %v9480_v12 = vpop.f32.mrf.mxu0 }
 0x1a0   : > { %v8072_v22 = vpop.f32.mrf.mxu1  ;;  %11888 = vst [vmem:[#allocation24_spill] sm:$0xff] %v9480_v12 }
 0x1a1   : > { %v9472_v55 = vadd.f32 %v8072_v22, %v1856_v10  ;;  %v8082_v48 = vpop.f32.mrf.mxu0 }
 0x1a2   : > { %v9477_v54 = vpop.f32.mrf.mxu1  ;;  %v9487_v9 = vadd.f32 %v8082_v48, %v9382_v28 }
 0x1a3   : > { %11887 = vst [vmem:[#allocation23_spill] sm:$0xff] %v9477_v54  ;;  %v2292_v22 = vpop.f32.mrf.mxu0 }
 0x1a4   : > { %v8073_v56 = vpop.f32.mrf.mxu1  ;;  %v9490_v15 = vadd.f32 %v2292_v22, %v9387_v14 }
 0x1a5   : > { %v9482_v43 = vadd.f32 %v8073_v56, %v1857_v26  ;;  %v8083_v21 = vpop.f32.mrf.mxu0 }
 0x1a6   : > { %v9484_v25 = vpop.f32.mrf.mxu1  ;;  %v9495_v33 = vadd.f32 %v8083_v21, %v9392_v36 }
 0x1a7   : > { %11889 = vst [vmem:[#allocation25_spill] sm:$0xff] %v9484_v25  ;;  %v9497_v26 = vpop.f32.mrf.mxu0 }
 0x1a8   : > { %v8076_v10 = vpop.f32.mrf.mxu1 }
 0x1a9   : > { %v2154_v47 = vadd.f32 %v8076_v10, %v1860_v40  ;;  %v8086_v28 = vpop.f32.mrf.mxu0 }
 0x1aa   : > { %v9492_v27 = vpop.f32.mrf.mxu1  ;;  %v9502_v48 = vadd.f32 %v8086_v28, %v9397_v7 }
 0x1ab   : > { %11890 = vst [vmem:[#allocation26_spill] sm:$0xff] %v9492_v27  ;;  %v9506_v14 = vpop.f32.mrf.mxu0 }
 0x1ac   : > { %v8077_v56 = vpop.f32.mrf.mxu1 }
 0x1ad   : > { %v2155_v12 = vadd.f32 %v8077_v56, %v1861_v34  ;;  %v8087_v22 = vpop.f32.mrf.mxu0 }
 0x1ae   : > { %v9499_v25 = vpop.f32.mrf.mxu1  ;;  %v9511_v36 = vadd.f32 %v8087_v22, %v9407_v59 }
 0x1af   : > { %11891 = vst [vmem:[#allocation27_spill] sm:$0xff] %v9499_v25  ;;  %v9515_v27 = vpop.f32.mrf.mxu0 }
 0x1b0   : > { %v9504_v40 = vpop.f32.mrf.mxu1  ;;  %11892 = vst [vmem:[#allocation28_spill] sm:$0xff] %v9511_v36 }
 0x1b1   : > { %v8090_v56 = vpop.f32.mrf.mxu0 }
 0x1b2   : > { %v9508_v10 = vpop.f32.mrf.mxu1  ;;  %v9520_v7 = vadd.f32 %v8090_v56, %v9412_v30 }
 0x1b3   : > { %v9524_v25 = vpop.f32.mrf.mxu0 }
 0x1b4   : > { %v9513_v21 = vpop.f32.mrf.mxu1  ;;  %11893 = vst [vmem:[#allocation29_spill] sm:$0xff] %v9520_v7  ;;  %11895 = vst [vmem:[#allocation31_spill] sm:$0xff] %v9524_v25 }
 0x1b5   : > { %v8091_v50 = vpop.f32.mrf.mxu0 }
 0x1b6   : > { %v9517_v34 = vpop.f32.mrf.mxu1  ;;  %v9529_v59 = vadd.f32 %v8091_v50, %v9422_v23 }
 0x1b7   : > { %v9533_v24 = vpop.f32.mrf.mxu0 }
 0x1b8   : > { %v9522_v28 = vpop.f32.mrf.mxu1  ;;  %11896 = vst [vmem:[#allocation32_spill] sm:$0xff] %v9529_v59  ;;  %11897 = vst [vmem:[#allocation33_spill] sm:$0xff] %v9533_v24 }
 0x1b9   : > { %11894 = vst [vmem:[#allocation30_spill] sm:$0xff] %v9522_v28  ;;  %v8094_v20 = vpop.f32.mrf.mxu0 }
 0x1ba   : > { %v9526_v54 = vpop.f32.mrf.mxu1  ;;  %v9538_v30 = vadd.f32 %v8094_v20, %v9427_v13 }
 0x1bb   : > { %v9540_v56 = vpop.f32.mrf.mxu0 }
 0x1bc   : > { %v9531_v22 = vpop.f32.mrf.mxu1  ;;  %11899 = vst [vmem:[#allocation35_spill] sm:$0xff] %v9538_v30  ;;  %11900 = vst [vmem:[#allocation36_spill] sm:$0xff] %v9540_v56 }
 0x1bd   : > { %v8095_v7 = vpop.f32.mrf.mxu0 }
 0x1be   : > { %v9535_v36 = vpop.f32.mrf.mxu1  ;;  %v9545_v28 = vadd.f32 %v8095_v7, %v9437_v17 }
 0x1bf   : > { %11898 = vst [vmem:[#allocation34_spill] sm:$0xff] %v9535_v36  ;;  %v9547_v23 = vpop.f32.mrf.mxu0 }
 0x1c0   : > { %v9542_v25 = vpop.f32.mrf.mxu1  ;;  %11901 = vst [vmem:[#allocation37_spill] sm:$0xff] %v9545_v28  ;;  %11902 = vst [vmem:[#allocation38_spill] sm:$0xff] %v9547_v23 }
 0x1c1   : > { %v8098_v50 = vpop.f32.mrf.mxu0 }
 0x1c2   : > { %v9549_v59 = vpop.f32.mrf.mxu1  ;;  %v9552_v24 = vadd.f32 %v8098_v50, %v9442_v62 }
 0x1c3   : > { %v9554_v36 = vpop.f32.mrf.mxu0 }
 0x1c4   : > { %11903 = vst [vmem:[#allocation39_spill] sm:$0xff] %v9552_v24  ;;  %11904 = vst [vmem:[#allocation40_spill] sm:$0xff] %v9554_v36  ;;  %v9556_v20 = vpop.f32.mrf.mxu1 }
 0x1c5   : > { %v8099_v13 = vpop.f32.mrf.mxu0 }
 0x1c6   : > { %v9559_v30 = vadd.f32 %v8099_v13, %v9452_v5  ;;  %v9563_v7 = vpop.f32.mrf.mxu1 }
 0x1c7   : > { %v9561_v56 = vpop.f32.mrf.mxu0 }
 0x1c8   : > { %11905 = vst [vmem:[#allocation41_spill] sm:$0xff] %v9559_v30  ;;  %11906 = vst [vmem:[#allocation42_spill] sm:$0xff] %v9561_v56  ;;  %v9570_v50 = vpop.f32.mrf.mxu1 }
 0x1c9   : > { %v8102_v17 = vpop.f32.mrf.mxu0  ;;  %11909 = vst [vmem:[#allocation45_spill] sm:$0xff] %v9570_v50 }
 0x1ca   : > { %v9566_v28 = vadd.f32 %v8102_v17, %v9457_v16  ;;  %v9577_v13 = vpop.f32.mrf.mxu1 }
 0x1cb   : > { %v9568_v23 = vpop.f32.mrf.mxu0 }
 0x1cc   : > { %11907 = vst [vmem:[#allocation43_spill] sm:$0xff] %v9566_v28  ;;  %11908 = vst [vmem:[#allocation44_spill] sm:$0xff] %v9568_v23  ;;  %v9584_v17 = vpop.f32.mrf.mxu1 }
 0x1cd   : > { %v8103_v62 = vpop.f32.mrf.mxu0 }
 0x1ce   : > { %v9573_v24 = vadd.f32 %v8103_v62, %v9467_v31  ;;  %v9591_v62 = vpop.f32.mrf.mxu1 }
 0x1cf   : > { %v9575_v36 = vpop.f32.mrf.mxu0 }
 0x1d0   : > { %11910 = vst [vmem:[#allocation46_spill] sm:$0xff] %v9573_v24  ;;  %11911 = vst [vmem:[#allocation47_spill] sm:$0xff] %v9575_v36 }
 0x1d1   : > { %v8106_v5 = vpop.f32.mrf.mxu0 }
 0x1d2   : > { %v9580_v30 = vadd.f32 %v8106_v5, %v9472_v55  ;;  %v1537_v55 = vadd.f32 %v9274_v44, %v9256_v19  ;;  %v9599_v5 = vpop.f32.mrf.mxu1  ;;  %v969_v19 = vadd.f32 %v9258_v0, %v9237_v1  ;;  %v1549_v1 = vadd.f32 %v9321_v37, %v9304_v32 }
 0x1d3   : > { %v9582_v56 = vpop.f32.mrf.mxu0  ;;  %v2128_v37 = vadd.f32 %v9402_v2, %v9385_v4 }
 0x1d4   : > { %11912 = vst [vmem:[#allocation48_spill] sm:$0xff] %v9580_v30 }
 0x1d5   : > { %v8107_v16 = vpop.f32.mrf.mxu0  ;;  %v2423_v2 = vadd.f32 %v9506_v14, %v2128_v37 }
 0x1d6   : > { %v9587_v28 = vadd.f32 %v8107_v16, %v9482_v43  ;;  %v921_v43 = vadd.f32 %v9210_v63, %v9190_v58  ;;  %v937_v16 = vadd.f32 %v9226_v6, %v9206_v8  ;;  %v1541_v58 = vadd.f32 %v9290_v42, %v9272_v38 }
 0x1d7   : > { %v9589_v23 = vpop.f32.mrf.mxu0  ;;  %v1545_v8 = vadd.f32 %v9306_v3, %v9288_v41  ;;  %v2713_v6 = vadd.f32 %v9508_v10, %v9490_v15  ;;  %v1271_v41 = vadd.f32 %v9362_v35, %v969_v19  ;;  %v2715_v3 = vadd.f32 %v9504_v40, %v9487_v9  ;;  %v11917_v10 = vld [vmem:[#allocation5_spill] sm:$0xff]  ;;  %v11920_v19 = vld [vmem:[#allocation8_spill] sm:$0xff] }
 0x1d8   : > { %11913 = vst [vmem:[#allocation49_spill] sm:$0xff] %v9587_v28  ;;  %v1259_v44 = vadd.f32 %v9317_v57, %v921_v43  ;;  %v1835_v32 = vadd.f32 %v9390_v46, %v1541_v58  ;;  %v2716_v35 = vadd.f32 %v9513_v21, %v9495_v33  ;;  %v11916_v46 = vld [vmem:[#allocation7_spill] sm:$0xff]  ;;  %v2132_v4 = vadd.f32 %v9417_v49, %v11917_v10  ;;  %v11918_v43 = vld [vmem:[#allocation9_spill] sm:$0xff] }
 0x1d9   : > { %v8110_v31 = vpop.f32.mrf.mxu0  ;;  %v2717_v14 = vadd.f32 %v9526_v54, %v2423_v2 }
 0x1da   : > { %v9593_v24 = vadd.f32 %v8110_v31, %v2154_v47  ;;  %v1831_v47 = vadd.f32 %v9375_v45, %v1537_v55  ;;  %v953_v31 = vadd.f32 %v9241_v61, %v9222_v51  ;;  %v9623_v51 = vpop.f32.mrf.mxu1  ;;  %v1553_v61 = vadd.f32 %v9336_v52, %v1259_v44 }
 0x1db   : > { %v9595_v36 = vpop.f32.mrf.mxu0  ;;  %v2129_v40 = vadd.f32 %v11916_v46, %v1835_v32  ;;  %v9669_v44 = vadd.f32 %v9432_v39, %v11920_v19 }
 0x1dc   : > { %v2125_v63 = vadd.f32 %v9394_v53, %v1831_v47  ;;  %v1267_v0 = vadd.f32 %v9348_v29, %v953_v31  ;;  %v11914_v29 = vld [vmem:[#allocation4_spill] sm:$0xff]  ;;  %v9650_v9 = vpop.f32.mrf.mxu1  ;;  %v11919_v47 = vld [vmem:[#allocation10_spill] sm:$0xff] }
 0x1dd   : > { %v8111_v50 = vpop.f32.mrf.mxu0 }
 0x1de   : > { %v9601_v30 = vadd.f32 %v8111_v50, %v2155_v12  ;;  %v1263_v12 = vadd.f32 %v9332_v11, %v937_v16  ;;  %v2420_v42 = vadd.f32 %v9497_v26, %v2125_v63  ;;  %v9639_v45 = vadd.f32 %v9366_v60, %v1267_v0  ;;  %v11915_v60 = vld [vmem:[#allocation6_spill] sm:$0xff]  ;;  %v9675_v58 = vpop.f32.mrf.mxu1 }
 0x1df   : > { %v9607_v28 = vpop.f32.mrf.mxu0  ;;  %v1839_v26 = vadd.f32 %v11915_v60, %v1545_v8  ;;  %v1843_v16 = vadd.f32 %v11918_v43, %v1549_v1  ;;  %v2424_v1 = vadd.f32 %v9515_v27, %v2129_v40 }
 0x1e0   : > { %v9630_v57 = vadd.f32 %v9352_v18, %v1263_v12  ;;  %v9645_v18 = vadd.f32 %v11914_v29, %v1271_v41  ;;  %v2714_v53 = vadd.f32 %v9517_v34, %v2420_v42  ;;  %v11921_v12 = vld [vmem:[#allocation12_spill] sm:$0xff]  ;;  %v11924_v29 = vld [vmem:[#allocation34_spill] sm:$0xff] }
 0x1e1   : > { %v8150_v50 = vpop.f32.mrf.mxu0  ;;  %v2133_v31 = vadd.f32 %v11919_v47, %v1839_v26  ;;  %v9672_v49 = vadd.f32 %v11921_v12, %v1553_v61  ;;  %v11922_v61 = vld [vmem:[#allocation30_spill] sm:$0xff]  ;;  %v9699_v26 = vpop.f32.mrf.mxu1 }
 0x1e2   : > { %v9652_v15 = vadd.f32 %v8150_v50, %v2715_v3  ;;  %v2719_v54 = vadd.f32 %v11922_v61, %v9502_v48 }
 0x1e3   : > { %v2880_v38 = vpop.f32.mrf.mxu0 }
 0x1e4   : > { %v9636_v11 = vadd.f32 %v2880_v38, %v2713_v6  ;;  %v3112_v8 = vmul.f32 %v9652_v15, %v9652_v15  ;;  %v3043_v0 = vsel %vm3039_vm3, %v9652_v15, 0.0 }
 0x1e5   : > { %v8151_v52 = vpop.f32.mrf.mxu0 }
 0x1e6   : > { %v3110_v33 = vmul.f32 %v9636_v11, %v9636_v11  ;;  %v9662_v21 = vadd.f32 %v8151_v52, %v2716_v35  ;;  %v3040_v63 = vsel %vm3039_vm3, %v9636_v11, 0.0  ;;  %v11923_v52 = vld [vmem:[#allocation28_spill] sm:$0xff]  ;;  %v2718_v35 = vadd.f32 %v11924_v29, %v2424_v1 }
 0x1e7   : > { %v2883_v55 = vpop.f32.mrf.mxu0  ;;  %v2720_v27 = vadd.f32 %v9531_v22, %v11923_v52  ;;  %v3145_v46 = vsel %vm3039_vm3, %v3112_v8, 0.0  ;;  %v11926_v22 = vld [vmem:[#allocation31_spill] sm:$0xff] }
 0x1e8   : > { %v9664_v34 = vadd.f32 %v2883_v55, %v2714_v53  ;;  %v3142_v42 = vsel %vm3039_vm3, %v3110_v33, 0.0  ;;  %v3113_v3 = vmul.f32 %v9662_v21, %v9662_v21  ;;  %v3045_v40 = vsel %vm3039_vm3, %v9662_v21, 0.0  ;;  %v11925_v55 = vld [vmem:[#allocation13_spill] sm:$0xff] }
 0x1e9   : > { %v8154_v50 = vpop.f32.mrf.mxu0  ;;  %v2137_v43 = vadd.f32 %v11925_v55, %v1843_v16  ;;  %v2427_v33 = vadd.f32 %v11926_v22, %v2132_v4 }
 0x1ea   : > { %v3041_v6 = vsel %vm3039_vm3, %v9664_v34, 0.0  ;;  %v3111_v39 = vmul.f32 %v9664_v34, %v9664_v34  ;;  %v9704_v10 = vadd.f32 %v8154_v50, %v2719_v54  ;;  %v11927_v50 = vld [vmem:[#allocation11_spill] sm:$0xff] }
 0x1eb   : > { %v3042_v38 = vadd.f32 %v3041_v6, %v3040_v63  ;;  %v2896_v41 = vpop.f32.mrf.mxu0  ;;  %v2721_v16 = vadd.f32 %v9549_v59, %v2427_v33 }
 0x1ec   : > { %v3143_v32 = vsel %vm3039_vm3, %v3111_v39, 0.0  ;;  %v9694_v37 = vadd.f32 %v2896_v41, %v2717_v14  ;;  %v3147_v14 = vsel %vm3039_vm3, %v3113_v3, 0.0  ;;  %v11928_v39 = vld [vmem:[#allocation15_spill] sm:$0xff] }
 0x1ed   : > { %v3044_v48 = vadd.f32 %v3043_v0, %v3042_v38  ;;  %v3144_v53 = vadd.f32 %v3143_v32, %v3142_v42  ;;  %v8155_v60 = vpop.f32.mrf.mxu0  ;;  %v9719_v1 = vadd.f32 %v11928_v39, %v11927_v50  ;;  %v9722_v0 = vpop.f32.mrf.mxu1  ;;  %v3116_v38 = vmul.f32 %v9704_v10, %v9704_v10  ;;  %v11929_v32 = vld [vmem:[#allocation33_spill] sm:$0xff]  ;;  %v11932_v50 = vld [vmem:[#allocation16_spill] sm:$0xff] }
 0x1ee   : > { %v3114_v2 = vmul.f32 %v9694_v37, %v9694_v37  ;;  %v3047_v8 = vsel %vm3039_vm3, %v9694_v37, 0.0  ;;  %v9713_v63 = vadd.f32 %v8155_v60, %v2720_v27  ;;  %v2428_v52 = vadd.f32 %v11929_v32, %v2133_v31  ;;  %v11930_v27 = vld [vmem:[#allocation29_spill] sm:$0xff] }
 0x1ef   : > { %v3146_v47 = vadd.f32 %v3145_v46, %v3144_v53  ;;  %v3046_v19 = vadd.f32 %v3045_v40, %v3044_v48  ;;  %v2899_v12 = vpop.f32.mrf.mxu0  ;;  %v2723_v59 = vadd.f32 %v9542_v25, %v11930_v27  ;;  %v3051_v53 = vsel %vm3039_vm3, %v9704_v10, 0.0 }
 0x1f0   : > { %v9715_v6 = vadd.f32 %v2899_v12, %v2718_v35  ;;  %v3149_v41 = vsel %vm3039_vm3, %v3114_v2, 0.0  ;;  %v3117_v60 = vmul.f32 %v9713_v63, %v9713_v63  ;;  %v11931_v2 = vld [vmem:[#allocation32_spill] sm:$0xff]  ;;  %v2722_v31 = vadd.f32 %v9563_v7, %v2428_v52 }
 0x1f1   : > { %v3048_v61 = vadd.f32 %v3047_v8, %v3046_v19  ;;  %v3148_v4 = vadd.f32 %v3147_v14, %v3146_v47  ;;  %v8158_v54 = vpop.f32.mrf.mxu0  ;;  %v2724_v55 = vadd.f32 %v9556_v20, %v11931_v2  ;;  %v9744_v47 = vpop.f32.mrf.mxu1  ;;  %v3153_v19 = vsel %vm3039_vm3, %v3116_v38, 0.0  ;;  %v11933_v7 = vld [vmem:[#allocation36_spill] sm:$0xff] }
 0x1f2   : > { %v3049_v42 = vsel %vm3039_vm3, %v9715_v6, 0.0  ;;  %v3115_v3 = vmul.f32 %v9715_v6, %v9715_v6  ;;  %v3053_v12 = vsel %vm3039_vm3, %v9713_v63, 0.0  ;;  %v9749_v14 = vadd.f32 %v8158_v54, %v2723_v59 }
 0x1f3   : > { %v3150_v29 = vadd.f32 %v3149_v41, %v3148_v4  ;;  %v3050_v35 = vadd.f32 %v3049_v42, %v3048_v61  ;;  %v2912_v48 = vpop.f32.mrf.mxu0  ;;  %v9755_v20 = vadd.f32 %v11932_v50, %v9630_v57  ;;  %v2431_v39 = vadd.f32 %v11933_v7, %v9669_v44  ;;  %v9769_v59 = vpop.f32.mrf.mxu1 }
 0x1f4   : > { %v3151_v46 = vsel %vm3039_vm3, %v3115_v3, 0.0  ;;  %v9739_v40 = vadd.f32 %v2912_v48, %v2721_v16  ;;  %v3155_v38 = vsel %vm3039_vm3, %v3117_v60, 0.0  ;;  %v11934_v3 = vld [vmem:[#allocation17_spill] sm:$0xff]  ;;  %v11935_v60 = vld [vmem:[#allocation38_spill] sm:$0xff] }
 0x1f5   : > { %v3052_v22 = vadd.f32 %v3051_v53, %v3050_v35  ;;  %v3152_v25 = vadd.f32 %v3151_v46, %v3150_v29  ;;  %v8159_v33 = vpop.f32.mrf.mxu0  ;;  %v2141_v32 = vadd.f32 %v11934_v3, %v9672_v49  ;;  %v2725_v57 = vadd.f32 %v9577_v13, %v2431_v39  ;;  %v11936_v46 = vld [vmem:[#allocation35_spill] sm:$0xff]  ;;  %v11937_v13 = vld [vmem:[#allocation45_spill] sm:$0xff] }
 0x1f6   : > { %v3118_v8 = vmul.f32 %v9739_v40, %v9739_v40  ;;  %v3055_v41 = vsel %vm3039_vm3, %v9739_v40, 0.0  ;;  %v9762_v54 = vadd.f32 %v8159_v33, %v2724_v55  ;;  %v3120_v29 = vmul.f32 %v9749_v14, %v9749_v14 }
 0x1f7   : > { %v3154_v16 = vadd.f32 %v3153_v19, %v3152_v25  ;;  %v3054_v61 = vadd.f32 %v3053_v12, %v3052_v22  ;;  %v2915_v4 = vpop.f32.mrf.mxu0  ;;  %v2432_v49 = vadd.f32 %v11935_v60, %v2137_v43  ;;  %v2727_v2 = vadd.f32 %v11937_v13, %v11936_v46  ;;  %v11942_v46 = vld [vmem:[#allocation20_spill] sm:$0xff] }
 0x1f8   : > { %v9764_v42 = vadd.f32 %v2915_v4, %v2722_v31  ;;  %v3157_v35 = vsel %vm3039_vm3, %v3118_v8, 0.0  ;;  %v3059_v25 = vsel %vm3039_vm3, %v9749_v14, 0.0  ;;  %v3121_v33 = vmul.f32 %v9762_v54, %v9762_v54  ;;  %v11938_v8 = vld [vmem:[#allocation37_spill] sm:$0xff] }
 0x1f9   : > { %v3056_v52 = vadd.f32 %v3055_v41, %v3054_v61  ;;  %v3156_v27 = vadd.f32 %v3155_v38, %v3154_v16  ;;  %v8162_v44 = vpop.f32.mrf.mxu0  ;;  %v2728_v50 = vadd.f32 %v9584_v17, %v11938_v8  ;;  %v2726_v43 = vadd.f32 %v9591_v62, %v2432_v49  ;;  %v9791_v61 = vpop.f32.mrf.mxu1  ;;  %v11941_v62 = vld [vmem:[#allocation40_spill] sm:$0xff] }
 0x1fa   : > { %v3057_v48 = vsel %vm3039_vm3, %v9764_v42, 0.0  ;;  %v3119_v53 = vmul.f32 %v9764_v42, %v9764_v42  ;;  %v3161_v4 = vsel %vm3039_vm3, %v3120_v29, 0.0  ;;  %v3061_v38 = vsel %vm3039_vm3, %v9762_v54, 0.0 }
 0x1fb   : > { %v3158_v55 = vadd.f32 %v3157_v35, %v3156_v27  ;;  %v3058_v31 = vadd.f32 %v3057_v48, %v3056_v52  ;;  %v2928_v22 = vpop.f32.mrf.mxu0  ;;  %v9796_v41 = vadd.f32 %v8162_v44, %v2727_v2  ;;  %v11940_v52 = vld [vmem:[#allocation19_spill] sm:$0xff]  ;;  %v2435_v27 = vadd.f32 %v11941_v62, %v9719_v1 }
 0x1fc   : > { %v3159_v19 = vsel %vm3039_vm3, %v3119_v53, 0.0  ;;  %v9786_v12 = vadd.f32 %v2928_v22, %v2725_v57  ;;  %v11939_v57 = vld [vmem:[#allocation14_spill] sm:$0xff]  ;;  %v3163_v60 = vsel %vm3039_vm3, %v3121_v33, 0.0  ;;  %v9813_v13 = vadd.f32 %v11942_v46, %v9639_v45  ;;  %v9816_v22 = vpop.f32.mrf.mxu1 }
 0x1fd   : > { %v3060_v7 = vadd.f32 %v3059_v25, %v3058_v31  ;;  %v3160_v39 = vadd.f32 %v3159_v19, %v3158_v55  ;;  %v8163_v16 = vpop.f32.mrf.mxu0  ;;  %v2144_v17 = vadd.f32 %v11940_v52, %v11939_v57  ;;  %v2729_v2 = vadd.f32 %v9623_v51, %v2435_v27  ;;  %v11943_v45 = vld [vmem:[#allocation42_spill] sm:$0xff]  ;;  %v11945_v52 = vld [vmem:[#allocation41_spill] sm:$0xff] }
 0x1fe   : > { %v3122_v3 = vmul.f32 %v9786_v12, %v9786_v12  ;;  %v3063_v29 = vsel %vm3039_vm3, %v9786_v12, 0.0  ;;  %v9807_v49 = vadd.f32 %v8163_v16, %v2728_v50  ;;  %v3124_v25 = vmul.f32 %v9796_v41, %v9796_v41 }
 0x1ff   : > { %v3162_v35 = vadd.f32 %v3161_v4, %v3160_v39  ;;  %v3062_v48 = vadd.f32 %v3061_v38, %v3060_v7  ;;  %v2931_v53 = vpop.f32.mrf.mxu0  ;;  %v2436_v50 = vadd.f32 %v11943_v45, %v2141_v32  ;;  %v3067_v4 = vsel %vm3039_vm3, %v9796_v41, 0.0 }
 0x200   : > { %v9809_v44 = vadd.f32 %v2931_v53, %v2726_v43  ;;  %v3165_v33 = vsel %vm3039_vm3, %v3122_v3, 0.0  ;;  %v11944_v43 = vld [vmem:[#allocation39_spill] sm:$0xff]  ;;  %v3125_v38 = vmul.f32 %v9807_v49, %v9807_v49  ;;  %v2732_v62 = vadd.f32 %v9650_v9, %v11945_v52 }
 0x201   : > { %v3064_v55 = vadd.f32 %v3063_v29, %v3062_v48  ;;  %v3164_v1 = vadd.f32 %v3163_v60, %v3162_v35  ;;  %v8166_v31 = vpop.f32.mrf.mxu0  ;;  %v2731_v51 = vadd.f32 %v9599_v5, %v11944_v43  ;;  %v2730_v32 = vadd.f32 %v9675_v58, %v2436_v50  ;;  %v9838_v48 = vpop.f32.mrf.mxu1  ;;  %v11948_v50 = vld [vmem:[#allocation18_spill] sm:$0xff]  ;;  %v11949_v43 = vld [vmem:[#allocation23_spill] sm:$0xff] }
 0x202   : > { %v3065_v19 = vsel %vm3039_vm3, %v9809_v44, 0.0  ;;  %v3123_v8 = vmul.f32 %v9809_v44, %v9809_v44  ;;  %v3169_v53 = vsel %vm3039_vm3, %v3124_v25, 0.0  ;;  %v3069_v60 = vsel %vm3039_vm3, %v9807_v49, 0.0 }
 0x203   : > { %v3166_v7 = vadd.f32 %v3165_v33, %v3164_v1  ;;  %v3066_v39 = vadd.f32 %v3065_v19, %v3064_v55  ;;  %v2944_v16 = vpop.f32.mrf.mxu0  ;;  %v9843_v29 = vadd.f32 %v8166_v31, %v2731_v51  ;;  %v11947_v55 = vld [vmem:[#allocation44_spill] sm:$0xff]  ;;  %v2148_v51 = vadd.f32 %v11949_v43, %v11948_v50 }
 0x204   : > { %v3167_v3 = vsel %vm3039_vm3, %v3123_v8, 0.0  ;;  %v9833_v57 = vadd.f32 %v2944_v16, %v2729_v2  ;;  %v11946_v2 = vld [vmem:[#allocation21_spill] sm:$0xff]  ;;  %v2439_v58 = vadd.f32 %v11947_v55, %v2144_v17  ;;  %v3171_v8 = vsel %vm3039_vm3, %v3125_v38, 0.0  ;;  %v2685_v16 = vpop.f32.mrf.mxu1 }
 0x205   : > { %v3068_v27 = vadd.f32 %v3067_v4, %v3066_v39  ;;  %v3168_v5 = vadd.f32 %v3167_v3, %v3166_v7  ;;  %v8167_v35 = vpop.f32.mrf.mxu0  ;;  %v2145_v9 = vadd.f32 %v11946_v2, %v9755_v20  ;;  %v3128_v4 = vmul.f32 %v9843_v29, %v9843_v29 }
 0x206   : > { %v3126_v46 = vmul.f32 %v9833_v57, %v9833_v57  ;;  %v3071_v25 = vsel %vm3039_vm3, %v9833_v57, 0.0  ;;  %v9853_v45 = vadd.f32 %v8167_v35, %v2732_v62  ;;  %v2733_v7 = vadd.f32 %v9722_v0, %v2439_v58  ;;  %v11950_v62 = vld [vmem:[#allocation47_spill] sm:$0xff]  ;;  %v11952_v58 = vld [vmem:[#allocation46_spill] sm:$0xff] }
 0x207   : > { %v3170_v1 = vadd.f32 %v3169_v53, %v3168_v5  ;;  %v3070_v33 = vadd.f32 %v3069_v60, %v3068_v27  ;;  %v2947_v19 = vpop.f32.mrf.mxu0  ;;  %v11951_v27 = vld [vmem:[#allocation43_spill] sm:$0xff]  ;;  %v3075_v60 = vsel %vm3039_vm3, %v9843_v29, 0.0 }
 0x208   : > { %v9855_v31 = vadd.f32 %v2947_v19, %v2730_v32  ;;  %v3173_v38 = vsel %vm3039_vm3, %v3126_v46, 0.0  ;;  %v2440_v32 = vadd.f32 %v11950_v62, %v2145_v9  ;;  %v2735_v0 = vadd.f32 %v9699_v26, %v11951_v27  ;;  %v11955_v27 = vld [vmem:[#allocation26_spill] sm:$0xff] }
 0x209   : > { %v3072_v20 = vadd.f32 %v3071_v25, %v3070_v33  ;;  %v3172_v39 = vadd.f32 %v3171_v8, %v3170_v1  ;;  %v8170_v17 = vpop.f32.mrf.mxu0  ;;  %v3129_v46 = vmul.f32 %v9853_v45, %v9853_v45  ;;  %v2736_v1 = vadd.f32 %v9744_v47, %v11952_v58  ;;  %v9880_v8 = vpop.f32.mrf.mxu1 }
 0x20a   : > { %v3073_v3 = vsel %vm3039_vm3, %v9855_v31, 0.0  ;;  %v3127_v52 = vmul.f32 %v9855_v31, %v9855_v31  ;;  %v2734_v9 = vadd.f32 %v9769_v59, %v2440_v32  ;;  %v3177_v25 = vsel %vm3039_vm3, %v3128_v4, 0.0  ;;  %v11954_v32 = vld [vmem:[#allocation22_spill] sm:$0xff] }
 0x20b   : > { %v3174_v5 = vadd.f32 %v3173_v38, %v3172_v39  ;;  %v3074_v35 = vadd.f32 %v3073_v3, %v3072_v20  ;;  %v2960_v53 = vpop.f32.mrf.mxu0  ;;  %v3077_v50 = vsel %vm3039_vm3, %v9853_v45, 0.0  ;;  %v9885_v43 = vadd.f32 %v8170_v17, %v2735_v0  ;;  %v11953_v20 = vld [vmem:[#allocation25_spill] sm:$0xff] }
 0x20c   : > { %v3175_v2 = vsel %vm3039_vm3, %v3127_v52, 0.0  ;;  %v9875_v55 = vadd.f32 %v2960_v53, %v2733_v7  ;;  %v2149_v47 = vadd.f32 %v11953_v20, %v9813_v13  ;;  %v2443_v59 = vadd.f32 %v9582_v56, %v2148_v51  ;;  %v2698_v51 = vpop.f32.mrf.mxu1  ;;  %v11957_v20 = vld [vmem:[#allocation49_spill] sm:$0xff] }
 0x20d   : > { %v3076_v33 = vadd.f32 %v3075_v60, %v3074_v35  ;;  %v3176_v26 = vadd.f32 %v3175_v2, %v3174_v5  ;;  %v8171_v19 = vpop.f32.mrf.mxu0  ;;  %v3179_v52 = vsel %vm3039_vm3, %v3129_v46, 0.0  ;;  %v2152_v0 = vadd.f32 %v11955_v27, %v11954_v32  ;;  %v11958_v27 = vld [vmem:[#allocation24_spill] sm:$0xff] }
 0x20e   : > { %v3130_v7 = vmul.f32 %v9875_v55, %v9875_v55  ;;  %v3079_v4 = vsel %vm3039_vm3, %v9875_v55, 0.0  ;;  %v9895_v62 = vadd.f32 %v8171_v19, %v2736_v1  ;;  %v2737_v5 = vadd.f32 %v9816_v22, %v2443_v59  ;;  %v11956_v1 = vld [vmem:[#allocation48_spill] sm:$0xff] }
 0x20f   : > { %v3178_v39 = vadd.f32 %v3177_v25, %v3176_v26  ;;  %v3078_v38 = vadd.f32 %v3077_v50, %v3076_v33  ;;  %v2963_v3 = vpop.f32.mrf.mxu0  ;;  %v3132_v53 = vmul.f32 %v9885_v43, %v9885_v43  ;;  %v2444_v58 = vadd.f32 %v9589_v23, %v2149_v47 }
 0x210   : > { %v9897_v17 = vadd.f32 %v2963_v3, %v2734_v9  ;;  %v3181_v60 = vsel %vm3039_vm3, %v3130_v7, 0.0  ;;  %v2739_v22 = vadd.f32 %v9791_v61, %v11956_v1  ;;  %v3083_v19 = vsel %vm3039_vm3, %v9885_v43, 0.0 }
 0x211   : > { %v3080_v13 = vadd.f32 %v3079_v4, %v3078_v38  ;;  %v3180_v35 = vadd.f32 %v3179_v52, %v3178_v39  ;;  %v8174_v56 = vpop.f32.mrf.mxu0  ;;  %v3133_v25 = vmul.f32 %v9895_v62, %v9895_v62  ;;  %v2740_v59 = vadd.f32 %v9838_v48, %v11957_v20  ;;  %v8145_v38 = vpop.f32.mrf.mxu1 }
 0x212   : > { %v3081_v46 = vsel %vm3039_vm3, %v9897_v17, 0.0  ;;  %v3131_v2 = vmul.f32 %v9897_v17, %v9897_v17  ;;  %v2738_v23 = vadd.f32 %v2685_v16, %v2444_v58  ;;  %v3185_v3 = vsel %vm3039_vm3, %v3132_v53, 0.0  ;;  %v11959_v58 = vld [vmem:[#allocation27_spill] sm:$0xff] }
 0x213   : > { %v3182_v9 = vadd.f32 %v3181_v60, %v3180_v35  ;;  %v3082_v33 = vadd.f32 %v3081_v46, %v3080_v13  ;;  %v2976_v26 = vpop.f32.mrf.mxu0  ;;  %v3085_v52 = vsel %vm3039_vm3, %v9895_v62, 0.0  ;;  %v9924_v4 = vadd.f32 %v8174_v56, %v2739_v22 }
 0x214   : > { %v3183_v50 = vsel %vm3039_vm3, %v3131_v2, 0.0  ;;  %v9917_v7 = vadd.f32 %v2976_v26, %v2737_v5  ;;  %v1859_v5 = vadd.f32 %v11958_v27, %v9645_v18  ;;  %v2447_v48 = vadd.f32 %v9595_v36, %v2152_v0  ;;  %v8542_v2 = vld [vmem:[%s11862_s2 + $0x18] sm:$0xff]  }
 0x215   : > { %v3084_v47 = vadd.f32 %v3083_v19, %v3082_v33  ;;  %v3184_v39 = vadd.f32 %v3183_v50, %v3182_v9  ;;  %v8175_v61 = vpop.f32.mrf.mxu0  ;;  %v3187_v60 = vsel %vm3039_vm3, %v3133_v25, 0.0  ;;  %v2701_v9 = vpop.f32.mrf.mxu1  ;;  %v3136_v33 = vmul.f32 %v9924_v4, %v9924_v4  ;;  %8180 = vmatprep.subr.bf16.mxu1 %v8542_v2 }
 0x216   : > { %v3134_v32 = vmul.f32 %v9917_v7, %v9917_v7  ;;  %v3087_v53 = vsel %vm3039_vm3, %v9917_v7, 0.0  ;;  %v9934_v46 = vadd.f32 %v8175_v61, %v2740_v59  ;;  %v2153_v18 = vadd.f32 %v11959_v58, %v1859_v5  ;;  %8181 = vmatpush3.bf16.msra.mxu1 %v8542_v2  ;;  %v8546_v2 = vld [vmem:[%s11862_s2] sm:$0xff]  }
 0x217   : > { %v3186_v16 = vadd.f32 %v3185_v3, %v3184_v39  ;;  %v3086_v13 = vadd.f32 %v3085_v52, %v3084_v47  ;;  %v2979_v35 = vpop.f32.mrf.mxu0  ;;  %v2741_v1 = vadd.f32 %v2698_v51, %v2447_v48  ;;  %v2743_v51 = vadd.f32 %v9880_v8, %v9593_v24 }
 0x218   : > { %v9936_v56 = vadd.f32 %v2979_v35, %v2738_v23  ;;  %v3189_v26 = vsel %vm3039_vm3, %v3134_v32, 0.0  ;;  %v2448_v50 = vadd.f32 %v9607_v28, %v2153_v18  ;;  %v3091_v47 = vsel %vm3039_vm3, %v9924_v4, 0.0  ;;  %v8543_v28 = vld [vmem:[%s11862_s2 + $0x10] sm:$0xff]  }
 0x219   : > { %v3088_v36 = vadd.f32 %v3087_v53, %v3086_v13  ;;  %v3188_v0 = vadd.f32 %v3187_v60, %v3186_v16  ;;  %v8178_v22 = vpop.f32.mrf.mxu0  ;;  %v3137_v39 = vmul.f32 %v9934_v46, %v9934_v46  ;;  %v2744_v24 = vadd.f32 %v8145_v38, %v9601_v30  ;;  %8182 = vmatprep.subr.bf16.mxu1 %v8543_v28  ;;  %v8544_v30 = vld [vmem:[%s11862_s2 + $0x8] sm:$0xff]  }
 0x21a   : > { %v3089_v19 = vsel %vm3039_vm3, %v9936_v56, 0.0  ;;  %v3135_v25 = vmul.f32 %v9936_v56, %v9936_v56  ;;  %v2742_v8 = vadd.f32 %v2701_v9, %v2448_v50  ;;  %v3193_v5 = vsel %vm3039_vm3, %v3136_v33, 0.0  ;;  %8183 = vmatpush3.bf16.msra.mxu1 %v8543_v28  ;;  %v9976_v38 = vld [vmem:[%s11862_s2 + $0x28] sm:$0xff]   ;;  %8216 = vmatprep.subr.bf16.mxu0 %v8544_v30 }
 0x21b   : > { %v3190_v20 = vadd.f32 %v3189_v26, %v3188_v0  ;;  %v3090_v59 = vadd.f32 %v3089_v19, %v3088_v36  ;;  %v2992_v23 = vpop.f32.mrf.mxu0  ;;  %v3093_v48 = vsel %vm3039_vm3, %v9934_v46, 0.0  ;;  %v9966_v16 = vadd.f32 %v8178_v22, %v2743_v51  ;;  %8252 = vmatprep.subr.bf16.mxu1 %v9976_v38  ;;  %8217 = vmatpush3.bf16.msra.mxu0 %v8544_v30 }
 0x21c   : > { %v3191_v61 = vsel %vm3039_vm3, %v3135_v25, 0.0  ;;  %v9957_v3 = vadd.f32 %v2992_v23, %v2741_v1  ;;  %v3195_v58 = vsel %vm3039_vm3, %v3137_v39, 0.0  ;;  %8218 = vmatprep.subr.bf16.mxu0 %v8546_v2 }
 0x21d   : > { %v3092_v52 = vadd.f32 %v3091_v47, %v3090_v59  ;;  %v3192_v32 = vadd.f32 %v3191_v61, %v3190_v20  ;;  %v8179_v27 = vpop.f32.mrf.mxu0  ;;  %v3140_v9 = vmul.f32 %v9966_v16, %v9966_v16  ;;  %v3099_v51 = vsel %vm3039_vm3, %v9966_v16, 0.0 }
 0x21e   : > { %v3138_v13 = vmul.f32 %v9957_v3, %v9957_v3  ;;  %v3095_v18 = vsel %vm3039_vm3, %v9957_v3, 0.0  ;;  %v9984_v1 = vadd.f32 %v8179_v27, %v2744_v24 }
 0x21f   : > { %v3194_v35 = vadd.f32 %v3193_v5, %v3192_v32  ;;  %v3094_v60 = vadd.f32 %v3093_v48, %v3092_v52  ;;  %v2995_v53 = vpop.f32.mrf.mxu0  ;;  %v3201_v39 = vsel %vm3039_vm3, %v3140_v9, 0.0  ;;  %8219 = vmatpush3.bf16.msra.mxu0 %v8546_v2 }
 0x220   : > { %v9986_v36 = vadd.f32 %v2995_v53, %v2742_v8  ;;  %v3197_v33 = vsel %vm3039_vm3, %v3138_v13, 0.0  ;;  %v3141_v20 = vmul.f32 %v9984_v1, %v9984_v1  ;;  %v3101_v61 = vsel %vm3039_vm3, %v9984_v1, 0.0 }
 0x221   : > { %v3096_v0 = vadd.f32 %v3095_v18, %v3094_v60  ;;  %v3196_v22 = vadd.f32 %v3195_v58, %v3194_v35 }
 0x222   : > { %v3097_v26 = vsel %vm3039_vm3, %v9986_v36, 0.0  ;;  %v3139_v19 = vmul.f32 %v9986_v36, %v9986_v36  ;;  %v3203_v8 = vsel %vm3039_vm3, %v3141_v20, 0.0 }
 0x223   : > { %v3198_v25 = vadd.f32 %v3197_v33, %v3196_v22  ;;  %v3098_v50 = vadd.f32 %v3097_v26, %v3096_v0 }
 0x224   : > { %v3199_v59 = vsel %vm3039_vm3, %v3139_v19, 0.0 }
 0x225   : > { %v3100_v23 = vadd.f32 %v3099_v51, %v3098_v50  ;;  %v3200_v47 = vadd.f32 %v3199_v59, %v3198_v25 }
 0x227   : > { %v3102_v28 = vadd.f32 %v3101_v61, %v3100_v23  ;;  %v3202_v24 = vadd.f32 %v3201_v39, %v3200_v47 }
 0x229   : > { %v3103_v52 = vrot.slane %v3102_v28, 4  ;;  %v3204_v32 = vadd.f32 %v3203_v8, %v3202_v24 }
 0x22b   : > { %v3104_v27 = vadd.f32 %v3103_v52, %v3102_v28  ;;  %v3205_v5 = vrot.slane %v3204_v32, 4 }
 0x22d   : > { %v3105_v48 = vrot.slane %v3104_v27, 2  ;;  %v3206_v13 = vadd.f32 %v3205_v5, %v3204_v32 }
 0x22f   : > { %v3106_v35 = vadd.f32 %v3105_v48, %v3104_v27  ;;  %v3207_v60 = vrot.slane %v3206_v13, 2 }
 0x231   : > { %v3107_v53 = vrot.slane %v3106_v35, 1  ;;  %v3208_v30 = vadd.f32 %v3207_v60, %v3206_v13 }
 0x233   : > { %v3108_v58 = vadd.f32 %v3107_v53, %v3106_v35  ;;  %v3209_v18 = vrot.slane %v3208_v30, 1 }
 0x235   : > { %v10005_v0 = vmul.f32 0.00390625, %v3108_v58  ;;  %v3210_v22 = vadd.f32 %v3209_v18, %v3208_v30 }
 0x237   : > { %v3211_v2 = vmul.f32 0.00390625, %v3210_v22  ;;  %v3212_v9 = vmul.f32 %v10005_v0, %v10005_v0  ;;  %v3244_v33 = vsub.f32 %v9986_v36, %v10005_v0  ;;  %v3224_v19 = vsub.f32 %v9764_v42, %v10005_v0 }
 0x238   : > { %v3227_v50 = vsub.f32 %v9786_v12, %v10005_v0  ;;  %v3228_v51 = vsub.f32 %v9809_v44, %v10005_v0  ;;  %v3229_v20 = vsub.f32 %v9796_v41, %v10005_v0  ;;  %v3230_v59 = vsub.f32 %v9807_v49, %v10005_v0 }
 0x239   : > { %v3213_v26 = vsub.f32 %v3211_v2, %v3212_v9  ;;  %v3231_v36 = vsub.f32 %v9833_v57, %v10005_v0  ;;  %v3232_v23 = vsub.f32 %v9855_v31, %v10005_v0  ;;  %v3233_v42 = vsub.f32 %v9843_v29, %v10005_v0 }
 0x23a   : > { %v3234_v12 = vsub.f32 %v9853_v45, %v10005_v0  ;;  %v3235_v44 = vsub.f32 %v9875_v55, %v10005_v0  ;;  %v3236_v41 = vsub.f32 %v9897_v17, %v10005_v0  ;;  %v3237_v49 = vsub.f32 %v9885_v43, %v10005_v0  ;;  %v10050_v43 = vld [vmem:[%s11862_s2 + $0x38] sm:$0xff]  }
 0x23b   : > { %v3214_v25 = vmax.f32 %v3213_v26, 0.0  ;;  %v3238_v57 = vsub.f32 %v9895_v62, %v10005_v0  ;;  %v3239_v31 = vsub.f32 %v9917_v7, %v10005_v0  ;;  %v3240_v29 = vsub.f32 %v9936_v56, %v10005_v0  ;;  %8288 = vmatprep.subr.bf16.mxu0 %v10050_v43 }
 0x23c   : > { %v3241_v45 = vsub.f32 %v9924_v4, %v10005_v0  ;;  %v3242_v55 = vsub.f32 %v9934_v46, %v10005_v0  ;;  %v3243_v17 = vsub.f32 %v9957_v3, %v10005_v0  ;;  %v3245_v62 = vsub.f32 %v9966_v16, %v10005_v0 }
 0x23d   : > { %v3247_v47 = vadd.f32 1e-05, %v3214_v25  ;;  %v3246_v7 = vsub.f32 %v9984_v1, %v10005_v0  ;;  %v3215_v4 = vsub.f32 %v9636_v11, %v10005_v0  ;;  %v3216_v46 = vsub.f32 %v9664_v34, %v10005_v0 }
 0x23e   : > { %v3217_v56 = vsub.f32 %v9652_v15, %v10005_v0  ;;  %v3218_v3 = vsub.f32 %v9662_v21, %v10005_v0  ;;  %v3219_v16 = vsub.f32 %v9694_v37, %v10005_v0  ;;  %v3220_v1 = vsub.f32 %v9715_v6, %v10005_v0 }
 0x23f   : > { %8560 = vrsqrt.f32 %v3247_v47  ;;  %v3221_v39 = vsub.f32 %v9704_v10, %v10005_v0  ;;  %v3222_v11 = vsub.f32 %v9713_v63, %v10005_v0  ;;  %v3223_v34 = vsub.f32 %v9739_v40, %v10005_v0 }
 0x240   : > { %v3225_v15 = vsub.f32 %v9749_v14, %v10005_v0  ;;  %v3226_v21 = vsub.f32 %v9762_v54, %v10005_v0 }
 0x24c   : > { %v8561_v61 = vpop.eup %8560 }
 0x24d   : > { %v3278_v37 = vmul.f32 %v8561_v61, %v3244_v33  ;;  %v10079_v28 = vmul.f32 %v8561_v61, %v3215_v4  ;;  %v10081_v6 = vmul.f32 %v8561_v61, %v3216_v46  ;;  %v10083_v24 = vmul.f32 %v8561_v61, %v3217_v56 }
 0x24e   : > { %v10085_v10 = vmul.f32 %v8561_v61, %v3218_v3  ;;  %v10087_v8 = vmul.f32 %v8561_v61, %v3219_v16  ;;  %v10089_v63 = vmul.f32 %v8561_v61, %v3220_v1  ;;  %v10091_v40 = vmul.f32 %v8561_v61, %v3221_v39 }
 0x24f   : > { %v3342_v52 = vmin.f32 %v3278_v37, 0.0  ;;  %v10093_v14 = vmul.f32 %v8561_v61, %v3222_v11  ;;  %v10095_v32 = vmul.f32 %v8561_v61, %v3223_v34  ;;  %v10097_v54 = vmul.f32 %v8561_v61, %v3224_v19 }
 0x250   : > { %v10099_v27 = vmul.f32 %v8561_v61, %v3225_v15  ;;  %v10101_v5 = vmul.f32 %v8561_v61, %v3226_v21  ;;  %v10103_v48 = vmul.f32 %v8561_v61, %v3227_v50  ;;  %v10105_v35 = vmul.f32 %v8561_v61, %v3228_v51 }
 0x251   : > { %v3403_v13 = vmul.f32 1.442695, %v3342_v52  ;;  %v10107_v60 = vmul.f32 %v8561_v61, %v3229_v20  ;;  %v10109_v53 = vmul.f32 %v8561_v61, %v3230_v59  ;;  %v10111_v30 = vmul.f32 %v8561_v61, %v3231_v36 }
 0x252   : > { %v10113_v58 = vmul.f32 %v8561_v61, %v3232_v23  ;;  %v10115_v18 = vmul.f32 %v8561_v61, %v3233_v42  ;;  %v10117_v0 = vmul.f32 %v8561_v61, %v3234_v12  ;;  %v10119_v22 = vmul.f32 %v8561_v61, %v3235_v44 }
 0x253   : > { %8562 = vpow2.f32 %v3403_v13  ;;  %v10121_v2 = vmul.f32 %v8561_v61, %v3236_v41  ;;  %v10123_v9 = vmul.f32 %v8561_v61, %v3237_v49  ;;  %v10125_v33 = vmul.f32 %v8561_v61, %v3238_v57 }
 0x254   : > { %v10127_v26 = vmul.f32 %v8561_v61, %v3239_v31  ;;  %v10129_v19 = vmul.f32 %v8561_v61, %v3240_v29  ;;  %v10131_v25 = vmul.f32 %v8561_v61, %v3241_v45  ;;  %v10133_v50 = vmul.f32 %v8561_v61, %v3242_v55 }
 0x255   : > { %v10135_v51 = vmul.f32 %v8561_v61, %v3243_v17  ;;  %v10137_v20 = vmul.f32 %v8561_v61, %v3245_v62  ;;  %v10139_v59 = vmul.f32 %v8561_v61, %v3246_v7  ;;  %vm3310_vm4 = vcmp.gt.f32.partialorder %v3278_v37, 0.0 }
 0x256   : > { %v3313_v42 = vmin.f32 %v10079_v28, 0.0  ;;  %v3314_v47 = vmin.f32 %v10081_v6, 0.0  ;;  %v3315_v12 = vmin.f32 %v10083_v24, 0.0  ;;  %v3316_v41 = vmin.f32 %v10085_v10, 0.0 }
 0x257   : > { %v3317_v49 = vmin.f32 %v10087_v8, 0.0  ;;  %v3318_v57 = vmin.f32 %v10089_v63, 0.0  ;;  %v3319_v31 = vmin.f32 %v10091_v40, 0.0  ;;  %v3320_v17 = vmin.f32 %v10093_v14, 0.0 }
 0x258   : > { %v3345_v29 = vmul.f32 1.442695, %v3313_v42  ;;  %v3347_v45 = vmul.f32 1.442695, %v3314_v47  ;;  %v3349_v55 = vmul.f32 1.442695, %v3315_v12 }
 0x259   : > { %v3351_v62 = vmul.f32 1.442695, %v3316_v41  ;;  %v3321_v7 = vmin.f32 %v10095_v32, 0.0  ;;  %v3353_v4 = vmul.f32 1.442695, %v3317_v49  ;;  %v3322_v46 = vmin.f32 %v10097_v54, 0.0 }
 0x25a   : > { %8564 = vpow2.f32 %v3345_v29  ;;  %v3355_v56 = vmul.f32 1.442695, %v3318_v57  ;;  %v3323_v3 = vmin.f32 %v10099_v27, 0.0  ;;  %v3357_v16 = vmul.f32 1.442695, %v3319_v31 }
 0x25b   : > { %8566 = vpow2.f32 %v3347_v45  ;;  %v3324_v39 = vmin.f32 %v10101_v5, 0.0  ;;  %v3359_v61 = vmul.f32 1.442695, %v3320_v17  ;;  %v3325_v11 = vmin.f32 %v10103_v48, 0.0 }
 0x25c   : > { %8568 = vpow2.f32 %v3349_v55  ;;  %v3326_v34 = vmin.f32 %v10105_v35, 0.0  ;;  %v3361_v15 = vmul.f32 1.442695, %v3321_v7  ;;  %v3327_v21 = vmin.f32 %v10107_v60, 0.0 }
 0x25d   : > { %8570 = vpow2.f32 %v3351_v62  ;;  %v3363_v52 = vmul.f32 1.442695, %v3322_v46  ;;  %v3329_v13 = vmin.f32 %v10111_v30, 0.0  ;;  %vm3281_vm6 = vcmp.gt.f32.partialorder %v10079_v28, 0.0 }
 0x25e   : > { %8572 = vpow2.f32 %v3353_v4  ;;  %v3331_v42 = vmin.f32 %v10115_v18, 0.0  ;;  %v3332_v47 = vmin.f32 %v10117_v0, 0.0  ;;  %v3367_v12 = vmul.f32 1.442695, %v3324_v39 }
 0x25f   : > { %8574 = vpow2.f32 %v3355_v56  ;;  %vm3282_vm7 = vcmp.gt.f32.partialorder %v10081_v6, 0.0  ;;  %v3334_v41 = vmin.f32 %v10121_v2, 0.0  ;;  %v3369_v49 = vmul.f32 1.442695, %v3325_v11 }
 0x260   : > { %v8563_v36 = vpop.eup %8562  ;;  %8576 = vpow2.f32 %v3357_v16  ;;  %vm3283_vm8 = vcmp.gt.f32.partialorder %v10083_v24, 0.0  ;;  %v3335_v57 = vmin.f32 %v10123_v9, 0.0  ;;  %v3336_v31 = vmin.f32 %v10125_v33, 0.0 }
 0x261   : > { %v7267_v23 = vadd.f32 -1.0, %v8563_v36  ;;  %v3330_v36 = vmin.f32 %v10113_v58, 0.0  ;;  %8578 = vpow2.f32 %v3359_v61  ;;  %v3371_v29 = vmul.f32 1.442695, %v3326_v34 }
 0x262   : > { %8580 = vpow2.f32 %v3361_v15  ;;  %vm3284_vm9 = vcmp.gt.f32.partialorder %v10085_v10, 0.0  ;;  %v3337_v45 = vmin.f32 %v10127_v26, 0.0  ;;  %v3338_v55 = vmin.f32 %v10129_v19, 0.0 }
 0x263   : > { %v3470_v44 = vsel %vm3310_vm4, %v3278_v37, %v7267_v23  ;;  %v3328_v37 = vmin.f32 %v10109_v53, 0.0  ;;  %v3365_v23 = vmul.f32 1.442695, %v3323_v3  ;;  %8582 = vpow2.f32 %v3363_v52 }
 0x264   : > { %3503 = vst.msk [vmem:[#allocation3 + $0x171] sm:$0xff] %vm3039_vm3, %v3470_v44  ;;  %v3333_v44 = vmin.f32 %v10119_v22, 0.0  ;;  %v3373_v17 = vmul.f32 1.442695, %v3327_v21  ;;  %vm3285_vm10 = vcmp.gt.f32.partialorder %v10087_v8, 0.0  ;;  %v3339_v62 = vmin.f32 %v10131_v25, 0.0 }
 0x265   : > { %8584 = vpow2.f32 %v3365_v23  ;;  %v3340_v7 = vmin.f32 %v10133_v50, 0.0  ;;  %v3375_v4 = vmul.f32 1.442695, %v3328_v37  ;;  %vm3286_vm11 = vcmp.gt.f32.partialorder %v10089_v63, 0.0 }
 0x266   : > { %8586 = vpow2.f32 %v3367_v12  ;;  %v3341_v46 = vmin.f32 %v10135_v51, 0.0  ;;  %v3343_v56 = vmin.f32 %v10137_v20, 0.0  ;;  %v3377_v3 = vmul.f32 1.442695, %v3329_v13 }
 0x267   : > { %8588 = vpow2.f32 %v3369_v49  ;;  %v8565_v16 = vpop.eup %8564  ;;  %vm3287_vm12 = vcmp.gt.f32.partialorder %v10091_v40, 0.0  ;;  %v3379_v39 = vmul.f32 1.442695, %v3330_v36  ;;  %v3381_v61 = vmul.f32 1.442695, %v3331_v42 }
 0x268   : > { %8590 = vpow2.f32 %v3371_v29  ;;  %v8567_v11 = vpop.eup %8566  ;;  %vm3288_vm13 = vcmp.gt.f32.partialorder %v10093_v14, 0.0  ;;  %v3383_v34 = vmul.f32 1.442695, %v3332_v47  ;;  %v3385_v15 = vmul.f32 1.442695, %v3333_v44 }
 0x269   : > { %8592 = vpow2.f32 %v3373_v17  ;;  %v7238_v21 = vadd.f32 -1.0, %v8565_v16  ;;  %v8569_v37 = vpop.eup %8568  ;;  %vm3289_vm14 = vcmp.gt.f32.partialorder %v10095_v32, 0.0  ;;  %v3387_v52 = vmul.f32 1.442695, %v3334_v41 }
 0x26a   : > { %8594 = vpow2.f32 %v3375_v4  ;;  %v3389_v13 = vmul.f32 1.442695, %v3335_v57  ;;  %v7239_v23 = vadd.f32 -1.0, %v8567_v11  ;;  %v8571_v12 = vpop.eup %8570  ;;  %vm3290_vm15 = vcmp.gt.f32.partialorder %v10097_v54, 0.0 }
 0x26b   : > { %v3563_v1 = vld [vmem:[#allocation3 + $0x178] sm:$0x1]  ;;  %8596 = vpow2.f32 %v3377_v3  ;;  %v3391_v36 = vmul.f32 1.442695, %v3336_v31  ;;  %v7240_v42 = vadd.f32 -1.0, %v8569_v37  ;;  %v3441_v49 = vsel %vm3281_vm6, %v10079_v28, %v7238_v21  ;;  %v8573_v47 = vpop.eup %8572 }
 0x26c   : > { %3581 = vst.msk [vmem:[#allocation3 + $0x179] sm:$0x1] %vm3529_vm5, %v3563_v1  ;;  %v3344_v1 = vmin.f32 %v10139_v59, 0.0  ;;  %vm3291_vm0 = vcmp.gt.f32.partialorder %v10099_v27, 0.0  ;;  %8598 = vpow2.f32 %v3379_v39  ;;  %v3393_v44 = vmul.f32 1.442695, %v3337_v45  ;;  %v8575_v57 = vpop.eup %8574 }
 0x26d   : > { %v7241_v29 = vadd.f32 -1.0, %v8571_v12  ;;  %v3442_v41 = vsel %vm3282_vm7, %v10081_v6, %v7239_v23  ;;  %3474 = vst.msk [vmem:[#allocation3 + $0x19] sm:$0xff] %vm3039_vm3, %v3441_v49  ;;  %3506 = vst.msk [vmem:[#allocation3 + $0x1] sm:$0xff] %vm3039_vm3, %v3441_v49  ;;  %vm3292_vm1 = vcmp.gt.f32.partialorder %v10101_v5, 0.0  ;;  %8600 = vpow2.f32 %v3381_v61  ;;  %v8577_v45 = vpop.eup %8576 }
 0x26e   : > { %v3395_v31 = vmul.f32 1.442695, %v3338_v55  ;;  %v7242_v28 = vadd.f32 -1.0, %v8573_v47  ;;  %v3443_v17 = vsel %vm3283_vm8, %v10083_v24, %v7240_v42  ;;  %3475 = vst.msk [vmem:[#allocation3 + $0x21] sm:$0xff] %vm3039_vm3, %v3442_v41  ;;  %3507 = vst.msk [vmem:[#allocation3 + $0x9] sm:$0xff] %vm3039_vm3, %v3442_v41  ;;  %8602 = vpow2.f32 %v3383_v34  ;;  %v8579_v55 = vpop.eup %8578 }
 0x26f   : > { %v3397_v6 = vmul.f32 1.442695, %v3339_v62  ;;  %v7243_v4 = vadd.f32 -1.0, %v8575_v57  ;;  %v3444_v3 = vsel %vm3284_vm9, %v10085_v10, %v7241_v29  ;;  %3476 = vst.msk [vmem:[#allocation3 + $0x31] sm:$0xff] %vm3039_vm3, %v3443_v17  ;;  %8604 = vpow2.f32 %v3385_v15  ;;  %v8581_v61 = vpop.eup %8580 }
 0x270   : > { %v3399_v16 = vmul.f32 1.442695, %v3340_v7  ;;  %v7244_v39 = vadd.f32 -1.0, %v8577_v45  ;;  %v3445_v24 = vsel %vm3285_vm10, %v10087_v8, %v7242_v28  ;;  %3477 = vst.msk [vmem:[#allocation3 + $0x39] sm:$0xff] %vm3039_vm3, %v3444_v3  ;;  %8606 = vpow2.f32 %v3387_v52  ;;  %v8583_v34 = vpop.eup %8582 }
 0x271   : > { %v3401_v62 = vmul.f32 1.442695, %v3341_v46  ;;  %v7245_v11 = vadd.f32 -1.0, %v8579_v55  ;;  %v3446_v10 = vsel %vm3286_vm11, %v10089_v63, %v7243_v4  ;;  %3478 = vst.msk [vmem:[#allocation3 + $0x49] sm:$0xff] %vm3039_vm3, %v3445_v24  ;;  %8608 = vpow2.f32 %v3389_v13  ;;  %v10247_v4 = vld [vmem:[%s11862_s2 + $0x20] sm:$0xff]  }
 0x272   : > { %v3405_v7 = vmul.f32 1.442695, %v3343_v56  ;;  %v7246_v15 = vadd.f32 -1.0, %v8581_v61  ;;  %v3447_v8 = vsel %vm3287_vm12, %v10091_v40, %v7244_v39  ;;  %3479 = vst.msk [vmem:[#allocation3 + $0x51] sm:$0xff] %vm3039_vm3, %v3446_v10  ;;  %v8585_v21 = vpop.eup %8584  ;;  %8610 = vpow2.f32 %v3391_v36 }
 0x273   : > { %v3407_v46 = vmul.f32 1.442695, %v3344_v1  ;;  %v7247_v37 = vadd.f32 -1.0, %v8583_v34  ;;  %v3448_v63 = vsel %vm3288_vm13, %v10093_v14, %v7245_v11  ;;  %3480 = vst.msk [vmem:[#allocation3 + $0x61] sm:$0xff] %vm3039_vm3, %v3447_v8  ;;  %v8587_v56 = vpop.eup %8586  ;;  %vm3293_vm2 = vcmp.gt.f32.partialorder %v10103_v48, 0.0 }
 0x274   : > { %8612 = vpow2.f32 %v3393_v44  ;;  %v7248_v52 = vadd.f32 -1.0, %v8585_v21  ;;  %v3449_v40 = vsel %vm3289_vm14, %v10095_v32, %v7246_v15  ;;  %3481 = vst.msk [vmem:[#allocation3 + $0x69] sm:$0xff] %vm3039_vm3, %v3448_v63  ;;  %v3512_v13 = vld [vmem:[#allocation3 + $0x19] sm:$0x1]  ;;  %v3636_v1 = vld [vmem:[#allocation3 + $0x1] sm:$0xff]  ;;  %v8589_v12 = vpop.eup %8588  ;;  %vm3294_vm4 = vcmp.gt.f32.partialorder %v10105_v35, 0.0 }
 0x275   : > { %v3638_v23 = vld [vmem:[#allocation3 + $0x19] sm:$0xff]  ;;  %8614 = vpow2.f32 %v3395_v31  ;;  %v7249_v14 = vadd.f32 -1.0, %v8587_v56  ;;  %v3450_v36 = vsel %vm3290_vm15, %v10097_v54, %v7247_v37  ;;  %3482 = vst.msk [vmem:[#allocation3 + $0x79] sm:$0xff] %vm3039_vm3, %v3449_v40  ;;  %v3549_v42 = vld [vmem:[#allocation3 + $0x28] sm:$0x1]  ;;  %v3637_v32 = vld [vmem:[#allocation3 + $0x9] sm:$0xff]  ;;  %v8591_v47 = vpop.eup %8590 }
 0x276   : > { %3531 = vst.msk [vmem:[#allocation3 + $0x18] sm:$0x1] %vm3529_vm5, %v3512_v13  ;;  %v3639_v49 = vld [vmem:[#allocation3 + $0x21] sm:$0xff]  ;;  %8616 = vpow2.f32 %v3397_v6  ;;  %v7250_v44 = vadd.f32 -1.0, %v8589_v12  ;;  %v3451_v29 = vsel %vm3291_vm0, %v10099_v27, %v7248_v52  ;;  %3567 = vst.msk [vmem:[#allocation3 + $0x29] sm:$0x1] %vm3529_vm5, %v3549_v42  ;;  %v3668_v41 = vpack.c.bf16 %v3637_v32, %v3636_v1  ;;  %v8593_v31 = vpop.eup %8592 }
 0x277   : > { %3483 = vst.msk [vmem:[#allocation3 + $0x81] sm:$0xff] %vm3039_vm3, %v3450_v36  ;;  %v3640_v54 = vld [vmem:[#allocation3 + $0x31] sm:$0xff]  ;;  %v3511_v57 = vld [vmem:[#allocation3 + $0x1] sm:$0x1]  ;;  %8618 = vpow2.f32 %v3399_v16  ;;  %v7251_v28 = vadd.f32 -1.0, %v8591_v47  ;;  %v3452_v17 = vsel %vm3292_vm1, %v10101_v5, %v7249_v14  ;;  %3484 = vst.msk [vmem:[#allocation3 + $0x91] sm:$0xff] %vm3039_vm3, %v3451_v29  ;;  %v10241_v45 = vpack.c.bf16 %v3639_v49, %v3638_v23  ;;  %v8595_v3 = vpop.eup %8594 }
 0x278   : > { %v3641_v6 = vld [vmem:[#allocation3 + $0x39] sm:$0xff]  ;;  %3530 = vst.msk [vmem:[#allocation3] sm:$0x1] %vm3529_vm5, %v3511_v57  ;;  %v3513_v27 = vld [vmem:[#allocation3 + $0x31] sm:$0x1]  ;;  %8620 = vpow2.f32 %v3401_v62  ;;  %v7252_v55 = vadd.f32 -1.0, %v8593_v31  ;;  %v3453_v5 = vsel %vm3293_vm2, %v10103_v48, %v7250_v44  ;;  %8184 = vmatprep.mubr.msk.bf16.mxu1 %vm3039_vm3, %v3668_v41  ;;  %v8597_v24 = vpop.eup %8596 }
 0x279   : > { %3485 = vst.msk [vmem:[#allocation3 + $0x99] sm:$0xff] %vm3039_vm3, %v3452_v17  ;;  %v3514_v16 = vld [vmem:[#allocation3 + $0x49] sm:$0x1]  ;;  %v10254_v39 = vpack.c.bf16 %v3641_v6, %v3640_v54  ;;  %vm3295_vm6 = vcmp.gt.f32.partialorder %v10107_v60, 0.0  ;;  %8622 = vpow2.f32 %v3405_v7  ;;  %v7253_v61 = vadd.f32 -1.0, %v8595_v3  ;;  %3486 = vst.msk [vmem:[#allocation3 + $0xa9] sm:$0xff] %vm3039_vm3, %v3453_v5  ;;  %8185 = vmatmul.mubr.msk.bf16.vlgmr.msra.gmra.mxu1 %vm3039_vm3, %v10241_v45  ;;  %v8599_v11 = vpop.eup %8598 }
 0x27a   : > { %3532 = vst.msk [vmem:[#allocation3 + $0x30] sm:$0x1] %vm3529_vm5, %v3513_v27  ;;  %v3454_v62 = vsel %vm3294_vm4, %v10105_v35, %v7251_v28  ;;  %v3551_v48 = vld [vmem:[#allocation3 + $0x58] sm:$0x1]  ;;  %3533 = vst.msk [vmem:[#allocation3 + $0x48] sm:$0x1] %vm3529_vm5, %v3514_v16  ;;  %8624 = vpow2.f32 %v3407_v46  ;;  %v3455_v34 = vsel %vm3295_vm6, %v10107_v60, %v7252_v55  ;;  %8253 = vmatpush3.bf16.msra.mxu1 %v9976_v38  ;;  %v8601_v15 = vpop.eup %8600 }
 0x27b   : > { %vm3296_vm7 = vcmp.gt.f32.partialorder %v10109_v53, 0.0  ;;  %v7254_v10 = vadd.f32 -1.0, %v8597_v24  ;;  %3487 = vst.msk [vmem:[#allocation3 + $0xb1] sm:$0xff] %vm3039_vm3, %v3454_v62  ;;  %8188 = vmatprep.mubr.msk.bf16.mxu1 %vm3039_vm3, %v10254_v39  ;;  %v3515_v35 = vld [vmem:[#allocation3 + $0x61] sm:$0x1]  ;;  %vm3297_vm8 = vcmp.gt.f32.partialorder %v10111_v30, 0.0  ;;  %8254 = vmatprep.subr.bf16.mxu1 %v10247_v4  ;;  %v8603_v37 = vpop.eup %8602 }
 0x27c   : > { %3569 = vst.msk [vmem:[#allocation3 + $0x59] sm:$0x1] %vm3529_vm5, %v3551_v48  ;;  %v3548_v7 = vld [vmem:[#allocation3 + $0x10] sm:$0x1]  ;;  %vm3298_vm9 = vcmp.gt.f32.partialorder %v10113_v58, 0.0  ;;  %v7255_v8 = vadd.f32 -1.0, %v8599_v11  ;;  %v3456_v21 = vsel %vm3296_vm7, %v10109_v53, %v7253_v61  ;;  %v8605_v13 = vpop.eup %8604 }
 0x27d   : > { %3488 = vst.msk [vmem:[#allocation3 + $0xc1] sm:$0xff] %vm3039_vm3, %v3455_v34  ;;  %v3642_v60 = vld [vmem:[#allocation3 + $0x49] sm:$0xff]  ;;  %v3587_v46 = vld [vmem:[#allocation3 + $0x20] sm:$0xff]  ;;  %v10282_v38 = vld [vmem:[%s11862_s2 + $0x48] sm:$0xff]   ;;  %vm3299_vm10 = vcmp.gt.f32.partialorder %v10115_v18, 0.0  ;;  %v7256_v63 = vadd.f32 -1.0, %v8601_v15  ;;  %v3457_v53 = vsel %vm3297_vm8, %v10111_v30, %v7254_v10  ;;  %v8607_v36 = vpop.eup %8606 }
 0x27e   : > { %3534 = vst.msk [vmem:[#allocation3 + $0x60] sm:$0x1] %vm3529_vm5, %v3515_v35  ;;  %3566 = vst.msk [vmem:[#allocation3 + $0x11] sm:$0x1] %vm3529_vm5, %v3548_v7  ;;  %v3516_v56 = vld [vmem:[#allocation3 + $0x79] sm:$0x1]  ;;  %v3458_v23 = vsel %vm3298_vm9, %v10113_v58, %v7255_v8  ;;  %8255 = vmatpush3.bf16.msra.mxu1 %v10247_v4  ;;  %v8609_v29 = vpop.eup %8608 }
 0x27f   : > { %3489 = vst.msk [vmem:[#allocation3 + $0xc9] sm:$0xff] %vm3039_vm3, %v3456_v21  ;;  %v3643_v52 = vld [vmem:[#allocation3 + $0x51] sm:$0xff]  ;;  %vm3300_vm11 = vcmp.gt.f32.partialorder %v10117_v0, 0.0  ;;  %v7257_v1 = vadd.f32 -1.0, %v8603_v37  ;;  %3490 = vst.msk [vmem:[#allocation3 + $0xd9] sm:$0xff] %vm3039_vm3, %v3457_v53  ;;  %v3644_v14 = vld [vmem:[#allocation3 + $0x61] sm:$0xff]  ;;  %v3459_v32 = vsel %vm3299_vm10, %v10115_v18, %v7256_v63  ;;  %8324 = vmatprep.subr.bf16.mxu1 %v10282_v38  ;;  %v8611_v28 = vpop.eup %8610 }
 0x280   : > { %v3586_v40 = vld [vmem:[#allocation3 + $0x18] sm:$0xff]  ;;  %v3553_v12 = vld [vmem:[#allocation3 + $0x88] sm:$0x1]  ;;  %3535 = vst.msk [vmem:[#allocation3 + $0x78] sm:$0x1] %vm3529_vm5, %v3516_v56  ;;  %v3645_v30 = vld [vmem:[#allocation3 + $0x69] sm:$0xff]  ;;  %v10306_v57 = vpack.c.bf16 %v3643_v52, %v3642_v60 }
 0x281   : > { %vm3301_vm12 = vcmp.gt.f32.partialorder %v10119_v22, 0.0  ;;  %v7258_v42 = vadd.f32 -1.0, %v8605_v13  ;;  %3491 = vst.msk [vmem:[#allocation3 + $0xe1] sm:$0xff] %vm3039_vm3, %v3458_v23  ;;  %v3584_v58 = vld [vmem:[#allocation3] sm:$0xff]  ;;  %v3585_v49 = vld [vmem:[#allocation3 + $0x8] sm:$0xff]  ;;  %v10299_v47 = vpack.c.bf16 %v3587_v46, %v3586_v40  ;;  %v7259_v41 = vadd.f32 -1.0, %v8607_v36  ;;  %v8613_v55 = vpop.eup %8612 }
 0x282   : > { %3571 = vst.msk [vmem:[#allocation3 + $0x89] sm:$0x1] %vm3529_vm5, %v3553_v12  ;;  %v3517_v44 = vld [vmem:[#allocation3 + $0x91] sm:$0x1]  ;;  %v3460_v54 = vsel %vm3300_vm11, %v10117_v0, %v7257_v1  ;;  %v3616_v18 = vpack.c.bf16 %v3585_v49, %v3584_v58  ;;  %vm3302_vm13 = vcmp.gt.f32.partialorder %v10121_v2, 0.0  ;;  %v7260_v17 = vadd.f32 -1.0, %v8609_v29  ;;  %8189 = vmatmul.mubr.msk.bf16.gmra.mxu1 %vm3039_vm3, %v10306_v57  ;;  %v8615_v61 = vpop.eup %8614 }
 0x283   : > { %3492 = vst.msk [vmem:[#allocation3 + $0xf1] sm:$0xff] %vm3039_vm3, %v3459_v32  ;;  %v3588_v31 = vld [vmem:[#allocation3 + $0x30] sm:$0xff]  ;;  %v3461_v6 = vsel %vm3301_vm12, %v10119_v22, %v7258_v42  ;;  %3493 = vst.msk [vmem:[#allocation3 + $0xf9] sm:$0xff] %vm3039_vm3, %v3460_v54  ;;  %v3518_v0 = vld [vmem:[#allocation3 + $0xa9] sm:$0x1]  ;;  %v10315_v27 = vpack.c.bf16 %v3645_v30, %v3644_v14  ;;  %vm3303_vm14 = vcmp.gt.f32.partialorder %v10123_v9, 0.0  ;;  %v3462_v16 = vsel %vm3302_vm13, %v10121_v2, %v7259_v41  ;;  %v8617_v11 = vpop.eup %8616 }
 0x284   : > { %3536 = vst.msk [vmem:[#allocation3 + $0x90] sm:$0x1] %vm3529_vm5, %v3517_v44  ;;  %v3589_v4 = vld [vmem:[#allocation3 + $0x38] sm:$0xff]  ;;  %v10320_v3 = vld [vmem:[%s11862_s2 + $0x30] sm:$0xff]   ;;  %v7261_v5 = vadd.f32 -1.0, %v8611_v28  ;;  %8220 = vmatprep.mubr.msk.bf16.mxu0 %vm3039_vm3, %v3616_v18  ;;  %vm3304_vm15 = vcmp.gt.f32.partialorder %v10125_v33, 0.0  ;;  %v3463_v48 = vsel %vm3303_vm14, %v10123_v9, %v7260_v17  ;;  %v8619_v7 = vpop.eup %8618 }
 0x285   : > { %3494 = vst.msk [vmem:[#allocation3 + $0x109] sm:$0xff] %vm3039_vm3, %v3461_v6  ;;  %v3555_v22 = vld [vmem:[#allocation3 + $0xb8] sm:$0x1]  ;;  %v10329_v24 = vpack.c.bf16 %v3589_v4, %v3588_v31  ;;  %v7262_v62 = vadd.f32 -1.0, %v8613_v55  ;;  %3495 = vst.msk [vmem:[#allocation3 + $0x111] sm:$0xff] %vm3039_vm3, %v3462_v16  ;;  %8221 = vmatmul.mubr.msk.bf16.vlgmr.msra.gmra.mxu0 %vm3039_vm3, %v10299_v47  ;;  %8192 = vmatprep.mubr.msk.bf16.mxu1 %vm3039_vm3, %v10315_v27  ;;  %vm3305_vm0 = vcmp.gt.f32.partialorder %v10127_v26, 0.0  ;;  %v8621_v46 = vpop.eup %8620 }
 0x286   : > { %3537 = vst.msk [vmem:[#allocation3 + $0xa8] sm:$0x1] %vm3529_vm5, %v3518_v0  ;;  %3573 = vst.msk [vmem:[#allocation3 + $0xb9] sm:$0x1] %vm3529_vm5, %v3555_v22  ;;  %v3519_v2 = vld [vmem:[#allocation3 + $0xc1] sm:$0x1]  ;;  %v3464_v34 = vsel %vm3304_vm15, %v10125_v33, %v7261_v5  ;;  %8289 = vmatpush3.bf16.msra.mxu0 %v10050_v43  ;;  %v8623_v56 = vpop.eup %8622 }
 0x287   : > { %v7263_v10 = vadd.f32 -1.0, %v8615_v61  ;;  %3496 = vst.msk [vmem:[#allocation3 + $0x121] sm:$0xff] %vm3039_vm3, %v3463_v48  ;;  %8224 = vmatprep.mubr.msk.bf16.mxu0 %vm3039_vm3, %v10329_v24  ;;  %v3646_v9 = vld [vmem:[#allocation3 + $0x79] sm:$0xff]  ;;  %v10349_v35 = vld [vmem:[%s11862_s2 + $0x58] sm:$0xff]   ;;  %vm3306_vm1 = vcmp.gt.f32.partialorder %v10129_v19, 0.0  ;;  %v7264_v15 = vadd.f32 -1.0, %v8617_v11  ;;  %v3465_v33 = vsel %vm3305_vm0, %v10127_v26, %v7262_v62  ;;  %8290 = vmatprep.subr.bf16.mxu0 %v10320_v3  ;;  %v8625_v1 = vpop.eup %8624 }
 0x288   : > { %3538 = vst.msk [vmem:[#allocation3 + $0xc0] sm:$0x1] %vm3529_vm5, %v3519_v2  ;;  %v3520_v8 = vld [vmem:[#allocation3 + $0xd9] sm:$0x1]  ;;  %v3647_v21 = vld [vmem:[#allocation3 + $0x81] sm:$0xff]  ;;  %v3648_v60 = vld [vmem:[#allocation3 + $0x91] sm:$0xff] }
 0x289   : > { %3497 = vst.msk [vmem:[#allocation3 + $0x129] sm:$0xff] %vm3039_vm3, %v3464_v34  ;;  %vm3307_vm2 = vcmp.gt.f32.partialorder %v10131_v25, 0.0  ;;  %v7265_v43 = vadd.f32 -1.0, %v8619_v7  ;;  %v3466_v37 = vsel %vm3306_vm1, %v10129_v19, %v7263_v10  ;;  %3498 = vst.msk [vmem:[#allocation3 + $0x139] sm:$0xff] %vm3039_vm3, %v3465_v33  ;;  %v3557_v63 = vld [vmem:[#allocation3 + $0xe8] sm:$0x1]  ;;  %v10367_v14 = vpack.c.bf16 %v3647_v21, %v3646_v9 }
 0x28a   : > { %3539 = vst.msk [vmem:[#allocation3 + $0xd8] sm:$0x1] %vm3529_vm5, %v3520_v8  ;;  %v3590_v53 = vld [vmem:[#allocation3 + $0x48] sm:$0xff]  ;;  %v3649_v26 = vld [vmem:[#allocation3 + $0x99] sm:$0xff]  ;;  %vm3308_vm4 = vcmp.gt.f32.partialorder %v10133_v50, 0.0  ;;  %vm3309_vm6 = vcmp.gt.f32.partialorder %v10135_v51, 0.0  ;;  %v3467_v40 = vsel %vm3307_vm2, %v10131_v25, %v7264_v15  ;;  %8291 = vmatpush3.bf16.msra.mxu0 %v10320_v3 }
 0x28b   : > { %v7266_v52 = vadd.f32 -1.0, %v8621_v46  ;;  %3499 = vst.msk [vmem:[#allocation3 + $0x141] sm:$0xff] %vm3039_vm3, %v3466_v37  ;;  %v3592_v19 = vld [vmem:[#allocation3 + $0x60] sm:$0xff]  ;;  %v3521_v13 = vld [vmem:[#allocation3 + $0xf1] sm:$0x1]  ;;  %vm3311_vm7 = vcmp.gt.f32.partialorder %v10137_v20, 0.0  ;;  %v3468_v12 = vsel %vm3308_vm4, %v10133_v50, %v7265_v43  ;;  %v10377_v50 = vpack.c.bf16 %v3649_v26, %v3648_v60  ;;  %8360 = vmatprep.subr.bf16.mxu0 %v10349_v35  ;;  %8193 = vmatmul.mubr.msk.bf16.gmra.mxu1 %vm3039_vm3, %v10367_v14 }
 0x28c   : > { %3575 = vst.msk [vmem:[#allocation3 + $0xe9] sm:$0x1] %vm3529_vm5, %v3557_v63  ;;  %v7268_v23 = vadd.f32 -1.0, %v8623_v56  ;;  %v3591_v30 = vld [vmem:[#allocation3 + $0x50] sm:$0xff]  ;;  %3540 = vst.msk [vmem:[#allocation3 + $0xf0] sm:$0x1] %vm3529_vm5, %v3521_v13 }
 0x28d   : > { %3500 = vst.msk [vmem:[#allocation3 + $0x151] sm:$0xff] %vm3039_vm3, %v3467_v40  ;;  %v7269_v25 = vadd.f32 -1.0, %v8625_v1  ;;  %v3469_v36 = vsel %vm3309_vm6, %v10135_v51, %v7266_v52  ;;  %3501 = vst.msk [vmem:[#allocation3 + $0x159] sm:$0xff] %vm3039_vm3, %v3468_v12  ;;  %v3522_v42 = vld [vmem:[#allocation3 + $0x109] sm:$0x1]  ;;  %v10375_v32 = vpack.c.bf16 %v3591_v30, %v3590_v53  ;;  %vm3312_vm8 = vcmp.gt.f32.partialorder %v10139_v59, 0.0  ;;  %8196 = vmatprep.mubr.msk.bf16.mxu1 %vm3039_vm3, %v10377_v50 }
 0x28e   : > { %v3593_v58 = vld [vmem:[#allocation3 + $0x68] sm:$0xff]  ;;  %v3471_v49 = vsel %vm3311_vm7, %v10137_v20, %v7268_v23  ;;  %3502 = vst.msk [vmem:[#allocation3 + $0x169] sm:$0xff] %vm3039_vm3, %v3469_v36  ;;  %v3559_v44 = vld [vmem:[#allocation3 + $0x118] sm:$0x1]  ;;  %v3523_v20 = vld [vmem:[#allocation3 + $0x121] sm:$0x1] }
 0x28f   : > { %3541 = vst.msk [vmem:[#allocation3 + $0x108] sm:$0x1] %vm3529_vm5, %v3522_v42  ;;  %v10388_v51 = vpack.c.bf16 %v3593_v58, %v3592_v19  ;;  %v3472_v29 = vsel %vm3312_vm8, %v10139_v59, %v7269_v25  ;;  %3577 = vst.msk [vmem:[#allocation3 + $0x119] sm:$0x1] %vm3529_vm5, %v3559_v44  ;;  %8225 = vmatmul.mubr.msk.bf16.gmra.mxu0 %vm3039_vm3, %v10375_v32  ;;  %v3650_v59 = vld [vmem:[#allocation3 + $0xa9] sm:$0xff]  ;;  %v3651_v54 = vld [vmem:[#allocation3 + $0xb1] sm:$0xff] }
 0x290   : > { %3504 = vst.msk [vmem:[#allocation3 + $0x181] sm:$0xff] %vm3039_vm3, %v3471_v49  ;;  %3509 = vst.msk [vmem:[#allocation3 + $0x199] sm:$0xff] %vm3039_vm3, %v3471_v49  ;;  %v3524_v41 = vld [vmem:[#allocation3 + $0x139] sm:$0x1]  ;;  %v3652_v18 = vld [vmem:[#allocation3 + $0xc1] sm:$0xff]  ;;  %v10405_v4 = vpack.c.bf16 %v3651_v54, %v3650_v59  ;;  %vm6835_vm9 = vcmask 1041409  }
 0x291   : > { %3505 = vst.msk [vmem:[#allocation3 + $0x189] sm:$0xff] %vm3039_vm3, %v3472_v29  ;;  %3510 = vst.msk [vmem:[#allocation3 + $0x1a1] sm:$0xff] %vm3039_vm3, %v3472_v29  ;;  %8228 = vmatprep.mubr.msk.bf16.mxu0 %vm3039_vm3, %v10388_v51  ;;  %v3594_v28 = vld [vmem:[#allocation3 + $0x78] sm:$0xff]  ;;  %v3653_v17 = vld [vmem:[#allocation3 + $0xc9] sm:$0xff]  ;;  %vm6838_vm10 = vcmask 1042434   ;;  %vm6841_vm11 = vcmask 1043459  }
 0x292   : > { %3542 = vst.msk [vmem:[#allocation3 + $0x120] sm:$0x1] %vm3529_vm5, %v3523_v20  ;;  %v3561_v31 = vld [vmem:[#allocation3 + $0x148] sm:$0x1]  ;;  %3543 = vst.msk [vmem:[#allocation3 + $0x138] sm:$0x1] %vm3529_vm5, %v3524_v41  ;;  %v10410_v22 = vpack.c.bf16 %v3653_v17, %v3652_v18 }
 0x293   : > { %3579 = vst.msk [vmem:[#allocation3 + $0x149] sm:$0x1] %vm3529_vm5, %v3561_v31  ;;  %v3596_v6 = vld [vmem:[#allocation3 + $0x90] sm:$0xff]  ;;  %v3595_v3 = vld [vmem:[#allocation3 + $0x80] sm:$0xff]  ;;  %v3597_v61 = vld [vmem:[#allocation3 + $0x98] sm:$0xff]  ;;  %8197 = vmatmul.mubr.msk.bf16.gmra.mxu1 %vm3039_vm3, %v10405_v4  ;;  %vm6844_vm12 = vcmask 1044484  }
 0x294   : > { %v3525_v0 = vld [vmem:[#allocation3 + $0x151] sm:$0x1]  ;;  %v3550_v55 = vld [vmem:[#allocation3 + $0x40] sm:$0x1]  ;;  %v10408_v16 = vpack.c.bf16 %v3595_v3, %v3594_v28  ;;  %v10416_v2 = vpack.c.bf16 %v3597_v61, %v3596_v6  ;;  %8200 = vmatprep.mubr.msk.bf16.mxu1 %vm3039_vm3, %v10410_v22  ;;  %v3655_v9 = vld [vmem:[#allocation3 + $0xe1] sm:$0xff]  ;;  %vm6847_vm13 = vcmask 1045509  }
 0x295   : > { %3544 = vst.msk [vmem:[#allocation3 + $0x150] sm:$0x1] %vm3529_vm5, %v3525_v0  ;;  %v3526_v5 = vld [vmem:[#allocation3 + $0x169] sm:$0x1]  ;;  %3568 = vst.msk [vmem:[#allocation3 + $0x41] sm:$0x1] %vm3529_vm5, %v3550_v55 }
 0x296   : > { %3545 = vst.msk [vmem:[#allocation3 + $0x168] sm:$0x1] %vm3529_vm5, %v3526_v5  ;;  %v3654_v34 = vld [vmem:[#allocation3 + $0xd9] sm:$0xff]  ;;  %v3656_v7 = vld [vmem:[#allocation3 + $0xf1] sm:$0xff]  ;;  %v3552_v15 = vld [vmem:[#allocation3 + $0x70] sm:$0x1] }
 0x297   : > { %v3527_v62 = vld [vmem:[#allocation3 + $0x181] sm:$0x1]  ;;  %v3528_v48 = vld [vmem:[#allocation3 + $0x199] sm:$0x1]  ;;  %8229 = vmatmul.mubr.msk.bf16.gmra.mxu0 %vm3039_vm3, %v10408_v16  ;;  %v3598_v33 = vld [vmem:[#allocation3 + $0xa8] sm:$0xff]  ;;  %v10430_v46 = vpack.c.bf16 %v3655_v9, %v3654_v34  ;;  %vm6850_vm14 = vcmask 1046534  }
 0x298   : > { %v3564_v11 = vld [vmem:[#allocation3 + $0x190] sm:$0x1]  ;;  %v3565_v10 = vld [vmem:[#allocation3 + $0x1a8] sm:$0x1]  ;;  %3546 = vst.msk [vmem:[#allocation3 + $0x180] sm:$0x1] %vm3529_vm5, %v3527_v62  ;;  %8232 = vmatprep.mubr.msk.bf16.mxu0 %vm3039_vm3, %v10416_v2 }
 0x299   : > { %3547 = vst.msk [vmem:[#allocation3 + $0x198] sm:$0x1] %vm3529_vm5, %v3528_v48  ;;  %3582 = vst.msk [vmem:[#allocation3 + $0x191] sm:$0x1] %vm3529_vm5, %v3564_v11  ;;  %v3657_v8 = vld [vmem:[#allocation3 + $0xf9] sm:$0xff]  ;;  %v3599_v43 = vld [vmem:[#allocation3 + $0xb0] sm:$0xff] }
 0x29a   : > { %3583 = vst.msk [vmem:[#allocation3 + $0x1a9] sm:$0x1] %vm3529_vm5, %v3565_v10  ;;  %3570 = vst.msk [vmem:[#allocation3 + $0x71] sm:$0x1] %vm3529_vm5, %v3552_v15  ;;  %v3554_v21 = vld [vmem:[#allocation3 + $0xa0] sm:$0x1]  ;;  %v10432_v63 = vpack.c.bf16 %v3599_v43, %v3598_v33  ;;  %v10434_v53 = vpack.c.bf16 %v3657_v8, %v3656_v7 }
 0x29b   : > { %v3600_v60 = vld [vmem:[#allocation3 + $0xc0] sm:$0xff]  ;;  %3572 = vst.msk [vmem:[#allocation3 + $0xa1] sm:$0x1] %vm3529_vm5, %v3554_v21  ;;  %v3556_v37 = vld [vmem:[#allocation3 + $0xd0] sm:$0x1]  ;;  %v3601_v26 = vld [vmem:[#allocation3 + $0xc8] sm:$0xff]  ;;  %8201 = vmatmul.mubr.msk.bf16.gmra.mxu1 %vm3039_vm3, %v10430_v46 }
 0x29c   : > { %3574 = vst.msk [vmem:[#allocation3 + $0xd1] sm:$0x1] %vm3529_vm5, %v3556_v37  ;;  %v10439_v56 = vpack.c.bf16 %v3601_v26, %v3600_v60  ;;  %v3558_v52 = vld [vmem:[#allocation3 + $0x100] sm:$0x1]  ;;  %8204 = vmatprep.mubr.msk.bf16.mxu1 %vm3039_vm3, %v10434_v53  ;;  %v3560_v40 = vld [vmem:[#allocation3 + $0x130] sm:$0x1] }
 0x29d   : > { %3576 = vst.msk [vmem:[#allocation3 + $0x101] sm:$0x1] %vm3529_vm5, %v3558_v52  ;;  %3578 = vst.msk [vmem:[#allocation3 + $0x131] sm:$0x1] %vm3529_vm5, %v3560_v40  ;;  %v3658_v19 = vld [vmem:[#allocation3 + $0x109] sm:$0xff]  ;;  %v3659_v13 = vld [vmem:[#allocation3 + $0x111] sm:$0xff] }
 0x29e   : > { %v3562_v1 = vld [vmem:[#allocation3 + $0x160] sm:$0x1]  ;;  %v3602_v23 = vld [vmem:[#allocation3 + $0xd8] sm:$0xff]  ;;  %v3660_v12 = vld [vmem:[#allocation3 + $0x121] sm:$0xff]  ;;  %v10450_v36 = vpack.c.bf16 %v3659_v13, %v3658_v19  ;;  %vm6853_vm15 = vcmask 1047559   ;;  %vm6666_vm0 = vcmask 64512  }
 0x29f   : > { %8233 = vmatmul.mubr.msk.bf16.gmra.mxu0 %vm3039_vm3, %v10432_v63  ;;  %v3661_v30 = vld [vmem:[#allocation3 + $0x129] sm:$0xff]  ;;  %3580 = vst.msk [vmem:[#allocation3 + $0x161] sm:$0x1] %vm3529_vm5, %v3562_v1  ;;  %v3603_v42 = vld [vmem:[#allocation3 + $0xe0] sm:$0xff]  ;;  %v3605_v44 = vld [vmem:[#allocation3 + $0xf8] sm:$0xff]  ;;  %vm8645_vm5 = vmmov 0  }
 0x2a0   : > { %8236 = vmatprep.mubr.msk.bf16.mxu0 %vm3039_vm3, %v10439_v56  ;;  %v3604_v25 = vld [vmem:[#allocation3 + $0xf0] sm:$0xff]  ;;  %v10452_v58 = vpack.c.bf16 %v3603_v42, %v3602_v23  ;;  %v10454_v49 = vpack.c.bf16 %v3661_v30, %v3660_v12  ;;  %v3662_v20 = vld [vmem:[#allocation3 + $0x139] sm:$0xff]  ;;  %v3663_v59 = vld [vmem:[#allocation3 + $0x141] sm:$0xff]  ;;  %vm6982_vm1 = vcmask 523264   ;;  %vm6984_vm2 = vcmask 785408  }
 0x2a1   : > { %v10458_v29 = vpack.c.bf16 %v3605_v44, %v3604_v25  ;;  %v3606_v41 = vld [vmem:[#allocation3 + $0x108] sm:$0xff]  ;;  %v3664_v54 = vld [vmem:[#allocation3 + $0x151] sm:$0xff]  ;;  %v3665_v18 = vld [vmem:[#allocation3 + $0x159] sm:$0xff]  ;;  %v10466_v28 = vpack.c.bf16 %v3663_v59, %v3662_v20 }
 0x2a2   : > { %v3608_v31 = vld [vmem:[#allocation3 + $0x120] sm:$0xff]  ;;  %v3607_v17 = vld [vmem:[#allocation3 + $0x110] sm:$0xff]  ;;  %v10470_v0 = vpack.c.bf16 %v3665_v18, %v3664_v54  ;;  %v3609_v3 = vld [vmem:[#allocation3 + $0x128] sm:$0xff] }
 0x2a3   : > { %8205 = vmatmul.mubr.msk.bf16.gmra.mxu1 %vm3039_vm3, %v10450_v36  ;;  %v10468_v6 = vpack.c.bf16 %v3607_v17, %v3606_v41  ;;  %v10474_v55 = vpack.c.bf16 %v3609_v3, %v3608_v31  ;;  %v3666_v5 = vld [vmem:[#allocation3 + $0x169] sm:$0xff]  ;;  %v3667_v61 = vld [vmem:[#allocation3 + $0x171] sm:$0xff]  ;;  %v3611_v34 = vld [vmem:[#allocation3 + $0x140] sm:$0xff] }
 0x2a4   : > { %8208 = vmatprep.mubr.msk.bf16.mxu1 %vm3039_vm3, %v10454_v49  ;;  %v3610_v62 = vld [vmem:[#allocation3 + $0x138] sm:$0xff]  ;;  %v4132_v48 = vld [vmem:[#allocation3 + $0xa] sm:$0xff]  ;;  %v10482_v10 = vpack.c.bf16 %v3667_v61, %v3666_v5  ;;  %v4131_v9 = vld [vmem:[#allocation3 + $0x2] sm:$0xff] }
 0x2a5   : > { %v3612_v11 = vld [vmem:[#allocation3 + $0x150] sm:$0xff]  ;;  %v10484_v7 = vpack.c.bf16 %v3611_v34, %v3610_v62  ;;  %v3613_v15 = vld [vmem:[#allocation3 + $0x158] sm:$0xff]  ;;  %v4163_v33 = vpack.c.bf16 %v4132_v48, %v4131_v9  ;;  %v4134_v21 = vld [vmem:[#allocation3 + $0x22] sm:$0xff] }
 0x2a6   : > { %v10488_v8 = vpack.c.bf16 %v3613_v15, %v3612_v11  ;;  %v3614_v60 = vld [vmem:[#allocation3 + $0x168] sm:$0xff]  ;;  %v4133_v43 = vld [vmem:[#allocation3 + $0x1a] sm:$0xff]  ;;  %v3615_v26 = vld [vmem:[#allocation3 + $0x170] sm:$0xff] }
 0x2a7   : > { %8237 = vmatmul.mubr.msk.bf16.gmra.mxu0 %vm3039_vm3, %v10452_v58  ;;  %v4136_v37 = vld [vmem:[#allocation3 + $0x3a] sm:$0xff]  ;;  %v10495_v52 = vpack.c.bf16 %v4134_v21, %v4133_v43  ;;  %v10497_v40 = vpack.c.bf16 %v3615_v26, %v3614_v60  ;;  %v4135_v19 = vld [vmem:[#allocation3 + $0x32] sm:$0xff]  ;;  %v4140_v30 = vld [vmem:[#allocation3 + $0x6a] sm:$0xff] }
 0x2a8   : > { %8240 = vmatprep.mubr.msk.bf16.mxu0 %vm3039_vm3, %v10458_v29  ;;  %v8551_v13 = vld [vmem:[%s11862_s2 + $0x40] sm:$0xff]   ;;  %v10504_v1 = vpack.c.bf16 %v4136_v37, %v4135_v19  ;;  %v10516_v23 = vld [vmem:[%s11862_s2 + $0x68] sm:$0xff]   ;;  %v4139_v44 = vld [vmem:[#allocation3 + $0x62] sm:$0xff] }
 0x2a9   : > { %v4138_v12 = vld [vmem:[#allocation3 + $0x52] sm:$0xff]  ;;  %v4137_v25 = vld [vmem:[#allocation3 + $0x4a] sm:$0xff]  ;;  %v4142_v20 = vld [vmem:[#allocation3 + $0x82] sm:$0xff] }
 0x2aa   : > { %v10518_v42 = vpack.c.bf16 %v4138_v12, %v4137_v25  ;;  %v10538_v59 = vld [vmem:[%s11862_s2 + $0x78] sm:$0xff]   ;;  %v4144_v41 = vld [vmem:[#allocation3 + $0x9a] sm:$0xff]  ;;  %v4143_v31 = vld [vmem:[#allocation3 + $0x92] sm:$0xff] }
 0x2ab   : > { %8209 = vmatmul.mubr.msk.bf16.gmra.mxu1 %vm3039_vm3, %v10466_v28  ;;  %v4141_v54 = vld [vmem:[#allocation3 + $0x7a] sm:$0xff]  ;;  %v10542_v17 = vpack.c.bf16 %v4144_v41, %v4143_v31  ;;  %v4148_v3 = vld [vmem:[#allocation3 + $0xca] sm:$0xff]  ;;  %v4147_v62 = vld [vmem:[#allocation3 + $0xc2] sm:$0xff] }
 0x2ac   : > { %8212 = vmatprep.mubr.msk.bf16.mxu1 %vm3039_vm3, %v10470_v0  ;;  %v10540_v18 = vpack.c.bf16 %v4142_v20, %v4141_v54  ;;  %v4145_v5 = vld [vmem:[#allocation3 + $0xaa] sm:$0xff]  ;;  %v10555_v48 = vpack.c.bf16 %v4148_v3, %v4147_v62  ;;  %v4150_v11 = vld [vmem:[#allocation3 + $0xe2] sm:$0xff]  ;;  %v4152_v34 = vld [vmem:[#allocation3 + $0xfa] sm:$0xff] }
 0x2ad   : > { %v4149_v9 = vld [vmem:[#allocation3 + $0xda] sm:$0xff]  ;;  %v4154_v60 = vld [vmem:[#allocation3 + $0x112] sm:$0xff]  ;;  %v4156_v43 = vld [vmem:[#allocation3 + $0x12a] sm:$0xff] }
 0x2ae   : > { %v10565_v15 = vpack.c.bf16 %v4150_v11, %v4149_v9  ;;  %v4153_v37 = vld [vmem:[#allocation3 + $0x10a] sm:$0xff]  ;;  %v4155_v19 = vld [vmem:[#allocation3 + $0x122] sm:$0xff]  ;;  %v4157_v25 = vld [vmem:[#allocation3 + $0x13a] sm:$0xff] }
 0x2af   : > { %8241 = vmatmul.mubr.msk.bf16.gmra.mxu0 %vm3039_vm3, %v10468_v6  ;;  %v4174_v26 = vpack.c.bf16 %v4154_v60, %v4153_v37  ;;  %v4158_v12 = vld [vmem:[#allocation3 + $0x142] sm:$0xff]  ;;  %v4162_v41 = vld [vmem:[#allocation3 + $0x172] sm:$0xff]  ;;  %v4161_v54 = vld [vmem:[#allocation3 + $0x16a] sm:$0xff] }
 0x2b0   : > { %8244 = vmatprep.mubr.msk.bf16.mxu0 %vm3039_vm3, %v10474_v55  ;;  %v4178_v31 = vpack.c.bf16 %v4162_v41, %v4161_v54  ;;  %v4468_v3 = vld [vmem:[#allocation3 + $0x188] sm:$0xff]  ;;  %v8555_v62 = vld [vmem:[%s11862_s2 + $0x60] sm:$0xff]   ;;  %v8558_v11 = vld [vmem:[%s11862_s2 + $0x70] sm:$0xff]  }
 0x2b3   : > { %8213 = vmatmul.mubr.msk.bf16.gmra.mxu1 %vm3039_vm3, %v10482_v10 }
 0x2b4   : > { %8256 = vmatprep.mubr.msk.bf16.mxu1 %vm3039_vm3, %v4163_v33  ;;  %v4151_v33 = vld [vmem:[#allocation3 + $0xf2] sm:$0xff] }
 0x2b5   : > { %v10567_v21 = vpack.c.bf16 %v4152_v34, %v4151_v33 }
 0x2b7   : > { %8245 = vmatmul.mubr.msk.bf16.gmra.mxu0 %vm3039_vm3, %v10484_v7 }
 0x2b8   : > { %8248 = vmatprep.mubr.msk.bf16.mxu0 %vm3039_vm3, %v10488_v8 }
 0x2bb   : > { %8257 = vmatmul.mubr.msk.bf16.vlgmr.msra.gmra.mxu1 %vm3039_vm3, %v10495_v52 }
 0x2bc   : > { %8325 = vmatpush3.bf16.msra.mxu1 %v10282_v38  ;;  %8260 = vmatprep.mubr.msk.bf16.mxu1 %vm3039_vm3, %v10504_v1  ;;  %v10521_v38 = vpack.c.bf16 %v4140_v30, %v4139_v44  ;;  %v4160_v30 = vld [vmem:[#allocation3 + $0x15a] sm:$0xff]  ;;  %v4176_v44 = vpack.c.bf16 %v4158_v12, %v4157_v25 }
 0x2bd   : > { %8326 = vmatprep.subr.bf16.mxu1 %v8551_v13  ;;  %v5676_v25 = vld [vmem:[#allocation3 + $0xd9] sm:$0xff] }
 0x2bf   : > { %8249 = vmatmul.mubr.msk.bf16.gmra.mxu0 %vm3039_vm3, %v10497_v40 }
 0x2c0   : > { %8292 = vmatprep.mubr.msk.bf16.mxu0 %vm3039_vm3, %v10299_v47  ;;  %8327 = vmatpush3.bf16.msra.mxu1 %v8551_v13  ;;  %v8554_v47 = vld [vmem:[%s11862_s2 + $0x50] sm:$0xff]   ;;  %v4175_v13 = vpack.c.bf16 %v4156_v43, %v4155_v19 }
 0x2c1   : > { %8396 = vmatprep.subr.bf16.mxu1 %v10516_v23 }
 0x2c3   : > { %8261 = vmatmul.mubr.msk.bf16.gmra.mxu1 %vm3039_vm3, %v10518_v42 }
 0x2c4   : > { %8264 = vmatprep.mubr.msk.bf16.mxu1 %vm3039_vm3, %v10521_v38 }
 0x2c7   : > { %8293 = vmatmul.mubr.msk.bf16.vlgmr.msra.gmra.mxu0 %vm3039_vm3, %v10329_v24 }
 0x2c8   : > { %8296 = vmatprep.mubr.msk.bf16.mxu0 %vm3039_vm3, %v10375_v32  ;;  %8361 = vmatpush3.bf16.msra.mxu0 %v10349_v35  ;;  %v4146_v35 = vld [vmem:[#allocation3 + $0xb2] sm:$0xff] }
 0x2c9   : > { %8362 = vmatprep.subr.bf16.mxu0 %v8554_v47  ;;  %v10553_v61 = vpack.c.bf16 %v4146_v35, %v4145_v5  ;;  %v4467_v35 = vld [vmem:[#allocation3 + $0x180] sm:$0xff] }
 0x2ca   : > { %v10596_v5 = vpack.c.bf16 %v4468_v3, %v4467_v35 }
 0x2cb   : > { %8265 = vmatmul.mubr.msk.bf16.gmra.mxu1 %vm3039_vm3, %v10540_v18 }
 0x2cc   : > { %8363 = vmatpush3.bf16.msra.mxu0 %v8554_v47  ;;  %8268 = vmatprep.mubr.msk.bf16.mxu1 %vm3039_vm3, %v10542_v17  ;;  %v4159_v47 = vld [vmem:[#allocation3 + $0x152] sm:$0xff] }
 0x2cd   : > { %8432 = vmatprep.subr.bf16.mxu0 %v10538_v59  ;;  %v4177_v20 = vpack.c.bf16 %v4160_v30, %v4159_v47  ;;  %v5678_v47 = vld [vmem:[#allocation3 + $0xf1] sm:$0xff] }
 0x2cf   : > { %8297 = vmatmul.mubr.msk.bf16.gmra.mxu0 %vm3039_vm3, %v10388_v51 }
 0x2d0   : > { %8300 = vmatprep.mubr.msk.bf16.mxu0 %vm3039_vm3, %v10408_v16 }
 0x2d3   : > { %8269 = vmatmul.mubr.msk.bf16.gmra.mxu1 %vm3039_vm3, %v10553_v61 }
 0x2d4   : > { %8272 = vmatprep.mubr.msk.bf16.mxu1 %vm3039_vm3, %v10555_v48 }
 0x2d7   : > { %8301 = vmatmul.mubr.msk.bf16.gmra.mxu0 %vm3039_vm3, %v10416_v2 }
 0x2d8   : > { %8304 = vmatprep.mubr.msk.bf16.mxu0 %vm3039_vm3, %v10432_v63 }
 0x2db   : > { %8273 = vmatmul.mubr.msk.bf16.gmra.mxu1 %vm3039_vm3, %v10565_v15 }
 0x2dc   : > { %8276 = vmatprep.mubr.msk.bf16.mxu1 %vm3039_vm3, %v10567_v21 }
 0x2df   : > { %8305 = vmatmul.mubr.msk.bf16.gmra.mxu0 %vm3039_vm3, %v10439_v56 }
 0x2e0   : > { %8308 = vmatprep.mubr.msk.bf16.mxu0 %vm3039_vm3, %v10452_v58 }
 0x2e3   : > { %8277 = vmatmul.mubr.msk.bf16.gmra.mxu1 %vm3039_vm3, %v4174_v26 }
 0x2e4   : > { %8280 = vmatprep.mubr.msk.bf16.mxu1 %vm3039_vm3, %v4175_v13 }
 0x2e7   : > { %8309 = vmatmul.mubr.msk.bf16.gmra.mxu0 %vm3039_vm3, %v10458_v29 }
 0x2e8   : > { %8312 = vmatprep.mubr.msk.bf16.mxu0 %vm3039_vm3, %v10468_v6 }
 0x2eb   : > { %8281 = vmatmul.mubr.msk.bf16.gmra.mxu1 %vm3039_vm3, %v4176_v44 }
 0x2ec   : > { %8284 = vmatprep.mubr.msk.bf16.mxu1 %vm3039_vm3, %v4177_v20 }
 0x2ef   : > { %8313 = vmatmul.mubr.msk.bf16.gmra.mxu0 %vm3039_vm3, %v10474_v55 }
 0x2f0   : > { %8316 = vmatprep.mubr.msk.bf16.mxu0 %vm3039_vm3, %v10484_v7 }
 0x2f3   : > { %8285 = vmatmul.mubr.msk.bf16.gmra.mxu1 %vm3039_vm3, %v4178_v31 }
 0x2f4   : > { %8328 = vmatprep.mubr.msk.bf16.mxu1 %vm3039_vm3, %v10241_v45  ;;  %v8557_v45 = vld [vmem:[%s11862_s2 + $0x88] sm:$0xff]  }
 0x2f7   : > { %8317 = vmatmul.mubr.msk.bf16.gmra.mxu0 %vm3039_vm3, %v10488_v8 }
 0x2f8   : > { %8320 = vmatprep.mubr.msk.bf16.mxu0 %vm3039_vm3, %v10497_v40 }
 0x2fb   : > { %8329 = vmatmul.mubr.msk.bf16.vlgmr.msra.gmra.mxu1 %vm3039_vm3, %v10254_v39 }
 0x2fc   : > { %8397 = vmatpush3.bf16.msra.mxu1 %v10516_v23  ;;  %8332 = vmatprep.mubr.msk.bf16.mxu1 %vm3039_vm3, %v10306_v57 }
 0x2fd   : > { %8398 = vmatprep.subr.bf16.mxu1 %v8555_v62 }
 0x2ff   : > { %8321 = vmatmul.mubr.msk.bf16.gmra.mxu0 %vm3039_vm3, %v10596_v5 }
 0x300   : > { %8364 = vmatprep.mubr.msk.bf16.mxu0 %vm3039_vm3, %v10495_v52  ;;  %8399 = vmatpush3.bf16.msra.mxu1 %v8555_v62 }
 0x301   : > { %8468 = vmatprep.subr.bf16.mxu1 %v8557_v45 }
 0x303   : > { %8333 = vmatmul.mubr.msk.bf16.gmra.mxu1 %vm3039_vm3, %v10315_v27 }
 0x304   : > { %8336 = vmatprep.mubr.msk.bf16.mxu1 %vm3039_vm3, %v10367_v14 }
 0x307   : > { %8365 = vmatmul.mubr.msk.bf16.vlgmr.msra.gmra.mxu0 %vm3039_vm3, %v10504_v1 }
 0x308   : > { %8368 = vmatprep.mubr.msk.bf16.mxu0 %vm3039_vm3, %v10518_v42  ;;  %8433 = vmatpush3.bf16.msra.mxu0 %v10538_v59 }
 0x309   : > { %8434 = vmatprep.subr.bf16.mxu0 %v8558_v11 }
 0x30b   : > { %8337 = vmatmul.mubr.msk.bf16.gmra.mxu1 %vm3039_vm3, %v10377_v50 }
 0x30c   : > { %8435 = vmatpush3.bf16.msra.mxu0 %v8558_v11  ;;  %8340 = vmatprep.mubr.msk.bf16.mxu1 %vm3039_vm3, %v10405_v4 }
 0x30f   : > { %8369 = vmatmul.mubr.msk.bf16.gmra.mxu0 %vm3039_vm3, %v10521_v38 }
 0x310   : > { %8372 = vmatprep.mubr.msk.bf16.mxu0 %vm3039_vm3, %v10540_v18 }
 0x313   : > { %8341 = vmatmul.mubr.msk.bf16.gmra.mxu1 %vm3039_vm3, %v10410_v22 }
 0x314   : > { %8344 = vmatprep.mubr.msk.bf16.mxu1 %vm3039_vm3, %v10430_v46  ;;  %v4773_v46 = vld [vmem:[#allocation3 + $0x181] sm:$0xff] }
 0x317   : > { %8373 = vmatmul.mubr.msk.bf16.gmra.mxu0 %vm3039_vm3, %v10542_v17 }
 0x318   : > { %8376 = vmatprep.mubr.msk.bf16.mxu0 %vm3039_vm3, %v10553_v61 }
 0x31b   : > { %8345 = vmatmul.mubr.msk.bf16.gmra.mxu1 %vm3039_vm3, %v10434_v53  ;;  %v4774_v53 = vld [vmem:[#allocation3 + $0x189] sm:$0xff] }
 0x31c   : > { %8348 = vmatprep.mubr.msk.bf16.mxu1 %vm3039_vm3, %v10450_v36  ;;  %v10662_v36 = vpack.c.bf16 %v4774_v53, %v4773_v46 }
 0x31f   : > { %8377 = vmatmul.mubr.msk.bf16.gmra.mxu0 %vm3039_vm3, %v10555_v48 }
 0x320   : > { %8380 = vmatprep.mubr.msk.bf16.mxu0 %vm3039_vm3, %v10565_v15 }
 0x323   : > { %8349 = vmatmul.mubr.msk.bf16.gmra.mxu1 %vm3039_vm3, %v10454_v49  ;;  %v5080_v49 = vld [vmem:[#allocation3 + $0x18a] sm:$0xff] }
 0x324   : > { %8352 = vmatprep.mubr.msk.bf16.mxu1 %vm3039_vm3, %v10466_v28  ;;  %v5079_v28 = vld [vmem:[#allocation3 + $0x182] sm:$0xff] }
 0x327   : > { %8381 = vmatmul.mubr.msk.bf16.gmra.mxu0 %vm3039_vm3, %v10567_v21 }
 0x328   : > { %8384 = vmatprep.mubr.msk.bf16.mxu0 %vm3039_vm3, %v4174_v26 }
 0x32b   : > { %8353 = vmatmul.mubr.msk.bf16.gmra.mxu1 %vm3039_vm3, %v10470_v0  ;;  %v10670_v0 = vpack.c.bf16 %v5080_v49, %v5079_v28  ;;  %v5680_v49 = vld [vmem:[#allocation3 + $0x109] sm:$0xff]  ;;  %v5681_v28 = vld [vmem:[#allocation3 + $0x111] sm:$0xff] }
 0x32c   : > { %8356 = vmatprep.mubr.msk.bf16.mxu1 %vm3039_vm3, %v10482_v10  ;;  %v8559_v10 = vld [vmem:[%s11862_s2 + $0x80] sm:$0xff]  }
 0x32f   : > { %8385 = vmatmul.mubr.msk.bf16.gmra.mxu0 %vm3039_vm3, %v4175_v13 }
 0x330   : > { %8388 = vmatprep.mubr.msk.bf16.mxu0 %vm3039_vm3, %v4176_v44  ;;  %v5677_v44 = vld [vmem:[#allocation3 + $0xe1] sm:$0xff] }
 0x333   : > { %8357 = vmatmul.mubr.msk.bf16.gmra.mxu1 %vm3039_vm3, %v10662_v36 }
 0x334   : > { %8400 = vmatprep.mubr.msk.bf16.mxu1 %vm3039_vm3, %v10329_v24 }
 0x337   : > { %8389 = vmatmul.mubr.msk.bf16.gmra.mxu0 %vm3039_vm3, %v4177_v20  ;;  %v5679_v20 = vld [vmem:[#allocation3 + $0xf9] sm:$0xff] }
 0x338   : > { %8392 = vmatprep.mubr.msk.bf16.mxu0 %vm3039_vm3, %v4178_v31 }
 0x339   : > { %v8186_v52 = vpop.f32.mrf.mxu1 }
 0x33b   : > { %8401 = vmatmul.mubr.msk.bf16.vlgmr.msra.gmra.mxu1 %vm3039_vm3, %v10375_v32  ;;  %v3783_v24 = vpop.f32.mrf.mxu1 }
 0x33c   : > { %8469 = vmatpush3.bf16.msra.mxu1 %v8557_v45  ;;  %8404 = vmatprep.mubr.msk.bf16.mxu1 %vm3039_vm3, %v10388_v51 }
 0x33d   : > { %8470 = vmatprep.subr.bf16.mxu1 %v8559_v10  ;;  %v8187_v1 = vpop.f32.mrf.mxu1 }
 0x33f   : > { %8393 = vmatmul.mubr.msk.bf16.gmra.mxu0 %vm3039_vm3, %v10670_v0  ;;  %v3786_v23 = vpop.f32.mrf.mxu1 }
 0x340   : > { %8436 = vmatprep.mubr.msk.bf16.mxu0 %vm3039_vm3, %v10254_v39  ;;  %8471 = vmatpush3.bf16.msra.mxu1 %v8559_v10  ;;  %v5682_v10 = vld [vmem:[#allocation3 + $0x121] sm:$0xff] }
 0x342   : > { %v8190_v42 = vpop.f32.mrf.mxu1 }
 0x343   : > { %8405 = vmatmul.mubr.msk.bf16.gmra.mxu1 %vm3039_vm3, %v10408_v16 }
 0x344   : > { %8408 = vmatprep.mubr.msk.bf16.mxu1 %vm3039_vm3, %v10416_v2  ;;  %v3799_v39 = vpop.f32.mrf.mxu1 }
 0x345   : > { %v8222_v32 = vpop.f32.mrf.mxu0 }
 0x346   : > { %v10689_v51 = vadd.f32 %v8222_v32, %v8186_v52  ;;  %v8191_v18 = vpop.f32.mrf.mxu1  ;;  %v5683_v52 = vld [vmem:[#allocation3 + $0x129] sm:$0xff] }
 0x347   : > { %8437 = vmatmul.mubr.msk.bf16.vlgmr.msra.gmra.mxu0 %vm3039_vm3, %v10306_v57  ;;  %v4004_v38 = vpop.f32.mrf.mxu0 }
 0x348   : > { %8440 = vmatprep.mubr.msk.bf16.mxu0 %vm3039_vm3, %v10315_v27  ;;  %v10693_v59 = vadd.f32 %v4004_v38, %v3783_v24  ;;  %v3802_v16 = vpop.f32.mrf.mxu1 }
 0x349   : > { %v8223_v17 = vpop.f32.mrf.mxu0 }
 0x34a   : > { %v10695_v61 = vadd.f32 %v8223_v17, %v8187_v1 }
 0x34b   : > { %v4007_v48 = vpop.f32.mrf.mxu0  ;;  %v8194_v57 = vpop.f32.mrf.mxu1  ;;  %8409 = vmatmul.mubr.msk.bf16.gmra.mxu1 %vm3039_vm3, %v10432_v63 }
 0x34c   : > { %v10697_v34 = vadd.f32 %v4007_v48, %v3786_v23  ;;  %8412 = vmatprep.mubr.msk.bf16.mxu1 %vm3039_vm3, %v10439_v56 }
 0x34d   : > { %v3815_v9 = vpop.f32.mrf.mxu1 }
 0x34f   : > { %v8226_v2 = vpop.f32.mrf.mxu0  ;;  %8441 = vmatmul.mubr.msk.bf16.gmra.mxu0 %vm3039_vm3, %v10367_v14  ;;  %v8195_v21 = vpop.f32.mrf.mxu1 }
 0x350   : > { %v10705_v27 = vadd.f32 %v8226_v2, %v8190_v42  ;;  %8444 = vmatprep.mubr.msk.bf16.mxu0 %vm3039_vm3, %v10377_v50  ;;  %v5685_v2 = vld [vmem:[#allocation3 + $0x141] sm:$0xff] }
 0x351   : > { %v4020_v15 = vpop.f32.mrf.mxu0  ;;  %v3818_v63 = vpop.f32.mrf.mxu1 }
 0x352   : > { %v10709_v33 = vadd.f32 %v4020_v15, %v3799_v39  ;;  %v5704_v39 = vpack.c.bf16 %v5683_v52, %v5682_v10  ;;  %v5686_v15 = vld [vmem:[#allocation3 + $0x151] sm:$0xff] }
 0x353   : > { %v8227_v60 = vpop.f32.mrf.mxu0  ;;  %v8198_v14 = vpop.f32.mrf.mxu1  ;;  %8413 = vmatmul.mubr.msk.bf16.gmra.mxu1 %vm3039_vm3, %v10452_v58 }
 0x354   : > { %v10711_v43 = vadd.f32 %v8227_v60, %v8191_v18  ;;  %8416 = vmatprep.mubr.msk.bf16.mxu1 %vm3039_vm3, %v10458_v29  ;;  %v5701_v29 = vpack.c.bf16 %v5677_v44, %v5676_v25  ;;  %v5386_v44 = vld [vmem:[#allocation3 + $0x198] sm:$0xff] }
 0x355   : > { %v4023_v37 = vpop.f32.mrf.mxu0  ;;  %v3831_v19 = vpop.f32.mrf.mxu1 }
 0x356   : > { %v10713_v26 = vadd.f32 %v4023_v37, %v3802_v16 }
 0x357   : > { %v8230_v56 = vpop.f32.mrf.mxu0  ;;  %8445 = vmatmul.mubr.msk.bf16.gmra.mxu0 %vm3039_vm3, %v10405_v4  ;;  %v8199_v30 = vpop.f32.mrf.mxu1 }
 0x358   : > { %v10721_v50 = vadd.f32 %v8230_v56, %v8194_v57  ;;  %8448 = vmatprep.mubr.msk.bf16.mxu0 %vm3039_vm3, %v10410_v22  ;;  %v5702_v22 = vpack.c.bf16 %v5679_v20, %v5678_v47  ;;  %v5684_v57 = vld [vmem:[#allocation3 + $0x139] sm:$0xff]  ;;  %v5688_v20 = vld [vmem:[#allocation3 + $0x169] sm:$0xff] }
 0x359   : > { %v4036_v13 = vpop.f32.mrf.mxu0  ;;  %v3834_v4 = vpop.f32.mrf.mxu1  ;;  %v5705_v37 = vpack.c.bf16 %v5685_v2, %v5684_v57  ;;  %v5970_v2 = vld [vmem:[#allocation3 + $0x4a] sm:$0xff] }
 0x35a   : > { %v10725_v12 = vadd.f32 %v4036_v13, %v3815_v9 }
 0x35b   : > { %v8231_v58 = vpop.f32.mrf.mxu0  ;;  %v8202_v35 = vpop.f32.mrf.mxu1  ;;  %8417 = vmatmul.mubr.msk.bf16.gmra.mxu1 %vm3039_vm3, %v10468_v6 }
 0x35c   : > { %v10727_v41 = vadd.f32 %v8231_v58, %v8195_v21  ;;  %8420 = vmatprep.mubr.msk.bf16.mxu1 %vm3039_vm3, %v10474_v55  ;;  %v5703_v55 = vpack.c.bf16 %v5681_v28, %v5680_v49 }
 0x35d   : > { %v4039_v54 = vpop.f32.mrf.mxu0  ;;  %v10739_v45 = vpop.f32.mrf.mxu1 }
 0x35e   : > { %v10729_v31 = vadd.f32 %v4039_v54, %v3818_v63 }
 0x35f   : > { %v8234_v3 = vpop.f32.mrf.mxu0  ;;  %8449 = vmatmul.mubr.msk.bf16.gmra.mxu0 %vm3039_vm3, %v5701_v29  ;;  %v8203_v53 = vpop.f32.mrf.mxu1  ;;  %v5387_v29 = vld [vmem:[#allocation3 + $0x1a0] sm:$0xff] }
 0x360   : > { %v10736_v62 = vadd.f32 %v8234_v3, %v8198_v14  ;;  %8452 = vmatprep.mubr.msk.bf16.mxu0 %vm3039_vm3, %v5702_v22  ;;  %v5403_v3 = vpack.c.bf16 %v5387_v29, %v5386_v44  ;;  %v5977_v29 = vld [vmem:[#allocation3 + $0x9a] sm:$0xff] }
 0x361   : > { %v4052_v11 = vpop.f32.mrf.mxu0  ;;  %v3850_v1 = vpop.f32.mrf.mxu1 }
 0x362   : > { %v10741_v46 = vadd.f32 %v4052_v11, %v3831_v19 }
 0x363   : > { %v8235_v6 = vpop.f32.mrf.mxu0  ;;  %v8206_v32 = vpop.f32.mrf.mxu1  ;;  %8421 = vmatmul.mubr.msk.bf16.gmra.mxu1 %vm3039_vm3, %v10484_v7  ;;  %v5687_v7 = vld [vmem:[#allocation3 + $0x159] sm:$0xff] }
 0x364   : > { %v10743_v24 = vadd.f32 %v8235_v6, %v8199_v30  ;;  %8424 = vmatprep.mubr.msk.bf16.mxu1 %vm3039_vm3, %v10488_v8  ;;  %v5706_v56 = vpack.c.bf16 %v5687_v7, %v5686_v15 }
 0x365   : > { %v4055_v23 = vpop.f32.mrf.mxu0  ;;  %v3863_v17 = vpop.f32.mrf.mxu1 }
 0x366   : > { %v10745_v42 = vadd.f32 %v4055_v23, %v3834_v4  ;;  %v5689_v4 = vld [vmem:[#allocation3 + $0x171] sm:$0xff] }
 0x367   : > { %v8238_v38 = vpop.f32.mrf.mxu0  ;;  %8453 = vmatmul.mubr.msk.bf16.gmra.mxu0 %vm3039_vm3, %v5703_v55  ;;  %v8207_v48 = vpop.f32.mrf.mxu1  ;;  %v5971_v55 = vld [vmem:[#allocation3 + $0x52] sm:$0xff] }
 0x368   : > { %v10752_v18 = vadd.f32 %v8238_v38, %v8202_v35  ;;  %8456 = vmatprep.mubr.msk.bf16.mxu0 %vm3039_vm3, %v5704_v39  ;;  %v5692_v38 = vld [vmem:[#allocation3 + $0x199] sm:$0xff]  ;;  %v6001_v7 = vpack.c.bf16 %v5971_v55, %v5970_v2 }
 0x369   : > { %v10755_v16 = vpop.f32.mrf.mxu0  ;;  %v3866_v60 = vpop.f32.mrf.mxu1 }
 0x36b   : > { %v8239_v9 = vpop.f32.mrf.mxu0  ;;  %v8210_v8 = vpop.f32.mrf.mxu1  ;;  %8425 = vmatmul.mubr.msk.bf16.gmra.mxu1 %vm3039_vm3, %v10497_v40  ;;  %v5969_v40 = vld [vmem:[#allocation3 + $0x3a] sm:$0xff] }
 0x36c   : > { %v10757_v21 = vadd.f32 %v8239_v9, %v8203_v53  ;;  %8428 = vmatprep.mubr.msk.bf16.mxu1 %vm3039_vm3, %v10596_v5  ;;  %v5968_v5 = vld [vmem:[#allocation3 + $0x32] sm:$0xff]  ;;  %v5707_v53 = vpack.c.bf16 %v5689_v4, %v5688_v20  ;;  %v5975_v4 = vld [vmem:[#allocation3 + $0x82] sm:$0xff] }
 0x36d   : > { %v4071_v63 = vpop.f32.mrf.mxu0  ;;  %v3879_v30 = vpop.f32.mrf.mxu1  ;;  %v6000_v49 = vpack.c.bf16 %v5969_v40, %v5968_v5  ;;  %v5974_v5 = vld [vmem:[#allocation3 + $0x7a] sm:$0xff] }
 0x36e   : > { %v10759_v14 = vadd.f32 %v4071_v63, %v3850_v1 }
 0x36f   : > { %v8242_v19 = vpop.f32.mrf.mxu0  ;;  %8457 = vmatmul.mubr.msk.bf16.gmra.mxu0 %vm3039_vm3, %v5705_v37  ;;  %v8211_v47 = vpop.f32.mrf.mxu1 }
 0x370   : > { %v10766_v13 = vadd.f32 %v8242_v19, %v8206_v32  ;;  %8460 = vmatprep.mubr.msk.bf16.mxu0 %vm3039_vm3, %v5706_v56 }
 0x371   : > { %v4084_v25 = vpop.f32.mrf.mxu0  ;;  %v3882_v22 = vpop.f32.mrf.mxu1 }
 0x372   : > { %v10769_v58 = vadd.f32 %v4084_v25, %v3863_v17  ;;  %v5693_v17 = vld [vmem:[#allocation3 + $0x1a1] sm:$0xff] }
 0x373   : > { %v8243_v54 = vpop.f32.mrf.mxu0  ;;  %v8214_v6 = vpop.f32.mrf.mxu1  ;;  %8429 = vmatmul.mubr.msk.bf16.gmra.mxu1 %vm3039_vm3, %v5403_v3  ;;  %v5709_v37 = vpack.c.bf16 %v5693_v17, %v5692_v38 }
 0x374   : > { %v10771_v35 = vadd.f32 %v8243_v54, %v8207_v48  ;;  %8472 = vmatprep.mubr.msk.bf16.mxu1 %vm3039_vm3, %v6000_v49  ;;  %v5973_v48 = vld [vmem:[#allocation3 + $0x6a] sm:$0xff]  ;;  %v5976_v49 = vld [vmem:[#allocation3 + $0x92] sm:$0xff] }
 0x375   : > { %v4087_v11 = vpop.f32.mrf.mxu0  ;;  %v3895_v1 = vpop.f32.mrf.mxu1 }
 0x376   : > { %v10773_v28 = vadd.f32 %v4087_v11, %v3866_v60  ;;  %v5972_v60 = vld [vmem:[#allocation3 + $0x62] sm:$0xff] }
 0x377   : > { %v8246_v10 = vpop.f32.mrf.mxu0  ;;  %8461 = vmatmul.mubr.msk.bf16.gmra.mxu0 %vm3039_vm3, %v5707_v53  ;;  %v8215_v39 = vpop.f32.mrf.mxu1  ;;  %v6003_v53 = vpack.c.bf16 %v5975_v4, %v5974_v5 }
 0x378   : > { %v10778_v52 = vadd.f32 %v8246_v10, %v8210_v8  ;;  %8464 = vmatprep.mubr.msk.bf16.mxu0 %vm3039_vm3, %v10662_v36  ;;  %v6002_v8 = vpack.c.bf16 %v5973_v48, %v5972_v60 }
 0x379   : > { %v4100_v23 = vpop.f32.mrf.mxu0  ;;  %v3898_v15 = vpop.f32.mrf.mxu1 }
 0x37a   : > { %v10782_v32 = vadd.f32 %v4100_v23, %v3879_v30  ;;  %v6004_v23 = vpack.c.bf16 %v5977_v29, %v5976_v49 }
 0x37b   : > { %v8247_v57 = vpop.f32.mrf.mxu0  ;;  %v8258_v56 = vpop.f32.mrf.mxu1  ;;  %8473 = vmatmul.mubr.msk.bf16.vlgmr.msra.gmra.mxu1 %vm3039_vm3, %v6001_v7 }
 0x37c   : > { %v10784_v9 = vadd.f32 %v8247_v57, %v8211_v47  ;;  %v4407_v30 = vadd.f32 %v8258_v56, %v10689_v51  ;;  %8476 = vmatprep.mubr.msk.bf16.mxu1 %vm3039_vm3, %v6002_v8  ;;  %v5979_v57 = vld [vmem:[#allocation3 + $0xb2] sm:$0xff]  ;;  %v5980_v56 = vld [vmem:[#allocation3 + $0xc2] sm:$0xff] }
 0x37d   : > { %v4103_v63 = vpop.f32.mrf.mxu0  ;;  %v4278_v44 = vpop.f32.mrf.mxu1 }
 0x37e   : > { %v10786_v36 = vadd.f32 %v4103_v63, %v3882_v22  ;;  %v4405_v20 = vadd.f32 %v4278_v44, %v10693_v59  ;;  %v5978_v63 = vld [vmem:[#allocation3 + $0xaa] sm:$0xff] }
 0x37f   : > { %v8250_v19 = vpop.f32.mrf.mxu0  ;;  %8465 = vmatmul.mubr.msk.bf16.gmra.mxu0 %vm3039_vm3, %v5709_v37  ;;  %v8259_v54 = vpop.f32.mrf.mxu1  ;;  %v6005_v8 = vpack.c.bf16 %v5979_v57, %v5978_v63 }
 0x380   : > { %v10792_v25 = vadd.f32 %v8250_v19, %v8214_v6  ;;  %v4408_v3 = vadd.f32 %v8259_v54, %v10695_v61 }
 0x381   : > { %v4116_v47 = vpop.f32.mrf.mxu0  ;;  %v4281_v11 = vpop.f32.mrf.mxu1 }
 0x382   : > { %v10795_v40 = vadd.f32 %v4116_v47, %v3895_v1  ;;  %v4406_v10 = vadd.f32 %v4281_v11, %v10697_v34  ;;  %v5985_v11 = vld [vmem:[#allocation3 + $0xfa] sm:$0xff] }
 0x383   : > { %v8251_v22 = vpop.f32.mrf.mxu0  ;;  %v8262_v59 = vpop.f32.mrf.mxu1  ;;  %8477 = vmatmul.mubr.msk.bf16.gmra.mxu1 %vm3039_vm3, %v6003_v53 }
 0x384   : > { %v10798_v51 = vadd.f32 %v8251_v22, %v8215_v39  ;;  %v4411_v1 = vadd.f32 %v8262_v59, %v10705_v27  ;;  %8480 = vmatprep.mubr.msk.bf16.mxu1 %vm3039_vm3, %v6004_v23  ;;  %v5984_v59 = vld [vmem:[#allocation3 + $0xf2] sm:$0xff] }
 0x385   : > { %v4119_v6 = vpop.f32.mrf.mxu0  ;;  %v4294_v39 = vpop.f32.mrf.mxu1 }
 0x386   : > { %v10801_v55 = vadd.f32 %v4119_v6, %v3898_v15  ;;  %v4409_v17 = vadd.f32 %v4294_v39, %v10709_v33  ;;  %v5981_v15 = vld [vmem:[#allocation3 + $0xca] sm:$0xff]  ;;  %v5982_v6 = vld [vmem:[#allocation3 + $0xda] sm:$0xff]  ;;  %v6008_v39 = vpack.c.bf16 %v5985_v11, %v5984_v59 }
 0x387   : > { %v8294_v38 = vpop.f32.mrf.mxu0  ;;  %v8263_v34 = vpop.f32.mrf.mxu1  ;;  %v6006_v44 = vpack.c.bf16 %v5981_v15, %v5980_v56  ;;  %v5990_v59 = vld [vmem:[#allocation3 + $0x13a] sm:$0xff] }
 0x388   : > { %v10806_v61 = vadd.f32 %v8294_v38, %v4407_v30  ;;  %v4412_v7 = vadd.f32 %v8263_v34, %v10711_v43 }
 0x389   : > { %v4584_v48 = vpop.f32.mrf.mxu0  ;;  %v4297_v27 = vpop.f32.mrf.mxu1 }
 0x38a   : > { %v10809_v2 = vadd.f32 %v4584_v48, %v4405_v20  ;;  %v4410_v19 = vadd.f32 %v4297_v27, %v10713_v26  ;;  %v5989_v27 = vld [vmem:[#allocation3 + $0x12a] sm:$0xff] }
 0x38b   : > { %v8295_v60 = vpop.f32.mrf.mxu0  ;;  %v8266_v47 = vpop.f32.mrf.mxu1  ;;  %8481 = vmatmul.mubr.msk.bf16.gmra.mxu1 %vm3039_vm3, %v6005_v8 }
 0x38c   : > { %v10812_v37 = vadd.f32 %v8295_v60, %v4408_v3  ;;  %v4415_v20 = vadd.f32 %v8266_v47, %v10721_v50  ;;  %8484 = vmatprep.mubr.msk.bf16.mxu1 %vm3039_vm3, %v6006_v44  ;;  %v5983_v3 = vld [vmem:[#allocation3 + $0xe2] sm:$0xff]  ;;  %v5987_v60 = vld [vmem:[#allocation3 + $0x112] sm:$0xff] }
 0x38d   : > { %v4587_v30 = vpop.f32.mrf.mxu0  ;;  %v4310_v54 = vpop.f32.mrf.mxu1  ;;  %v6007_v23 = vpack.c.bf16 %v5983_v3, %v5982_v6  ;;  %v5988_v47 = vld [vmem:[#allocation3 + $0x122] sm:$0xff]  ;;  %v5993_v6 = vld [vmem:[#allocation3 + $0x15a] sm:$0xff] }
 0x38e   : > { %v10815_v33 = vadd.f32 %v4587_v30, %v4406_v10  ;;  %v4413_v29 = vadd.f32 %v4310_v54, %v10725_v12  ;;  %v6010_v54 = vpack.c.bf16 %v5989_v27, %v5988_v47  ;;  %v5994_v47 = vld [vmem:[#allocation3 + $0x16a] sm:$0xff] }
 0x38f   : > { %v8298_v4 = vpop.f32.mrf.mxu0  ;;  %v8267_v5 = vpop.f32.mrf.mxu1 }
 0x390   : > { %v10820_v43 = vadd.f32 %v8298_v4, %v4411_v1  ;;  %v4416_v53 = vadd.f32 %v8267_v5, %v10727_v41 }
 0x391   : > { %v4600_v22 = vpop.f32.mrf.mxu0  ;;  %v4313_v50 = vpop.f32.mrf.mxu1 }
 0x392   : > { %v10823_v26 = vadd.f32 %v4600_v22, %v4409_v17  ;;  %v4414_v1 = vadd.f32 %v4313_v50, %v10729_v31 }
 0x393   : > { %v8299_v49 = vpop.f32.mrf.mxu0  ;;  %v8270_v48 = vpop.f32.mrf.mxu1  ;;  %8485 = vmatmul.mubr.msk.bf16.gmra.mxu1 %vm3039_vm3, %v6007_v23 }
 0x394   : > { %v10826_v10 = vadd.f32 %v8299_v49, %v4412_v7  ;;  %v4419_v17 = vadd.f32 %v8270_v48, %v10736_v62  ;;  %8488 = vmatprep.mubr.msk.bf16.mxu1 %vm3039_vm3, %v6008_v39  ;;  %v5992_v39 = vld [vmem:[#allocation3 + $0x152] sm:$0xff] }
 0x395   : > { %v4603_v38 = vpop.f32.mrf.mxu0  ;;  %v4326_v34 = vpop.f32.mrf.mxu1 }
 0x396   : > { %v10829_v12 = vadd.f32 %v4603_v38, %v4410_v19  ;;  %v4417_v15 = vadd.f32 %v4326_v34, %v10741_v46  ;;  %v5986_v19 = vld [vmem:[#allocation3 + $0x10a] sm:$0xff]  ;;  %v4069_v34 = vadd.f32 %v10755_v16, %v10739_v45 }
 0x397   : > { %v8302_v57 = vpop.f32.mrf.mxu0  ;;  %v8271_v63 = vpop.f32.mrf.mxu1  ;;  %v6009_v44 = vpack.c.bf16 %v5987_v60, %v5986_v19  ;;  %v5995_v19 = vld [vmem:[#allocation3 + $0x172] sm:$0xff] }
 0x398   : > { %v10834_v41 = vadd.f32 %v8302_v57, %v4415_v20  ;;  %v4420_v8 = vadd.f32 %v8271_v63, %v10743_v24  ;;  %v6012_v57 = vpack.c.bf16 %v5993_v6, %v5992_v39  ;;  %v5999_v6 = vld [vmem:[#allocation3 + $0x1a2] sm:$0xff] }
 0x399   : > { %v4616_v7 = vpop.f32.mrf.mxu0  ;;  %v4329_v62 = vpop.f32.mrf.mxu1 }
 0x39a   : > { %v10837_v31 = vadd.f32 %v4616_v7, %v4413_v29  ;;  %v4418_v20 = vadd.f32 %v4329_v62, %v10745_v42 }
 0x39b   : > { %v8303_v56 = vpop.f32.mrf.mxu0  ;;  %v8274_v22 = vpop.f32.mrf.mxu1  ;;  %8489 = vmatmul.mubr.msk.bf16.gmra.mxu1 %vm3039_vm3, %v6009_v44 }
 0x39c   : > { %v10840_v30 = vadd.f32 %v8303_v56, %v4416_v53  ;;  %v4423_v29 = vadd.f32 %v8274_v22, %v10752_v18  ;;  %8492 = vmatprep.mubr.msk.bf16.mxu1 %vm3039_vm3, %v6010_v54  ;;  %v5991_v53 = vld [vmem:[#allocation3 + $0x142] sm:$0xff] }
 0x39d   : > { %v4619_v4 = vpop.f32.mrf.mxu0  ;;  %v4342_v5 = vpop.f32.mrf.mxu1  ;;  %v6011_v18 = vpack.c.bf16 %v5991_v53, %v5990_v59 }
 0x39e   : > { %v10843_v46 = vadd.f32 %v4619_v4, %v4414_v1  ;;  %v4421_v63 = vadd.f32 %v4342_v5, %v4069_v34  ;;  %v6013_v4 = vpack.c.bf16 %v5995_v19, %v5994_v47 }
 0x39f   : > { %v8306_v3 = vpop.f32.mrf.mxu0  ;;  %v8275_v42 = vpop.f32.mrf.mxu1 }
 0x3a0   : > { %v10848_v24 = vadd.f32 %v8306_v3, %v4419_v17  ;;  %v4424_v50 = vadd.f32 %v8275_v42, %v10757_v21 }
 0x3a1   : > { %v4632_v11 = vpop.f32.mrf.mxu0  ;;  %v4345_v38 = vpop.f32.mrf.mxu1 }
 0x3a2   : > { %v10850_v49 = vadd.f32 %v4632_v11, %v4417_v15  ;;  %v4422_v48 = vadd.f32 %v4345_v38, %v10759_v14  ;;  %v5998_v38 = vld [vmem:[#allocation3 + $0x19a] sm:$0xff] }
 0x3a3   : > { %v8307_v23 = vpop.f32.mrf.mxu0  ;;  %v8278_v7 = vpop.f32.mrf.mxu1  ;;  %8493 = vmatmul.mubr.msk.bf16.gmra.mxu1 %vm3039_vm3, %v6011_v18  ;;  %v6015_v39 = vpack.c.bf16 %v5999_v6, %v5998_v38 }
 0x3a4   : > { %v10853_v1 = vadd.f32 %v8307_v23, %v4420_v8  ;;  %v4427_v21 = vadd.f32 %v8278_v7, %v10766_v13  ;;  %8496 = vmatprep.mubr.msk.bf16.mxu1 %vm3039_vm3, %v6012_v57 }
 0x3a5   : > { %v4635_v17 = vpop.f32.mrf.mxu0  ;;  %v4358_v8 = vpop.f32.mrf.mxu1 }
 0x3a6   : > { %v10858_v15 = vadd.f32 %v4635_v17, %v4418_v20  ;;  %v4425_v14 = vadd.f32 %v4358_v8, %v10769_v58 }
 0x3a7   : > { %v8310_v60 = vpop.f32.mrf.mxu0  ;;  %v8279_v45 = vpop.f32.mrf.mxu1 }
 0x3a8   : > { %v10863_v27 = vadd.f32 %v8310_v60, %v4423_v29  ;;  %v4428_v16 = vadd.f32 %v8279_v45, %v10771_v35 }
 0x3a9   : > { %v4648_v56 = vpop.f32.mrf.mxu0  ;;  %v4361_v13 = vpop.f32.mrf.mxu1 }
 0x3aa   : > { %v10866_v62 = vadd.f32 %v4648_v56, %v4421_v63  ;;  %v4426_v54 = vadd.f32 %v4361_v13, %v10773_v28 }
 0x3ab   : > { %v8311_v44 = vpop.f32.mrf.mxu0  ;;  %v8282_v3 = vpop.f32.mrf.mxu1  ;;  %8497 = vmatmul.mubr.msk.bf16.gmra.mxu1 %vm3039_vm3, %v6013_v4 }
 0x3ac   : > { %v10869_v20 = vadd.f32 %v8311_v44, %v4424_v50  ;;  %v4431_v58 = vadd.f32 %v8282_v3, %v10778_v52  ;;  %8500 = vmatprep.mubr.msk.bf16.mxu1 %vm3039_vm3, %v10670_v0 }
 0x3ad   : > { %v4651_v22 = vpop.f32.mrf.mxu0  ;;  %v4374_v11 = vpop.f32.mrf.mxu1 }
 0x3ae   : > { %v10872_v29 = vadd.f32 %v4651_v22, %v4422_v48  ;;  %v4429_v53 = vadd.f32 %v4374_v11, %v10782_v32 }
 0x3af   : > { %v8314_v5 = vpop.f32.mrf.mxu0  ;;  %v8283_v50 = vpop.f32.mrf.mxu1 }
 0x3b0   : > { %v10878_v35 = vadd.f32 %v8314_v5, %v4427_v21  ;;  %v4432_v23 = vadd.f32 %v8283_v50, %v10784_v9 }
 0x3b1   : > { %v4664_v42 = vpop.f32.mrf.mxu0  ;;  %v4377_v52 = vpop.f32.mrf.mxu1 }
 0x3b2   : > { %v10881_v28 = vadd.f32 %v4664_v42, %v4425_v14  ;;  %v4430_v0 = vadd.f32 %v4377_v52, %v10786_v36 }
 0x3b3   : > { %v8315_v59 = vpop.f32.mrf.mxu0  ;;  %v8286_v57 = vpop.f32.mrf.mxu1  ;;  %8501 = vmatmul.mubr.msk.bf16.gmra.mxu1 %vm3039_vm3, %v6015_v39 }
 0x3b4   : > { %v10884_v18 = vadd.f32 %v8315_v59, %v4428_v16  ;;  %v4435_v32 = vadd.f32 %v8286_v57, %v10792_v25 }
 0x3b5   : > { %v4667_v48 = vpop.f32.mrf.mxu0  ;;  %v4390_v9 = vpop.f32.mrf.mxu1 }
 0x3b6   : > { %v10887_v17 = vadd.f32 %v4667_v48, %v4426_v54  ;;  %v4433_v21 = vadd.f32 %v4390_v9, %v10795_v40 }
 0x3b7   : > { %v8318_v34 = vpop.f32.mrf.mxu0  ;;  %v8287_v8 = vpop.f32.mrf.mxu1 }
 0x3b8   : > { %v10891_v7 = vadd.f32 %v8318_v34, %v4431_v58  ;;  %v4436_v36 = vadd.f32 %v8287_v8, %v10798_v51 }
 0x3b9   : > { %v4680_v60 = vpop.f32.mrf.mxu0  ;;  %v4393_v19 = vpop.f32.mrf.mxu1 }
 0x3ba   : > { %v10894_v63 = vadd.f32 %v4680_v60, %v4429_v53  ;;  %v4434_v45 = vadd.f32 %v4393_v19, %v10801_v55 }
 0x3bb   : > { %v8319_v14 = vpop.f32.mrf.mxu0  ;;  %v8330_v44 = vpop.f32.mrf.mxu1 }
 0x3bc   : > { %v10897_v56 = vadd.f32 %v8319_v14, %v4432_v23  ;;  %v5019_v13 = vadd.f32 %v8330_v44, %v10806_v61 }
 0x3bd   : > { %v4683_v16 = vpop.f32.mrf.mxu0  ;;  %v4890_v4 = vpop.f32.mrf.mxu1 }
 0x3be   : > { %v10900_v25 = vadd.f32 %v4683_v16, %v4430_v0  ;;  %v5017_v22 = vadd.f32 %v4890_v4, %v10809_v2 }
 0x3bf   : > { %v8322_v47 = vpop.f32.mrf.mxu0  ;;  %v8331_v3 = vpop.f32.mrf.mxu1 }
 0x3c0   : > { %v10903_v40 = vadd.f32 %v8322_v47, %v4435_v32  ;;  %v5020_v5 = vadd.f32 %v8331_v3, %v10812_v37 }
 0x3c1   : > { %v4696_v54 = vpop.f32.mrf.mxu0  ;;  %v4893_v11 = vpop.f32.mrf.mxu1 }
 0x3c2   : > { %v10906_v51 = vadd.f32 %v4696_v54, %v4433_v21  ;;  %v10912_v42 = vadd.f32 %v4893_v11, %v10815_v33 }
 0x3c3   : > { %v8323_v58 = vpop.f32.mrf.mxu0  ;;  %v8334_v6 = vpop.f32.mrf.mxu1 }
 0x3c4   : > { %v10909_v55 = vadd.f32 %v8323_v58, %v4436_v36  ;;  %v5023_v50 = vadd.f32 %v8334_v6, %v10820_v43 }
 0x3c5   : > { %v4699_v53 = vpop.f32.mrf.mxu0  ;;  %v4906_v59 = vpop.f32.mrf.mxu1 }
 0x3c6   : > { %v10914_v61 = vadd.f32 %v4699_v53, %v4434_v45  ;;  %v10920_v38 = vadd.f32 %v4906_v59, %v10823_v26 }
 0x3c7   : > { %v8366_v23 = vpop.f32.mrf.mxu0  ;;  %v8335_v39 = vpop.f32.mrf.mxu1 }
 0x3c8   : > { %v10917_v2 = vadd.f32 %v8366_v23, %v5019_v13  ;;  %v5024_v0 = vadd.f32 %v8335_v39, %v10826_v10 }
 0x3c9   : > { %v5196_v37 = vpop.f32.mrf.mxu0  ;;  %v4909_v57 = vpop.f32.mrf.mxu1 }
 0x3ca   : > { %v10922_v52 = vadd.f32 %v5196_v37, %v5017_v22  ;;  %v10928_v32 = vadd.f32 %v4909_v57, %v10829_v12 }
 0x3cb   : > { %v8367_v33 = vpop.f32.mrf.mxu0  ;;  %v8338_v34 = vpop.f32.mrf.mxu1 }
 0x3cc   : > { %v10925_v48 = vadd.f32 %v8367_v33, %v5020_v5  ;;  %v5027_v9 = vadd.f32 %v8338_v34, %v10834_v41 }
 0x3cd   : > { %v10930_v43 = vpop.f32.mrf.mxu0  ;;  %v4922_v60 = vpop.f32.mrf.mxu1 }
 0x3ce   : > { %v10936_v8 = vadd.f32 %v4922_v60, %v10837_v31 }
 0x3cf   : > { %v8370_v26 = vpop.f32.mrf.mxu0  ;;  %v8339_v36 = vpop.f32.mrf.mxu1 }
 0x3d0   : > { %v10933_v21 = vadd.f32 %v8370_v26, %v5023_v50  ;;  %v5028_v14 = vadd.f32 %v8339_v36, %v10840_v30 }
 0x3d1   : > { %v10938_v10 = vpop.f32.mrf.mxu0  ;;  %v4925_v45 = vpop.f32.mrf.mxu1 }
 0x3d2   : > { %v10944_v16 = vadd.f32 %v4925_v45, %v10843_v46 }
 0x3d3   : > { %v8371_v19 = vpop.f32.mrf.mxu0  ;;  %v8342_v44 = vpop.f32.mrf.mxu1 }
 0x3d4   : > { %v10941_v12 = vadd.f32 %v8371_v19, %v5024_v0  ;;  %v5031_v47 = vadd.f32 %v8342_v44, %v10848_v24 }
 0x3d5   : > { %v10946_v41 = vpop.f32.mrf.mxu0  ;;  %v4938_v4 = vpop.f32.mrf.mxu1 }
 0x3d6   : > { %v10952_v54 = vadd.f32 %v4938_v4, %v10850_v49 }
 0x3d7   : > { %v8374_v13 = vpop.f32.mrf.mxu0  ;;  %v8343_v22 = vpop.f32.mrf.mxu1 }
 0x3d8   : > { %v10949_v31 = vadd.f32 %v8374_v13, %v5027_v9  ;;  %v5032_v3 = vadd.f32 %v8343_v22, %v10853_v1 }
 0x3d9   : > { %v10954_v30 = vpop.f32.mrf.mxu0  ;;  %v4941_v5 = vpop.f32.mrf.mxu1 }
 0x3da   : > { %v10960_v11 = vadd.f32 %v4941_v5, %v10858_v15 }
 0x3db   : > { %v8375_v58 = vpop.f32.mrf.mxu0  ;;  %v8346_v53 = vpop.f32.mrf.mxu1 }
 0x3dc   : > { %v10957_v46 = vadd.f32 %v8375_v58, %v5028_v14  ;;  %v5035_v6 = vadd.f32 %v8346_v53, %v10863_v27 }
 0x3dd   : > { %v10962_v24 = vpop.f32.mrf.mxu0  ;;  %v4954_v23 = vpop.f32.mrf.mxu1 }
 0x3de   : > { %v10968_v59 = vadd.f32 %v4954_v23, %v10866_v62 }
 0x3df   : > { %v8378_v50 = vpop.f32.mrf.mxu0  ;;  %v8347_v37 = vpop.f32.mrf.mxu1 }
 0x3e0   : > { %v10965_v49 = vadd.f32 %v8378_v50, %v5031_v47  ;;  %v5036_v39 = vadd.f32 %v8347_v37, %v10869_v20 }
 0x3e1   : > { %v10970_v1 = vpop.f32.mrf.mxu0  ;;  %v4957_v33 = vpop.f32.mrf.mxu1 }
 0x3e2   : > { %v10976_v57 = vadd.f32 %v4957_v33, %v10872_v29 }
 0x3e3   : > { %v8379_v0 = vpop.f32.mrf.mxu0  ;;  %v8350_v34 = vpop.f32.mrf.mxu1 }
 0x3e4   : > { %v10973_v15 = vadd.f32 %v8379_v0, %v5032_v3  ;;  %v5039_v9 = vadd.f32 %v8350_v34, %v10878_v35 }
 0x3e5   : > { %v10978_v27 = vpop.f32.mrf.mxu0  ;;  %v4970_v60 = vpop.f32.mrf.mxu1 }
 0x3e6   : > { %v10984_v36 = vadd.f32 %v4970_v60, %v10881_v28 }
 0x3e7   : > { %v8382_v26 = vpop.f32.mrf.mxu0  ;;  %v8351_v14 = vpop.f32.mrf.mxu1 }
 0x3e8   : > { %v10981_v62 = vadd.f32 %v8382_v26, %v5035_v6  ;;  %11960 = vst [vmem:[#allocation4_spill] sm:$0xff] %v10984_v36  ;;  %v5040_v19 = vadd.f32 %v8351_v14, %v10884_v18 }
 0x3e9   : > { %v10986_v20 = vpop.f32.mrf.mxu0  ;;  %v4973_v44 = vpop.f32.mrf.mxu1 }
 0x3ea   : > { %v10992_v47 = vadd.f32 %v4973_v44, %v10887_v17 }
 0x3eb   : > { %v8383_v45 = vpop.f32.mrf.mxu0  ;;  %v8354_v13 = vpop.f32.mrf.mxu1 }
 0x3ec   : > { %v10989_v29 = vadd.f32 %v8383_v45, %v5036_v39  ;;  %11961 = vst [vmem:[#allocation6_spill] sm:$0xff] %v10992_v47  ;;  %v5043_v4 = vadd.f32 %v8354_v13, %v10891_v7 }
 0x3ed   : > { %v10994_v35 = vpop.f32.mrf.mxu0  ;;  %v4986_v3 = vpop.f32.mrf.mxu1 }
 0x3ee   : > { %v11000_v58 = vadd.f32 %v4986_v3, %v10894_v63 }
 0x3ef   : > { %v8386_v22 = vpop.f32.mrf.mxu0  ;;  %v8355_v5 = vpop.f32.mrf.mxu1 }
 0x3f0   : > { %v10997_v28 = vadd.f32 %v8386_v22, %v5039_v9  ;;  %11962 = vst [vmem:[#allocation7_spill] sm:$0xff] %v11000_v58  ;;  %v5044_v53 = vadd.f32 %v8355_v5, %v10897_v56 }
 0x3f1   : > { %v11002_v18 = vpop.f32.mrf.mxu0  ;;  %v4989_v50 = vpop.f32.mrf.mxu1 }
 0x3f2   : > { %11963 = vst [vmem:[#allocation5_spill] sm:$0xff] %v11002_v18  ;;  %v11008_v23 = vadd.f32 %v4989_v50, %v10900_v25 }
 0x3f3   : > { %v8387_v6 = vpop.f32.mrf.mxu0  ;;  %v8358_v37 = vpop.f32.mrf.mxu1 }
 0x3f4   : > { %v11005_v17 = vadd.f32 %v8387_v6, %v5040_v19  ;;  %11964 = vst [vmem:[#allocation9_spill] sm:$0xff] %v11008_v23  ;;  %v5047_v39 = vadd.f32 %v8358_v37, %v10903_v40 }
 0x3f5   : > { %v11010_v7 = vpop.f32.mrf.mxu0  ;;  %v5002_v33 = vpop.f32.mrf.mxu1 }
 0x3f6   : > { %11965 = vst [vmem:[#allocation10_spill] sm:$0xff] %v11010_v7  ;;  %v11016_v34 = vadd.f32 %v5002_v33, %v10906_v51 }
 0x3f7   : > { %v8390_v0 = vpop.f32.mrf.mxu0  ;;  %v8359_v9 = vpop.f32.mrf.mxu1 }
 0x3f8   : > { %v11013_v63 = vadd.f32 %v8390_v0, %v5043_v4  ;;  %11966 = vst [vmem:[#allocation8_spill] sm:$0xff] %v11016_v34  ;;  %v5048_v26 = vadd.f32 %v8359_v9, %v10909_v55 }
 0x3f9   : > { %v11018_v56 = vpop.f32.mrf.mxu0  ;;  %v5005_v14 = vpop.f32.mrf.mxu1 }
 0x3fa   : > { %11967 = vst [vmem:[#allocation12_spill] sm:$0xff] %v11018_v56  ;;  %v11024_v19 = vadd.f32 %v5005_v14, %v10914_v61 }
 0x3fb   : > { %v8391_v60 = vpop.f32.mrf.mxu0  ;;  %v8402_v45 = vpop.f32.mrf.mxu1 }
 0x3fc   : > { %v11021_v25 = vadd.f32 %v8391_v60, %v5044_v53  ;;  %11968 = vst [vmem:[#allocation30_spill] sm:$0xff] %v11024_v19  ;;  %v11029_v13 = vadd.f32 %v8402_v45, %v10917_v2 }
 0x3fd   : > { %v11026_v40 = vpop.f32.mrf.mxu0  ;;  %v5503_v4 = vpop.f32.mrf.mxu1 }
 0x3fe   : > { %11969 = vst [vmem:[#allocation28_spill] sm:$0xff] %v11026_v40  ;;  %v11036_v55 = vadd.f32 %v5503_v4, %v10922_v52 }
 0x3ff   : > { %v8394_v44 = vpop.f32.mrf.mxu0  ;;  %v8403_v3 = vpop.f32.mrf.mxu1 }
 0x400   : > { %v11031_v51 = vadd.f32 %v8394_v44, %v5047_v39  ;;  %v11039_v61 = vadd.f32 %v8403_v3, %v10925_v48 }
 0x401   : > { %v11033_v22 = vpop.f32.mrf.mxu0  ;;  %v11041_v6 = vpop.f32.mrf.mxu1 }
 0x402   : > { %11970 = vst [vmem:[#allocation34_spill] sm:$0xff] %v11033_v22 }
 0x403   : > { %v8395_v5 = vpop.f32.mrf.mxu0  ;;  %v8406_v2 = vpop.f32.mrf.mxu1 }
 0x404   : > { %v5354_v53 = vadd.f32 %v8395_v5, %v5048_v26  ;;  %v11046_v37 = vadd.f32 %v8406_v2, %v10933_v21 }
 0x405   : > { %v11043_v50 = vpop.f32.mrf.mxu0  ;;  %v11050_v0 = vpop.f32.mrf.mxu1 }
 0x406   : > { %11971 = vst [vmem:[#allocation13_spill] sm:$0xff] %v11043_v50 }
 0x407   : > { %v11048_v39 = vpop.f32.mrf.mxu0  ;;  %v8407_v33 = vpop.f32.mrf.mxu1 }
 0x408   : > { %v11053_v9 = vadd.f32 %v8407_v33, %v10941_v12 }
 0x409   : > { %v5809_v52 = vpop.f32.mrf.mxu0  ;;  %v11055_v60 = vpop.f32.mrf.mxu1 }
 0x40b   : > { %v8439_v48 = vpop.f32.mrf.mxu0  ;;  %v8410_v14 = vpop.f32.mrf.mxu1 }
 0x40c   : > { %v11058_v45 = vadd.f32 %v8410_v14, %v10949_v31 }
 0x40d   : > { %v5812_v26 = vpop.f32.mrf.mxu0  ;;  %v11062_v21 = vpop.f32.mrf.mxu1 }
 0x40f   : > { %v11060_v44 = vpop.f32.mrf.mxu0  ;;  %v8411_v3 = vpop.f32.mrf.mxu1 }
 0x410   : > { %v11067_v5 = vadd.f32 %v8411_v3, %v10957_v46 }
 0x411   : > { %v11064_v4 = vpop.f32.mrf.mxu0  ;;  %v11071_v2 = vpop.f32.mrf.mxu1 }
 0x413   : > { %v11069_v12 = vpop.f32.mrf.mxu0  ;;  %v8414_v33 = vpop.f32.mrf.mxu1 }
 0x414   : > { %v11076_v31 = vadd.f32 %v8414_v33, %v10965_v49 }
 0x415   : > { %v11073_v50 = vpop.f32.mrf.mxu0  ;;  %v11078_v14 = vpop.f32.mrf.mxu1 }
 0x417   : > { %v8415_v19 = vpop.f32.mrf.mxu1  ;;  %v11080_v22 = vpop.f32.mrf.mxu0 }
 0x418   : > { %v11083_v34 = vadd.f32 %v8415_v19, %v10973_v15 }
 0x419   : > { %v11085_v46 = vpop.f32.mrf.mxu1  ;;  %v11087_v40 = vpop.f32.mrf.mxu0 }
 0x41b   : > { %v8418_v3 = vpop.f32.mrf.mxu1  ;;  %v11094_v33 = vpop.f32.mrf.mxu0 }
 0x41c   : > { %v11090_v23 = vadd.f32 %v8418_v3, %v10981_v62 }
 0x41d   : > { %v11092_v56 = vpop.f32.mrf.mxu1  ;;  %v11101_v19 = vpop.f32.mrf.mxu0 }
 0x41e   : > { %11972 = vst [vmem:[#allocation31_spill] sm:$0xff] %v11090_v23  ;;  %11973 = vst [vmem:[#allocation11_spill] sm:$0xff] %v11092_v56 }
 0x41f   : > { %v8419_v49 = vpop.f32.mrf.mxu1  ;;  %v11108_v3 = vpop.f32.mrf.mxu0 }
 0x420   : > { %v11097_v58 = vadd.f32 %v8419_v49, %v10989_v29 }
 0x421   : > { %v11099_v7 = vpop.f32.mrf.mxu1  ;;  %v11115_v49 = vpop.f32.mrf.mxu0 }
 0x422   : > { %11974 = vst [vmem:[#allocation15_spill] sm:$0xff] %v11097_v58  ;;  %11975 = vst [vmem:[#allocation33_spill] sm:$0xff] %v11099_v7 }
 0x423   : > { %v8422_v15 = vpop.f32.mrf.mxu1 }
 0x424   : > { %v11104_v47 = vadd.f32 %v8422_v15, %v10997_v28  ;;  %v11122_v15 = vpop.f32.mrf.mxu0 }
 0x425   : > { %v11106_v18 = vpop.f32.mrf.mxu1 }
 0x426   : > { %11976 = vst [vmem:[#allocation29_spill] sm:$0xff] %v11104_v47  ;;  %11977 = vst [vmem:[#allocation32_spill] sm:$0xff] %v11106_v18 }
 0x427   : > { %v8423_v62 = vpop.f32.mrf.mxu1 }
 0x428   : > { %v11111_v23 = vadd.f32 %v8423_v62, %v11005_v17  ;;  %v11129_v62 = vpop.f32.mrf.mxu0 }
 0x429   : > { %v11113_v36 = vpop.f32.mrf.mxu1 }
 0x42a   : > { %11978 = vst [vmem:[#allocation16_spill] sm:$0xff] %v11111_v23  ;;  %11979 = vst [vmem:[#allocation36_spill] sm:$0xff] %v11113_v36 }
 0x42b   : > { %v8426_v29 = vpop.f32.mrf.mxu1 }
 0x42c   : > { %v11118_v58 = vadd.f32 %v8426_v29, %v11013_v63  ;;  %v11136_v29 = vpop.f32.mrf.mxu0 }
 0x42d   : > { %v11120_v7 = vpop.f32.mrf.mxu1 }
 0x42e   : > { %11980 = vst [vmem:[#allocation17_spill] sm:$0xff] %v11118_v58  ;;  %11981 = vst [vmem:[#allocation38_spill] sm:$0xff] %v11120_v7 }
 0x42f   : > { %v8427_v28 = vpop.f32.mrf.mxu1 }
 0x430   : > { %v11125_v47 = vadd.f32 %v8427_v28, %v11021_v25  ;;  %v5324_v25 = vadd.f32 %v10930_v43, %v10912_v42  ;;  %v5936_v28 = vadd.f32 %v5809_v52, %v11036_v55 }
 0x431   : > { %v11127_v18 = vpop.f32.mrf.mxu1 }
 0x432   : > { %11982 = vst [vmem:[#allocation35_spill] sm:$0xff] %v11125_v47  ;;  %11983 = vst [vmem:[#allocation45_spill] sm:$0xff] %v11127_v18  ;;  %v11145_v47 = vpop.f32.mrf.mxu0 }
 0x433   : > { %v8430_v17 = vpop.f32.mrf.mxu1 }
 0x434   : > { %v11132_v23 = vadd.f32 %v8430_v17, %v11031_v51  ;;  %v5631_v51 = vadd.f32 %v11041_v6, %v5324_v25  ;;  %v5938_v17 = vadd.f32 %v11048_v39, %v11029_v13  ;;  %v11155_v42 = vpop.f32.mrf.mxu0 }
 0x435   : > { %v11134_v36 = vpop.f32.mrf.mxu1 }
 0x436   : > { %11984 = vst [vmem:[#allocation37_spill] sm:$0xff] %v11132_v23  ;;  %v11171_v39 = vpop.f32.mrf.mxu0 }
 0x437   : > { %v8431_v63 = vpop.f32.mrf.mxu1 }
 0x438   : > { %v11138_v58 = vadd.f32 %v8431_v63, %v5354_v53  ;;  %v5327_v53 = vadd.f32 %v10938_v10, %v10920_v38  ;;  %v5328_v38 = vadd.f32 %v10946_v41, %v10928_v32  ;;  %v5331_v10 = vadd.f32 %v10954_v30, %v10936_v8 }
 0x439   : > { %v11140_v7 = vpop.f32.mrf.mxu1  ;;  %v5942_v8 = vadd.f32 %v11060_v44, %v11046_v37 }
 0x43a   : > { %11985 = vst [vmem:[#allocation14_spill] sm:$0xff] %v11138_v58  ;;  %11986 = vst [vmem:[#allocation19_spill] sm:$0xff] %v11140_v7  ;;  %v5939_v58 = vadd.f32 %v8439_v48, %v11039_v61  ;;  %v5937_v7 = vadd.f32 %v5812_v26, %v5631_v51  ;;  %v5634_v55 = vadd.f32 %v11050_v0, %v5327_v53 }
 0x43b   : > { %v8474_v56 = vpop.f32.mrf.mxu1  ;;  %v5635_v41 = vadd.f32 %v11055_v60, %v5328_v38  ;;  %v5943_v60 = vadd.f32 %v11069_v12, %v11053_v9  ;;  %v5332_v9 = vadd.f32 %v10962_v24, %v10944_v16 }
 0x43c   : > { %v11157_v43 = vadd.f32 %v8474_v56, %v5938_v17  ;;  %v5940_v61 = vadd.f32 %v11064_v4, %v5634_v55 }
 0x43d   : > { %v6115_v18 = vpop.f32.mrf.mxu1  ;;  %v5941_v17 = vadd.f32 %v11073_v50, %v5635_v41  ;;  %v5638_v50 = vadd.f32 %v11062_v21, %v5331_v10  ;;  %v5335_v41 = vadd.f32 %v10970_v1, %v10952_v54  ;;  %v5639_v54 = vadd.f32 %v11071_v2, %v5332_v9 }
 0x43e   : > { %v11150_v23 = vadd.f32 %v6115_v18, %v5936_v28  ;;  %v6346_v0 = vmul.f32 %v11157_v43, %v11157_v43  ;;  %v6277_v30 = vsel %vm3039_vm3, %v11157_v43, 0.0  ;;  %v5946_v1 = vadd.f32 %v11080_v22, %v11058_v45 }
 0x43f   : > { %v8475_v63 = vpop.f32.mrf.mxu1  ;;  %v5945_v2 = vadd.f32 %v11101_v19, %v5639_v54 }
 0x440   : > { %v6344_v6 = vmul.f32 %v11150_v23, %v11150_v23  ;;  %v11162_v13 = vadd.f32 %v8475_v63, %v5939_v58  ;;  %v6274_v58 = vsel %vm3039_vm3, %v11150_v23, 0.0  ;;  %v11195_v63 = vpop.f32.mrf.mxu0  ;;  %v6379_v55 = vsel %vm3039_vm3, %v6346_v0, 0.0 }
 0x441   : > { %v6118_v52 = vpop.f32.mrf.mxu1 }
 0x442   : > { %v11164_v18 = vadd.f32 %v6118_v52, %v5937_v7  ;;  %v6376_v4 = vsel %vm3039_vm3, %v6344_v6, 0.0  ;;  %v6347_v25 = vmul.f32 %v11162_v13, %v11162_v13  ;;  %v6279_v52 = vsel %vm3039_vm3, %v11162_v13, 0.0  ;;  %v11217_v10 = vpop.f32.mrf.mxu0 }
 0x443   : > { %v8478_v56 = vpop.f32.mrf.mxu1 }
 0x444   : > { %v6275_v7 = vsel %vm3039_vm3, %v11164_v18, 0.0  ;;  %v6345_v32 = vmul.f32 %v11164_v18, %v11164_v18  ;;  %v11200_v6 = vadd.f32 %v8478_v56, %v5942_v8  ;;  %v5944_v8 = vadd.f32 %v11087_v40, %v5638_v50 }
 0x445   : > { %v6276_v48 = vadd.f32 %v6275_v7, %v6274_v58  ;;  %v6131_v26 = vpop.f32.mrf.mxu1  ;;  %v6381_v7 = vsel %vm3039_vm3, %v6347_v25, 0.0 }
 0x446   : > { %v6377_v28 = vsel %vm3039_vm3, %v6345_v32, 0.0  ;;  %v11190_v51 = vadd.f32 %v6131_v26, %v5940_v61 }
 0x447   : > { %v6278_v37 = vadd.f32 %v6277_v30, %v6276_v48  ;;  %v6378_v44 = vadd.f32 %v6377_v28, %v6376_v4  ;;  %v8479_v53 = vpop.f32.mrf.mxu1  ;;  %v6350_v30 = vmul.f32 %v11200_v6, %v11200_v6 }
 0x448   : > { %v6348_v38 = vmul.f32 %v11190_v51, %v11190_v51  ;;  %v6281_v0 = vsel %vm3039_vm3, %v11190_v51, 0.0  ;;  %v11210_v32 = vadd.f32 %v8479_v53, %v5943_v60  ;;  %v6285_v60 = vsel %vm3039_vm3, %v11200_v6, 0.0 }
 0x449   : > { %v6380_v12 = vadd.f32 %v6379_v55, %v6378_v44  ;;  %v6280_v61 = vadd.f32 %v6279_v52, %v6278_v37  ;;  %v6134_v58 = vpop.f32.mrf.mxu1  ;;  %v5947_v53 = vadd.f32 %v11094_v33, %v11067_v5  ;;  %v11239_v52 = vpop.f32.mrf.mxu0  ;;  %v5336_v5 = vadd.f32 %v10978_v27, %v10960_v11 }
 0x44a   : > { %v11212_v56 = vadd.f32 %v6134_v58, %v5941_v17  ;;  %v6383_v48 = vsel %vm3039_vm3, %v6348_v38, 0.0  ;;  %v6351_v17 = vmul.f32 %v11210_v32, %v11210_v32  ;;  %v6387_v38 = vsel %vm3039_vm3, %v6350_v30, 0.0 }
 0x44b   : > { %v6282_v16 = vadd.f32 %v6281_v0, %v6280_v61  ;;  %v6382_v24 = vadd.f32 %v6381_v7, %v6380_v12  ;;  %v8482_v21 = vpop.f32.mrf.mxu1  ;;  %v6287_v9 = vsel %vm3039_vm3, %v11210_v32, 0.0  ;;  %v5642_v33 = vadd.f32 %v11078_v14, %v5335_v41  ;;  %v11261_v41 = vpop.f32.mrf.mxu0 }
 0x44c   : > { %v6283_v26 = vsel %vm3039_vm3, %v11212_v56, 0.0  ;;  %v6349_v4 = vmul.f32 %v11212_v56, %v11212_v56  ;;  %v11244_v50 = vadd.f32 %v8482_v21, %v5946_v1  ;;  %v6389_v7 = vsel %vm3039_vm3, %v6351_v17, 0.0 }
 0x44d   : > { %v6384_v40 = vadd.f32 %v6383_v48, %v6382_v24  ;;  %v6284_v25 = vadd.f32 %v6283_v26, %v6282_v16  ;;  %v6147_v28 = vpop.f32.mrf.mxu1  ;;  %v5339_v24 = vadd.f32 %v10986_v20, %v10968_v59  ;;  %v5948_v21 = vadd.f32 %v11115_v49, %v5642_v33 }
 0x44e   : > { %v6385_v37 = vsel %vm3039_vm3, %v6349_v4, 0.0  ;;  %v11234_v44 = vadd.f32 %v6147_v28, %v5944_v8  ;;  %v6354_v30 = vmul.f32 %v11244_v50, %v11244_v50  ;;  %v5643_v59 = vadd.f32 %v11085_v46, %v5336_v5 }
 0x44f   : > { %v6286_v55 = vadd.f32 %v6285_v60, %v6284_v25  ;;  %v6386_v22 = vadd.f32 %v6385_v37, %v6384_v40  ;;  %v8483_v45 = vpop.f32.mrf.mxu1  ;;  %v5950_v20 = vadd.f32 %v11108_v3, %v11076_v31  ;;  %v6293_v40 = vsel %vm3039_vm3, %v11244_v50, 0.0 }
 0x450   : > { %v6352_v12 = vmul.f32 %v11234_v44, %v11234_v44  ;;  %v6289_v0 = vsel %vm3039_vm3, %v11234_v44, 0.0  ;;  %v11254_v8 = vadd.f32 %v8483_v45, %v5947_v53  ;;  %v5951_v17 = vadd.f32 %v11122_v15, %v11083_v34  ;;  %v11283_v53 = vpop.f32.mrf.mxu0  ;;  %v11987_v15 = vld [vmem:[#allocation11_spill] sm:$0xff] }
 0x451   : > { %v6388_v19 = vadd.f32 %v6387_v38, %v6386_v22  ;;  %v6288_v61 = vadd.f32 %v6287_v9, %v6286_v55  ;;  %v6150_v58 = vpop.f32.mrf.mxu1  ;;  %v5949_v46 = vadd.f32 %v11129_v62, %v5643_v59  ;;  %v5340_v34 = vadd.f32 %v10994_v35, %v10976_v57  ;;  %v11991_v59 = vld [vmem:[#allocation31_spill] sm:$0xff] }
 0x452   : > { %v11256_v16 = vadd.f32 %v6150_v58, %v5945_v2  ;;  %v6391_v48 = vsel %vm3039_vm3, %v6352_v12, 0.0  ;;  %v6355_v25 = vmul.f32 %v11254_v8, %v11254_v8  ;;  %v6395_v2 = vsel %vm3039_vm3, %v6354_v30, 0.0  ;;  %v11988_v58 = vld [vmem:[#allocation4_spill] sm:$0xff] }
 0x453   : > { %v6290_v11 = vadd.f32 %v6289_v0, %v6288_v61  ;;  %v6390_v27 = vadd.f32 %v6389_v7, %v6388_v19  ;;  %v8486_v14 = vpop.f32.mrf.mxu1  ;;  %v6295_v55 = vsel %vm3039_vm3, %v11254_v8, 0.0  ;;  %v5646_v62 = vadd.f32 %v11987_v15, %v5339_v24  ;;  %v11989_v7 = vld [vmem:[#allocation5_spill] sm:$0xff] }
 0x454   : > { %v6291_v26 = vsel %vm3039_vm3, %v11256_v16, 0.0  ;;  %v6353_v4 = vmul.f32 %v11256_v16, %v11256_v16  ;;  %v11288_v22 = vadd.f32 %v8486_v14, %v5950_v20  ;;  %v6397_v5 = vsel %vm3039_vm3, %v6355_v25, 0.0 }
 0x455   : > { %v6392_v49 = vadd.f32 %v6391_v48, %v6390_v27  ;;  %v6292_v54 = vadd.f32 %v6291_v26, %v6290_v11  ;;  %v6163_v1 = vpop.f32.mrf.mxu1  ;;  %v5343_v0 = vadd.f32 %v11989_v7, %v11988_v58  ;;  %v11305_v11 = vpop.f32.mrf.mxu0  ;;  %v11990_v26 = vld [vmem:[#allocation33_spill] sm:$0xff] }
 0x456   : > { %v6393_v28 = vsel %vm3039_vm3, %v6353_v4, 0.0  ;;  %v11278_v60 = vadd.f32 %v6163_v1, %v5948_v21  ;;  %v5952_v21 = vadd.f32 %v11145_v47, %v5646_v62  ;;  %v6358_v27 = vmul.f32 %v11288_v22, %v11288_v22  ;;  %v11993_v62 = vld [vmem:[#allocation6_spill] sm:$0xff] }
 0x457   : > { %v6294_v37 = vadd.f32 %v6293_v40, %v6292_v54  ;;  %v6394_v31 = vadd.f32 %v6393_v28, %v6392_v49  ;;  %v8487_v3 = vpop.f32.mrf.mxu1  ;;  %v5647_v4 = vadd.f32 %v11990_v26, %v5340_v34  ;;  %v5954_v47 = vadd.f32 %v11136_v29, %v11991_v59 }
 0x458   : > { %v6356_v45 = vmul.f32 %v11278_v60, %v11278_v60  ;;  %v6297_v33 = vsel %vm3039_vm3, %v11278_v60, 0.0  ;;  %v11298_v19 = vadd.f32 %v8487_v3, %v5951_v17  ;;  %v6301_v1 = vsel %vm3039_vm3, %v11288_v22, 0.0  ;;  %v11992_v17 = vld [vmem:[#allocation15_spill] sm:$0xff] }
 0x459   : > { %v6396_v38 = vadd.f32 %v6395_v2, %v6394_v31  ;;  %v6296_v9 = vadd.f32 %v6295_v55, %v6294_v37  ;;  %v6166_v12 = vpop.f32.mrf.mxu1  ;;  %v5953_v37 = vadd.f32 %v11171_v39, %v5647_v4  ;;  %v11327_v2 = vpop.f32.mrf.mxu0  ;;  %v6403_v55 = vsel %vm3039_vm3, %v6358_v27, 0.0 }
 0x45a   : > { %v11300_v61 = vadd.f32 %v6166_v12, %v5949_v46  ;;  %v6399_v14 = vsel %vm3039_vm3, %v6356_v45, 0.0  ;;  %v6359_v40 = vmul.f32 %v11298_v19, %v11298_v19  ;;  %v5955_v46 = vadd.f32 %v11155_v42, %v11992_v17 }
 0x45b   : > { %v6298_v57 = vadd.f32 %v6297_v33, %v6296_v9  ;;  %v6398_v35 = vadd.f32 %v6397_v5, %v6396_v38  ;;  %v8490_v24 = vpop.f32.mrf.mxu1  ;;  %v6303_v45 = vsel %vm3039_vm3, %v11298_v19, 0.0  ;;  %v11994_v38 = vld [vmem:[#allocation10_spill] sm:$0xff]  ;;  %v11995_v9 = vld [vmem:[#allocation32_spill] sm:$0xff]  ;;  %v5908_v26 = vpop.f32.mrf.mxu0 }
 0x45c   : > { %v6299_v30 = vsel %vm3039_vm3, %v11300_v61, 0.0  ;;  %v6357_v48 = vmul.f32 %v11300_v61, %v11300_v61  ;;  %v11332_v34 = vadd.f32 %v8490_v24, %v5954_v47  ;;  %v5344_v42 = vadd.f32 %v11994_v38, %v11993_v62  ;;  %v11997_v24 = vld [vmem:[#allocation12_spill] sm:$0xff] }
 0x45d   : > { %v6400_v20 = vadd.f32 %v6399_v14, %v6398_v35  ;;  %v6300_v49 = vadd.f32 %v6299_v30, %v6298_v57  ;;  %v6179_v54 = vpop.f32.mrf.mxu1  ;;  %v5650_v39 = vadd.f32 %v11995_v9, %v5343_v0  ;;  %v6405_v58 = vsel %vm3039_vm3, %v6359_v40, 0.0  ;;  %v11996_v35 = vld [vmem:[#allocation7_spill] sm:$0xff]  ;;  %v8466_v38 = vpop.f32.mrf.mxu0 }
 0x45e   : > { %v6401_v25 = vsel %vm3039_vm3, %v6357_v48, 0.0  ;;  %v11322_v28 = vadd.f32 %v6179_v54, %v5952_v21  ;;  %v5347_v27 = vadd.f32 %v11997_v24, %v11996_v35  ;;  %v6362_v4 = vmul.f32 %v11332_v34, %v11332_v34 }
 0x45f   : > { %v6302_v31 = vadd.f32 %v6301_v1, %v6300_v49  ;;  %v6402_v29 = vadd.f32 %v6401_v25, %v6400_v20  ;;  %v8491_v3 = vpop.f32.mrf.mxu1  ;;  %v5956_v14 = vadd.f32 %v11217_v10, %v5650_v39  ;;  %v11998_v49 = vld [vmem:[#allocation36_spill] sm:$0xff]  ;;  %v11999_v1 = vld [vmem:[#allocation29_spill] sm:$0xff] }
 0x460   : > { %v6360_v15 = vmul.f32 %v11322_v28, %v11322_v28  ;;  %v6305_v7 = vsel %vm3039_vm3, %v11322_v28, 0.0  ;;  %v11342_v21 = vadd.f32 %v8491_v3, %v5955_v46  ;;  %v5651_v54 = vadd.f32 %v11998_v49, %v5344_v42  ;;  %v12000_v3 = vld [vmem:[#allocation16_spill] sm:$0xff] }
 0x461   : > { %v6404_v12 = vadd.f32 %v6403_v55, %v6402_v29  ;;  %v6304_v5 = vadd.f32 %v6303_v45, %v6302_v31  ;;  %v6182_v33 = vpop.f32.mrf.mxu1  ;;  %v5958_v10 = vadd.f32 %v11195_v63, %v11999_v1  ;;  %v6309_v46 = vsel %vm3039_vm3, %v11332_v34, 0.0  ;;  %v5921_v1 = vpop.f32.mrf.mxu0 }
 0x462   : > { %v11344_v57 = vadd.f32 %v6182_v33, %v5953_v37  ;;  %v6407_v59 = vsel %vm3039_vm3, %v6360_v15, 0.0  ;;  %v6363_v37 = vmul.f32 %v11342_v21, %v11342_v21  ;;  %v5959_v55 = vadd.f32 %v11239_v52, %v12000_v3  ;;  %v12002_v33 = vld [vmem:[#allocation28_spill] sm:$0xff]  ;;  %v12003_v52 = vld [vmem:[#allocation38_spill] sm:$0xff] }
 0x463   : > { %v6306_v30 = vadd.f32 %v6305_v7, %v6304_v5  ;;  %v6406_v48 = vadd.f32 %v6405_v58, %v6404_v12  ;;  %v8494_v0 = vpop.f32.mrf.mxu1  ;;  %v5957_v45 = vadd.f32 %v11261_v41, %v5651_v54  ;;  %v6411_v42 = vsel %vm3039_vm3, %v6362_v4, 0.0  ;;  %v12001_v5 = vld [vmem:[#allocation9_spill] sm:$0xff]  ;;  %v12004_v4 = vld [vmem:[#allocation8_spill] sm:$0xff] }
 0x464   : > { %v6307_v47 = vsel %vm3039_vm3, %v11344_v57, 0.0  ;;  %v6361_v20 = vmul.f32 %v11344_v57, %v11344_v57  ;;  %v6311_v9 = vsel %vm3039_vm3, %v11342_v21, 0.0  ;;  %v11372_v39 = vadd.f32 %v8494_v0, %v5958_v10 }
 0x465   : > { %v6408_v40 = vadd.f32 %v6407_v59, %v6406_v48  ;;  %v6308_v25 = vadd.f32 %v6307_v47, %v6306_v30  ;;  %v6195_v17 = vpop.f32.mrf.mxu1  ;;  %v5348_v58 = vadd.f32 %v12002_v33, %v12001_v5  ;;  %v5654_v7 = vadd.f32 %v12003_v52, %v5347_v27  ;;  %v12005_v59 = vld [vmem:[#allocation34_spill] sm:$0xff]  ;;  %v8467_v52 = vpop.f32.mrf.mxu0 }
 0x466   : > { %v6409_v31 = vsel %vm3039_vm3, %v6361_v20, 0.0  ;;  %v11364_v29 = vadd.f32 %v6195_v17, %v5956_v14  ;;  %v6413_v14 = vsel %vm3039_vm3, %v6363_v37, 0.0  ;;  %v5351_v47 = vadd.f32 %v12005_v59, %v12004_v4 }
 0x467   : > { %v6310_v15 = vadd.f32 %v6309_v46, %v6308_v25  ;;  %v6410_v63 = vadd.f32 %v6409_v31, %v6408_v40  ;;  %v8495_v62 = vpop.f32.mrf.mxu1  ;;  %v5960_v20 = vadd.f32 %v11305_v11, %v5654_v7  ;;  %v6366_v10 = vmul.f32 %v11372_v39, %v11372_v39  ;;  %v12006_v46 = vld [vmem:[#allocation45_spill] sm:$0xff] }
 0x468   : > { %v6364_v12 = vmul.f32 %v11364_v29, %v11364_v29  ;;  %v6313_v30 = vsel %vm3039_vm3, %v11364_v29, 0.0  ;;  %v11382_v48 = vadd.f32 %v8495_v62, %v5959_v55  ;;  %v5655_v37 = vadd.f32 %v12006_v46, %v5348_v58  ;;  %v12007_v31 = vld [vmem:[#allocation17_spill] sm:$0xff] }
 0x469   : > { %v6412_v41 = vadd.f32 %v6411_v42, %v6410_v63  ;;  %v6312_v35 = vadd.f32 %v6311_v9, %v6310_v15  ;;  %v6198_v24 = vpop.f32.mrf.mxu1  ;;  %v5962_v11 = vadd.f32 %v11283_v53, %v12007_v31  ;;  %v6317_v15 = vsel %vm3039_vm3, %v11372_v39, 0.0  ;;  %v12008_v9 = vld [vmem:[#allocation35_spill] sm:$0xff] }
 0x46a   : > { %v11384_v0 = vadd.f32 %v6198_v24, %v5957_v45  ;;  %v6415_v40 = vsel %vm3039_vm3, %v6364_v12, 0.0  ;;  %v6367_v63 = vmul.f32 %v11382_v48, %v11382_v48  ;;  %v5963_v12 = vadd.f32 %v11327_v2, %v12008_v9 }
 0x46b   : > { %v6314_v49 = vadd.f32 %v6313_v30, %v6312_v35  ;;  %v6414_v54 = vadd.f32 %v6413_v14, %v6412_v41  ;;  %v8498_v27 = vpop.f32.mrf.mxu1  ;;  %v5961_v5 = vadd.f32 %v5908_v26, %v5655_v37  ;;  %v6419_v7 = vsel %vm3039_vm3, %v6366_v10, 0.0 }
 0x46c   : > { %v6315_v25 = vsel %vm3039_vm3, %v11384_v0, 0.0  ;;  %v6365_v17 = vmul.f32 %v11384_v0, %v11384_v0  ;;  %v6319_v41 = vsel %vm3039_vm3, %v11382_v48, 0.0  ;;  %v11411_v35 = vadd.f32 %v8498_v27, %v5962_v11  ;;  %v12010_v27 = vld [vmem:[#allocation13_spill] sm:$0xff] }
 0x46d   : > { %v6416_v3 = vadd.f32 %v6415_v40, %v6414_v54  ;;  %v6316_v55 = vadd.f32 %v6315_v25, %v6314_v49  ;;  %v6211_v45 = vpop.f32.mrf.mxu1  ;;  %v5658_v14 = vadd.f32 %v11134_v36, %v5351_v47  ;;  %v6421_v26 = vsel %vm3039_vm3, %v6367_v63, 0.0  ;;  %v12009_v54 = vld [vmem:[#allocation30_spill] sm:$0xff]  ;;  %v5924_v36 = vpop.f32.mrf.mxu0 }
 0x46e   : > { %v6417_v62 = vsel %vm3039_vm3, %v6365_v17, 0.0  ;;  %v11404_v42 = vadd.f32 %v6211_v45, %v5960_v20  ;;  %v5352_v10 = vadd.f32 %v12010_v27, %v12009_v54  ;;  %v6370_v47 = vmul.f32 %v11411_v35, %v11411_v35  ;;  %v12012_v45 = vld [vmem:[#allocation37_spill] sm:$0xff] }
 0x46f   : > { %v6318_v33 = vadd.f32 %v6317_v15, %v6316_v55  ;;  %v6418_v58 = vadd.f32 %v6417_v62, %v6416_v3  ;;  %v8499_v53 = vpop.f32.mrf.mxu1  ;;  %v5964_v40 = vadd.f32 %v5921_v1, %v5658_v14  ;;  %v12011_v3 = vld [vmem:[#allocation19_spill] sm:$0xff]  ;;  %v5966_v15 = vadd.f32 %v8466_v38, %v12012_v45 }
 0x470   : > { %v6368_v24 = vmul.f32 %v11404_v42, %v11404_v42  ;;  %v6321_v59 = vsel %vm3039_vm3, %v11404_v42, 0.0  ;;  %v11419_v20 = vadd.f32 %v8499_v53, %v5963_v12  ;;  %v5659_v55 = vadd.f32 %v12011_v3, %v5352_v10  ;;  %v6588_v3 = vld [vmem:[%s11863_s3 + $0x18] sm:$0xff] }
 0x471   : > { %v6420_v30 = vadd.f32 %v6419_v7, %v6418_v58  ;;  %v6320_v4 = vadd.f32 %v6319_v41, %v6318_v33  ;;  %v6214_v2 = vpop.f32.mrf.mxu1  ;;  %v6325_v9 = vsel %vm3039_vm3, %v11411_v35, 0.0  ;;  %v12013_v58 = vld [vmem:[#allocation14_spill] sm:$0xff]  ;;  %v6427_v38 = vsel %vm3039_vm3, %v6370_v47, 0.0 }
 0x472   : > { %v11421_v49 = vadd.f32 %v6214_v2, %v5961_v5  ;;  %v6423_v37 = vsel %vm3039_vm3, %v6368_v24, 0.0  ;;  %v6371_v12 = vmul.f32 %v11419_v20, %v11419_v20  ;;  %v5967_v53 = vadd.f32 %v8467_v52, %v12013_v58  ;;  %v6586_v58 = vld [vmem:[%s11863_s3 + $0x8] sm:$0xff] }
 0x473   : > { %v6322_v25 = vadd.f32 %v6321_v59, %v6320_v4  ;;  %v6422_v17 = vadd.f32 %v6421_v26, %v6420_v30  ;;  %v8502_v46 = vpop.f32.mrf.mxu1  ;;  %v5965_v7 = vadd.f32 %v5924_v36, %v5659_v55  ;;  %v6327_v30 = vsel %vm3039_vm3, %v11419_v20, 0.0 }
 0x474   : > { %v6323_v31 = vsel %vm3039_vm3, %v11421_v49, 0.0  ;;  %v6369_v11 = vmul.f32 %v11421_v49, %v11421_v49  ;;  %v11445_v4 = vadd.f32 %v8502_v46, %v5966_v15  ;;  %v6429_v27 = vsel %vm3039_vm3, %v6371_v12, 0.0 }
 0x475   : > { %v6424_v1 = vadd.f32 %v6423_v37, %v6422_v17  ;;  %v6324_v63 = vadd.f32 %v6323_v31, %v6322_v25  ;;  %v6227_v62 = vpop.f32.mrf.mxu1 }
 0x476   : > { %v6425_v5 = vsel %vm3039_vm3, %v6369_v11, 0.0  ;;  %v11439_v33 = vadd.f32 %v6227_v62, %v5964_v40  ;;  %v6374_v46 = vmul.f32 %v11445_v4, %v11445_v4  ;;  %v6333_v55 = vsel %vm3039_vm3, %v11445_v4, 0.0 }
 0x477   : > { %v6326_v41 = vadd.f32 %v6325_v9, %v6324_v63  ;;  %v6426_v24 = vadd.f32 %v6425_v5, %v6424_v1  ;;  %v8503_v14 = vpop.f32.mrf.mxu1  ;;  %v8644_v1 = vmov 0.0   ;;  %v6587_v63 = vld [vmem:[%s11863_s3 + $0x10] sm:$0xff] }
 0x478   : > { %v6372_v2 = vmul.f32 %v11439_v33, %v11439_v33  ;;  %v6329_v52 = vsel %vm3039_vm3, %v11439_v33, 0.0  ;;  %v11452_v10 = vadd.f32 %v8503_v14, %v5967_v53  ;;  %8504 = vmatprep.subr.mxu0 %v8644_v1  ;;  %8512 = vmatprep.mubr.msk.f32.mxu0 %vm8645_vm5, %v8644_v1  ;;  %v6435_v12 = vsel %vm3039_vm3, %v6374_v46, 0.0 }
 0x479   : > { %v6428_v26 = vadd.f32 %v6427_v38, %v6426_v24  ;;  %v6328_v59 = vadd.f32 %v6327_v30, %v6326_v41  ;;  %v6230_v54 = vpop.f32.mrf.mxu1  ;;  %8505 = vmatpush3.msra.mxu0 %v6588_v3  ;;  %8515 = vmatprep.subr.mxu1 %v8644_v1  ;;  %v6585_v24 = vld [vmem:[%s11863_s3] sm:$0xff] }
 0x47a   : > { %v11454_v40 = vadd.f32 %v6230_v54, %v5965_v7  ;;  %v6431_v36 = vsel %vm3039_vm3, %v6372_v2, 0.0  ;;  %v6375_v45 = vmul.f32 %v11452_v10, %v11452_v10  ;;  %v6335_v5 = vsel %vm3039_vm3, %v11452_v10, 0.0  ;;  %8506 = vmatprep.subr.mxu0 %v8644_v1  ;;  %8517 = vmatprep.mubr.msk.f32.mxu1 %vm8645_vm5, %v8644_v1 }
 0x47b   : > { %v6330_v25 = vadd.f32 %v6329_v52, %v6328_v59  ;;  %v6430_v17 = vadd.f32 %v6429_v27, %v6428_v26  ;;  %8507 = vmatpush3.msra.mxu0 %v6587_v63 }
 0x47c   : > { %v6331_v47 = vsel %vm3039_vm3, %v11454_v40, 0.0  ;;  %v6373_v37 = vmul.f32 %v11454_v40, %v11454_v40  ;;  %v6437_v41 = vsel %vm3039_vm3, %v6375_v45, 0.0  ;;  %8508 = vmatprep.subr.mxu0 %v8644_v1 }
 0x47d   : > { %v6432_v31 = vadd.f32 %v6431_v36, %v6430_v17  ;;  %v6332_v11 = vadd.f32 %v6331_v47, %v6330_v25  ;;  %8509 = vmatpush3.msra.mxu0 %v6586_v58 }
 0x47e   : > { %v6433_v15 = vsel %vm3039_vm3, %v6373_v37, 0.0  ;;  %8510 = vmatprep.subr.mxu0 %v8644_v1 }
 0x47f   : > { %v6334_v62 = vadd.f32 %v6333_v55, %v6332_v11  ;;  %v6434_v9 = vadd.f32 %v6433_v15, %v6432_v31  ;;  %8511 = vmatpush3.msra.mxu0 %v6585_v24 }
 0x481   : > { %v6336_v53 = vadd.f32 %v6335_v5, %v6334_v62  ;;  %v6436_v7 = vadd.f32 %v6435_v12, %v6434_v9 }
 0x483   : > { %v6337_v14 = vrot.slane %v6336_v53, 4  ;;  %v6438_v38 = vadd.f32 %v6437_v41, %v6436_v7 }
 0x485   : > { %v6338_v30 = vadd.f32 %v6337_v14, %v6336_v53  ;;  %v6439_v2 = vrot.slane %v6438_v38, 4 }
 0x487   : > { %v6339_v26 = vrot.slane %v6338_v30, 2  ;;  %v6440_v59 = vadd.f32 %v6439_v2, %v6438_v38 }
 0x489   : > { %v6340_v54 = vadd.f32 %v6339_v26, %v6338_v30  ;;  %v6441_v27 = vrot.slane %v6440_v59, 2 }
 0x48b   : > { %v6341_v52 = vrot.slane %v6340_v54, 1  ;;  %v6442_v25 = vadd.f32 %v6441_v27, %v6440_v59 }
 0x48d   : > { %v6342_v17 = vadd.f32 %v6341_v52, %v6340_v54  ;;  %v6443_v46 = vrot.slane %v6442_v25, 1 }
 0x48f   : > { %v11484_v36 = vmul.f32 0.00390625, %v6342_v17  ;;  %v6444_v47 = vadd.f32 %v6443_v46, %v6442_v25 }
 0x491   : > { %v6445_v37 = vmul.f32 0.00390625, %v6444_v47  ;;  %v6446_v31 = vmul.f32 %v11484_v36, %v11484_v36  ;;  %v6458_v3 = vsub.f32 %v11256_v16, %v11484_v36  ;;  %v6461_v55 = vsub.f32 %v11278_v60, %v11484_v36 }
 0x492   : > { %v6462_v15 = vsub.f32 %v11300_v61, %v11484_v36  ;;  %v6463_v1 = vsub.f32 %v11288_v22, %v11484_v36  ;;  %v6464_v63 = vsub.f32 %v11298_v19, %v11484_v36  ;;  %v6465_v62 = vsub.f32 %v11322_v28, %v11484_v36 }
 0x493   : > { %v6447_v11 = vsub.f32 %v6445_v37, %v6446_v31  ;;  %v6466_v9 = vsub.f32 %v11344_v57, %v11484_v36  ;;  %v6467_v16 = vsub.f32 %v11332_v34, %v11484_v36  ;;  %v6468_v60 = vsub.f32 %v11342_v21, %v11484_v36 }
 0x494   : > { %v6469_v61 = vsub.f32 %v11364_v29, %v11484_v36  ;;  %v6470_v22 = vsub.f32 %v11384_v0, %v11484_v36  ;;  %v6471_v19 = vsub.f32 %v11372_v39, %v11484_v36  ;;  %v6472_v28 = vsub.f32 %v11382_v48, %v11484_v36 }
 0x495   : > { %v6448_v45 = vmax.f32 %v6447_v11, 0.0  ;;  %v6473_v57 = vsub.f32 %v11404_v42, %v11484_v36  ;;  %v6474_v34 = vsub.f32 %v11421_v49, %v11484_v36  ;;  %v6475_v21 = vsub.f32 %v11411_v35, %v11484_v36 }
 0x496   : > { %v6476_v29 = vsub.f32 %v11419_v20, %v11484_v36  ;;  %v6477_v0 = vsub.f32 %v11439_v33, %v11484_v36  ;;  %v6478_v39 = vsub.f32 %v11454_v40, %v11484_v36  ;;  %v6479_v48 = vsub.f32 %v11445_v4, %v11484_v36 }
 0x497   : > { %v6480_v42 = vsub.f32 %v11452_v10, %v11484_v36  ;;  %v6481_v12 = vadd.f32 1e-05, %v6448_v45  ;;  %v6449_v35 = vsub.f32 %v11150_v23, %v11484_v36  ;;  %v6450_v20 = vsub.f32 %v11164_v18, %v11484_v36 }
 0x498   : > { %v6451_v49 = vsub.f32 %v11157_v43, %v11484_v36  ;;  %v6452_v33 = vsub.f32 %v11162_v13, %v11484_v36  ;;  %v6453_v4 = vsub.f32 %v11190_v51, %v11484_v36  ;;  %v6454_v10 = vsub.f32 %v11212_v56, %v11484_v36 }
 0x499   : > { %8626 = vrsqrt.f32 %v6481_v12  ;;  %v6455_v40 = vsub.f32 %v11200_v6, %v11484_v36  ;;  %v6456_v23 = vsub.f32 %v11210_v32, %v11484_v36  ;;  %v6457_v18 = vsub.f32 %v11234_v44, %v11484_v36 }
 0x49a   : > { %v6459_v43 = vsub.f32 %v11244_v50, %v11484_v36  ;;  %v6460_v13 = vsub.f32 %v11254_v8, %v11484_v36 }
 0x4a6   : > { %v8627_v5 = vpop.eup %8626 }
 0x4a7   : > { %v11552_v51 = vmul.f32 %v8627_v5, %v6449_v35  ;;  %v11554_v58 = vmul.f32 %v8627_v5, %v6450_v20  ;;  %v6485_v56 = vmul.f32 %v8627_v5, %v6451_v49  ;;  %v6486_v53 = vmul.f32 %v8627_v5, %v6452_v33 }
 0x4a8   : > { %v6487_v6 = vmul.f32 %v8627_v5, %v6453_v4  ;;  %v6488_v7 = vmul.f32 %v8627_v5, %v6454_v10  ;;  %v6489_v41 = vmul.f32 %v8627_v5, %v6455_v40  ;;  %v6490_v24 = vmul.f32 %v8627_v5, %v6456_v23 }
 0x4a9   : > { %v6491_v32 = vmul.f32 %v8627_v5, %v6457_v18  ;;  %v6492_v14 = vmul.f32 %v8627_v5, %v6458_v3  ;;  %v6493_v38 = vmul.f32 %v8627_v5, %v6459_v43  ;;  %v6494_v44 = vmul.f32 %v8627_v5, %v6460_v13 }
 0x4aa   : > { %v6495_v30 = vmul.f32 %v8627_v5, %v6461_v55  ;;  %v6496_v2 = vmul.f32 %v8627_v5, %v6462_v15  ;;  %v6497_v50 = vmul.f32 %v8627_v5, %v6463_v1  ;;  %v6498_v26 = vmul.f32 %v8627_v5, %v6464_v63 }
 0x4ab   : > { %v6499_v59 = vmul.f32 %v8627_v5, %v6465_v62  ;;  %v6500_v8 = vmul.f32 %v8627_v5, %v6466_v9  ;;  %v6501_v54 = vmul.f32 %v8627_v5, %v6467_v16  ;;  %v6502_v27 = vmul.f32 %v8627_v5, %v6468_v60 }
 0x4ac   : > { %v6503_v52 = vmul.f32 %v8627_v5, %v6469_v61  ;;  %v6504_v25 = vmul.f32 %v8627_v5, %v6470_v22  ;;  %v6505_v17 = vmul.f32 %v8627_v5, %v6471_v19  ;;  %v6506_v46 = vmul.f32 %v8627_v5, %v6472_v28 }
 0x4ad   : > { %v6507_v36 = vmul.f32 %v8627_v5, %v6473_v57  ;;  %v6508_v47 = vmul.f32 %v8627_v5, %v6474_v34  ;;  %v11556_v37 = vmul.f32 %v8627_v5, %v6475_v21  ;;  %v11558_v31 = vmul.f32 %v8627_v5, %v6476_v29 }
 0x4ae   : > { %v11560_v11 = vmul.f32 %v8627_v5, %v6477_v0  ;;  %v11562_v3 = vmul.f32 %v8627_v5, %v6478_v39  ;;  %v11564_v55 = vmul.f32 %v8627_v5, %v6479_v48  ;;  %v11566_v45 = vmul.f32 %v8627_v5, %v6480_v42 }
 0x4af   : > { %v6515_v15 = vsel %vm3039_vm3, %v11552_v51, 0.0  ;;  %v6516_v1 = vsel %vm3039_vm3, %v11554_v58, 0.0  ;;  %v6518_v62 = vsel %vm3039_vm3, %v6485_v56, 0.0  ;;  %v6520_v9 = vsel %vm3039_vm3, %v6486_v53, 0.0 }
 0x4b0   : > { %v6517_v63 = vadd.f32 %v6516_v1, %v6515_v15  ;;  %v6522_v60 = vsel %vm3039_vm3, %v6487_v6, 0.0  ;;  %v6524_v61 = vsel %vm3039_vm3, %v6488_v7, 0.0  ;;  %v6526_v22 = vsel %vm3039_vm3, %v6489_v41, 0.0 }
 0x4b1   : > { %v6528_v19 = vsel %vm3039_vm3, %v6490_v24, 0.0  ;;  %v6530_v28 = vsel %vm3039_vm3, %v6491_v32, 0.0  ;;  %v6532_v57 = vsel %vm3039_vm3, %v6492_v14, 0.0  ;;  %v6534_v34 = vsel %vm3039_vm3, %v6493_v38, 0.0 }
 0x4b2   : > { %v6519_v16 = vadd.f32 %v6518_v62, %v6517_v63  ;;  %v11582_v29 = vsel %vm3039_vm3, %v6494_v44, 0.0  ;;  %v11585_v0 = vsel %vm3039_vm3, %v6495_v30, 0.0  ;;  %v11588_v39 = vsel %vm3039_vm3, %v6496_v2, 0.0 }
 0x4b3   : > { %v11591_v48 = vsel %vm3039_vm3, %v6497_v50, 0.0  ;;  %v11594_v42 = vsel %vm3039_vm3, %v6498_v26, 0.0  ;;  %v11597_v12 = vsel %vm3039_vm3, %v6499_v59, 0.0  ;;  %v11600_v35 = vsel %vm3039_vm3, %v6500_v8, 0.0 }
 0x4b4   : > { %v6521_v21 = vadd.f32 %v6520_v9, %v6519_v16  ;;  %v11603_v49 = vsel %vm3039_vm3, %v6501_v54, 0.0  ;;  %v11606_v33 = vsel %vm3039_vm3, %v6502_v27, 0.0  ;;  %v11609_v4 = vsel %vm3039_vm3, %v6503_v52, 0.0 }
 0x4b5   : > { %12014 = vst [vmem:[#allocation40_spill] sm:$0xff] %v11609_v4  ;;  %v11612_v10 = vsel %vm3039_vm3, %v6504_v25, 0.0  ;;  %v11615_v40 = vsel %vm3039_vm3, %v6505_v17, 0.0  ;;  %v11618_v5 = vsel %vm3039_vm3, %v6506_v46, 0.0  ;;  %v11621_v23 = vsel %vm3039_vm3, %v6507_v36, 0.0 }
 0x4b6   : > { %v6523_v20 = vadd.f32 %v6522_v60, %v6521_v21  ;;  %12015 = vst [vmem:[#allocation20_spill] sm:$0xff] %v11612_v10  ;;  %12016 = vst [vmem:[#allocation42_spill] sm:$0xff] %v11615_v40  ;;  %v6761_v43 = vmax.f32 %v11562_v3, %v11566_v45  ;;  %v6746_v13 = vmax.f32 %v11552_v51, %v6485_v56 }
 0x4b7   : > { %12017 = vst [vmem:[#allocation39_spill] sm:$0xff] %v11618_v5  ;;  %12018 = vst [vmem:[#allocation41_spill] sm:$0xff] %v11621_v23  ;;  %v6747_v15 = vmax.f32 %v11554_v58, %v6486_v53  ;;  %v6748_v1 = vmax.f32 %v6487_v6, %v6489_v41  ;;  %v6749_v63 = vmax.f32 %v6488_v7, %v6490_v24 }
 0x4b8   : > { %v6525_v18 = vadd.f32 %v6524_v61, %v6523_v20  ;;  %v6750_v62 = vmax.f32 %v6491_v32, %v6493_v38  ;;  %v6751_v9 = vmax.f32 %v6492_v14, %v6494_v44  ;;  %v6809_v60 = vrot.slane %v6761_v43, 1 }
 0x4b9   : > { %v6752_v21 = vmax.f32 %v6495_v30, %v6497_v50  ;;  %v6753_v40 = vmax.f32 %v6496_v2, %v6498_v26  ;;  %v6754_v5 = vmax.f32 %v6499_v59, %v6501_v54  ;;  %v6755_v10 = vmax.f32 %v6500_v8, %v6502_v27 }
 0x4ba   : > { %v6527_v16 = vadd.f32 %v6526_v22, %v6525_v18  ;;  %v6756_v4 = vmax.f32 %v6503_v52, %v6505_v17  ;;  %v6757_v23 = vmax.f32 %v6504_v25, %v6506_v46  ;;  %v11628_v20 = vsel %vm3039_vm3, %v6508_v47, 0.0 }
 0x4bb   : > { %v6758_v51 = vmax.f32 %v6507_v36, %v11556_v37  ;;  %v6759_v58 = vmax.f32 %v6508_v47, %v11558_v31  ;;  %v11632_v56 = vmax.f32 %v6761_v43, %v6809_v60  ;;  %v6760_v53 = vmax.f32 %v11560_v11, %v11564_v55 }
 0x4bc   : > { %v6529_v61 = vadd.f32 %v6528_v19, %v6527_v16  ;;  %v6770_v6 = vrot.slane %v6746_v13, 1  ;;  %v6771_v7 = vrot.slane %v6748_v1, 1  ;;  %v6772_v24 = vrot.slane %v6750_v62, 1 }
 0x4bd   : > { %v6773_v32 = vrot.slane %v6752_v21, 1  ;;  %v6774_v14 = vrot.slane %v6754_v5, 1  ;;  %v6775_v38 = vrot.slane %v6756_v4, 1  ;;  %v6776_v44 = vrot.slane %v6758_v51, 1 }
 0x4be   : > { %v6531_v41 = vadd.f32 %v6530_v28, %v6529_v61  ;;  %v6777_v30 = vrot.slane %v6760_v53, 1  ;;  %v6802_v2 = vrot.slane %v6747_v15, 1  ;;  %v6803_v26 = vrot.slane %v6749_v63, 1 }
 0x4bf   : > { %v6804_v59 = vrot.slane %v6751_v9, 1  ;;  %v6805_v8 = vrot.slane %v6753_v40, 1  ;;  %v6806_v54 = vrot.slane %v6755_v10, 1  ;;  %v6807_v27 = vrot.slane %v6757_v23, 1 }
 0x4c0   : > { %v6533_v50 = vadd.f32 %v6532_v57, %v6531_v41  ;;  %v6808_v52 = vrot.slane %v6759_v58, 1  ;;  %v11636_v25 = vmax.f32 %v6746_v13, %v6770_v6  ;;  %v11638_v46 = vmax.f32 %v6748_v1, %v6771_v7 }
 0x4c1   : > { %v11640_v36 = vmax.f32 %v6750_v62, %v6772_v24  ;;  %v11642_v47 = vmax.f32 %v6752_v21, %v6773_v32  ;;  %v11644_v22 = vmax.f32 %v6754_v5, %v6774_v14  ;;  %v11646_v19 = vmax.f32 %v6756_v4, %v6775_v38 }
 0x4c2   : > { %v6535_v17 = vadd.f32 %v6534_v34, %v6533_v50  ;;  %v11648_v28 = vmax.f32 %v6758_v51, %v6776_v44  ;;  %v11650_v57 = vmax.f32 %v6747_v15, %v6802_v2  ;;  %v11653_v43 = vmax.f32 %v6749_v63, %v6803_v26 }
 0x4c3   : > { %v11655_v34 = vmax.f32 %v6751_v9, %v6804_v59  ;;  %v11657_v13 = vmax.f32 %v6753_v40, %v6805_v8  ;;  %v11659_v1 = vmax.f32 %v6760_v53, %v6777_v30  ;;  %v11661_v62 = vmax.f32 %v6757_v23, %v6807_v27 }
 0x4c4   : > { %v6537_v18 = vadd.f32 %v11582_v29, %v6535_v17  ;;  %v11663_v5 = vmax.f32 %v6759_v58, %v6808_v52  ;;  %v6947_v4 = vrot.slane %v11650_v57, 4  ;;  %v11667_v16 = vmax.f32 %v6755_v10, %v6806_v54 }
 0x4c5   : > { %v6948_v29 = vrot.slane %v11653_v43, 3  ;;  %v6950_v63 = vrot.slane %v11655_v34, 2  ;;  %v6952_v9 = vrot.slane %v11657_v13, 1  ;;  %v6955_v40 = vrot.slane %v11661_v62, 7 }
 0x4c6   : > { %v6539_v15 = vadd.f32 %v11585_v0, %v6537_v18  ;;  %v6957_v60 = vrot.slane %v11663_v5, 6  ;;  %v6959_v23 = vrot.slane %v11632_v56, 5  ;;  %v6834_v0 = vrot.slane %v11638_v46, 7 }
 0x4c7   : > { %v6949_v61 = vsel %vm6835_vm9, %v6948_v29, %v6947_v4  ;;  %v6837_v10 = vrot.slane %v11640_v36, 6  ;;  %v6873_v58 = vrot.slane %v11636_v25, 4  ;;  %v6874_v53 = vrot.slane %v11638_v46, 3 }
 0x4c8   : > { %v6541_v21 = vadd.f32 %v11588_v39, %v6539_v15  ;;  %v6951_v51 = vsel %vm6838_vm10, %v6950_v63, %v6949_v61  ;;  %v6890_v6 = vrot.slane %v11636_v25, 6  ;;  %v6891_v39 = vrot.slane %v11638_v46, 5 }
 0x4c9   : > { %v6953_v41 = vsel %vm6841_vm11, %v6952_v9, %v6951_v51  ;;  %v6915_v24 = vrot.slane %v11653_v43, 7  ;;  %v6917_v14 = vrot.slane %v11655_v34, 6  ;;  %v6930_v38 = vrot.slane %v11650_v57, 2 }
 0x4ca   : > { %v6543_v7 = vadd.f32 %v11591_v48, %v6541_v21  ;;  %v6954_v32 = vsel %vm6844_vm12, %v11667_v16, %v6953_v41  ;;  %v6931_v44 = vrot.slane %v11653_v43, 1  ;;  %v6964_v48 = vrot.slane %v11650_v57, 6 }
 0x4cb   : > { %v6956_v2 = vsel %vm6847_vm13, %v6955_v40, %v6954_v32  ;;  %v6856_v50 = vrot.slane %v11636_v25, 2  ;;  %v6857_v59 = vrot.slane %v11638_v46, 1  ;;  %v6860_v8 = vrot.slane %v11642_v47, 7 }
 0x4cc   : > { %v6545_v30 = vadd.f32 %v11594_v42, %v6543_v7  ;;  %v6958_v26 = vsel %vm6850_vm14, %v6957_v60, %v6956_v2  ;;  %v6862_v54 = vrot.slane %v11644_v22, 6  ;;  %v6864_v42 = vrot.slane %v11646_v19, 5 }
 0x4cd   : > { %v6960_v52 = vsel %vm6853_vm15, %v6959_v23, %v6958_v26  ;;  %v6866_v17 = vrot.slane %v11648_v28, 4  ;;  %v6858_v18 = vsel %vm6835_vm9, %v6857_v59, %v6856_v50  ;;  %v6868_v4 = vrot.slane %v11659_v1, 3 }
 0x4ce   : > { %v6547_v27 = vadd.f32 %v11597_v12, %v6545_v30  ;;  %6961 = vrot.lane.b32.xlu0 %v6960_v52, %s8646_s29  ;;  %v6932_v15 = vsel %vm6835_vm9, %v6931_v44, %v6930_v38  ;;  %v6934_v29 = vrot.slane %v11657_v13, 7  ;;  %v6859_v12 = vsel %vm6838_vm10, %v11640_v36, %v6858_v18 }
 0x4cf   : > { %v6933_v9 = vsel %vm6838_vm10, %v11655_v34, %v6932_v15  ;;  %v6936_v40 = vrot.slane %v11667_v16, 6  ;;  %v6861_v60 = vsel %vm6841_vm11, %v6860_v8, %v6859_v12  ;;  %v6938_v21 = vrot.slane %v11661_v62, 5 }
 0x4d0   : > { %v6549_v63 = vadd.f32 %v11600_v35, %v6547_v27  ;;  %v6935_v23 = vsel %vm6841_vm11, %v6934_v29, %v6933_v9  ;;  %v6940_v61 = vrot.slane %v11663_v5, 4  ;;  %v6863_v35 = vsel %vm6844_vm12, %v6862_v54, %v6861_v60 }
 0x4d1   : > { %v6937_v7 = vsel %vm6844_vm12, %v6936_v40, %v6935_v23  ;;  %v6942_v41 = vrot.slane %v11632_v56, 3  ;;  %v6865_v32 = vsel %vm6847_vm13, %v6864_v42, %v6863_v35  ;;  %v6875_v44 = vsel %vm6835_vm9, %v6874_v53, %v6873_v58  ;;  %v6664_v58 = vld [vmem:[%s11865_s5] sm:$0xff]  ;;  %v12021_v35 = vld [vmem:[#allocation42_spill] sm:$0xff] }
 0x4d2   : > { %v6551_v51 = vadd.f32 %v11603_v49, %v6549_v63  ;;  %v6939_v38 = vsel %vm6847_vm13, %v6938_v21, %v6937_v7  ;;  %v6876_v30 = vrot.slane %v11640_v36, 2  ;;  %v6867_v50 = vsel %vm6850_vm14, %v6866_v17, %v6865_v32  ;;  %v12019_v53 = vld [vmem:[#allocation40_spill] sm:$0xff]  ;;  %8516 = vmatpush3.msra.mxu1 %v6664_v58 }
 0x4d3   : > { %v6941_v49 = vsel %vm6850_vm14, %v6940_v61, %v6939_v38  ;;  %v6878_v26 = vrot.slane %v11642_v47, 1  ;;  %v6965_v59 = vrot.slane %v11653_v43, 5  ;;  %v6869_v8 = vsel %vm6853_vm15, %v6868_v4, %v6867_v50  ;;  %v12020_v63 = vld [vmem:[#allocation20_spill] sm:$0xff] }
 0x4d4   : > { %v6553_v2 = vadd.f32 %v11606_v33, %v6551_v51  ;;  %v6943_v54 = vsel %vm6853_vm15, %v6942_v41, %v6941_v49  ;;  %v6877_v27 = vsel %vm6838_vm10, %v6876_v30, %v6875_v44  ;;  %6870 = vrot.lane.b32.xlu1 %v6869_v8, %s8647_s9  ;;  %v6881_v42 = vrot.slane %v11646_v19, 7 }
 0x4d5   : > { %v6879_v52 = vsel %vm6841_vm11, %v6878_v26, %v6877_v27  ;;  %v6883_v17 = vrot.slane %v11648_v28, 6  ;;  %v6885_v4 = vrot.slane %v11659_v1, 5  ;;  %v6892_v15 = vsel %vm6835_vm9, %v6891_v39, %v6890_v6 }
 0x4d6   : > { %v6555_v33 = vadd.f32 %v12019_v53, %v6553_v2  ;;  %v6880_v18 = vsel %vm6844_vm12, %v11644_v22, %v6879_v52  ;;  %v6893_v29 = vrot.slane %v11640_v36, 4  ;;  %v6895_v40 = vrot.slane %v11642_v47, 3  ;;  %v12022_v2 = vld [vmem:[#allocation39_spill] sm:$0xff] }
 0x4d7   : > { %v6882_v9 = vsel %vm6847_vm13, %v6881_v42, %v6880_v18  ;;  %v6897_v60 = vrot.slane %v11644_v22, 2  ;;  %v6899_v61 = vrot.slane %v11646_v19, 1  ;;  %v6902_v51 = vrot.slane %v11659_v1, 7 }
 0x4d8   : > { %v6557_v12 = vadd.f32 %v12020_v63, %v6555_v33  ;;  %v6884_v23 = vsel %vm6850_vm14, %v6883_v17, %v6882_v9  ;;  %v6894_v21 = vsel %vm6838_vm10, %v6893_v29, %v6892_v15  ;;  %6944 = vrot.lane.b32.xlu1 %v6943_v54, %s8647_s9  ;;  %v6840_v41 = vrot.slane %v11642_v47, 5  ;;  %v12023_v54 = vld [vmem:[#allocation41_spill] sm:$0xff] }
 0x4d9   : > { %v6886_v39 = vsel %vm6853_vm15, %v6885_v4, %v6884_v23  ;;  %v6896_v7 = vsel %vm6841_vm11, %v6895_v40, %v6894_v21  ;;  %v6843_v38 = vrot.slane %v11644_v22, 4  ;;  %v6846_v44 = vrot.slane %v11646_v19, 3 }
 0x4da   : > { %v6559_v6 = vadd.f32 %v12021_v35, %v6557_v12  ;;  %v6898_v32 = vsel %vm6844_vm12, %v6897_v60, %v6896_v7  ;;  %v6849_v30 = vrot.slane %v11648_v28, 2  ;;  %v6836_v26 = vsel %vm6835_vm9, %v6834_v0, %v11636_v25 }
 0x4db   : > { %v6900_v49 = vsel %vm6847_vm13, %v6899_v61, %v6898_v32  ;;  %v6916_v47 = vsel %vm6835_vm9, %v6915_v24, %v11650_v57  ;;  %v6839_v19 = vsel %vm6838_vm10, %v6837_v10, %v6836_v26  ;;  %v6919_v46 = vrot.slane %v11657_v13, 5 }
 0x4dc   : > { %v6561_v50 = vadd.f32 %v12022_v2, %v6559_v6  ;;  %v6901_v22 = vsel %vm6850_vm14, %v11648_v28, %v6900_v49  ;;  %v6918_v8 = vsel %vm6838_vm10, %v6917_v14, %v6916_v47  ;;  %6887 = vrot.lane.b32.xlu1 %v6886_v39, %s8646_s29  ;;  %v6842_v24 = vsel %vm6841_vm11, %v6840_v41, %v6839_v19 }
 0x4dd   : > { %v6903_v0 = vsel %vm6853_vm15, %v6902_v51, %v6901_v22  ;;  %v6921_v28 = vrot.slane %v11667_v16, 4  ;;  %v6852_v36 = vrot.slane %v11659_v1, 1  ;;  %v6845_v10 = vsel %vm6844_vm12, %v6843_v38, %v6842_v24 }
 0x4de   : > { %v6563_v25 = vadd.f32 %v12023_v54, %v6561_v50  ;;  %v6920_v27 = vsel %vm6841_vm11, %v6919_v46, %v6918_v8  ;;  %v6923_v14 = vrot.slane %v11661_v62, 3  ;;  %v6848_v53 = vsel %vm6847_vm13, %v6846_v44, %v6845_v10 }
 0x4df   : > { %v6922_v33 = vsel %vm6844_vm12, %v6921_v28, %v6920_v27  ;;  %v6925_v52 = vrot.slane %v11663_v5, 2  ;;  %v6566_v42 = vsel %vm3039_vm3, %v11556_v37, 0.0  ;;  %v6851_v17 = vsel %vm6850_vm14, %v6849_v30, %v6848_v53 }
 0x4e0   : > { %v6565_v58 = vadd.f32 %v11628_v20, %v6563_v25  ;;  %v6924_v1 = vsel %vm6847_vm13, %v6923_v14, %v6922_v33  ;;  %v6927_v18 = vrot.slane %v11632_v56, 1  ;;  %6904 = vrot.lane.b32.xlu1 %v6903_v0, %s8648_s10  ;;  %v11804_v20 = vsel %vm6853_vm15, %v6852_v36, %v6851_v17 }
 0x4e1   : > { %v6926_v15 = vsel %vm6850_vm14, %v6925_v52, %v6924_v1  ;;  %v6966_v37 = vsel %vm6835_vm9, %v6965_v59, %v6964_v48  ;;  %v6568_v29 = vsel %vm3039_vm3, %v11558_v31, 0.0  ;;  %v6967_v12 = vrot.slane %v11655_v34, 4 }
 0x4e2   : > { %v6567_v4 = vadd.f32 %v6566_v42, %v6565_v58  ;;  %v11815_v63 = vsel %vm6853_vm15, %v6927_v18, %v6926_v15  ;;  %v6969_v40 = vrot.slane %v11657_v13, 3  ;;  %v6570_v60 = vsel %vm3039_vm3, %v11560_v11, 0.0 }
 0x4e3   : > { %v6968_v57 = vsel %vm6838_vm10, %v6967_v12, %v6966_v37  ;;  %v6971_v43 = vrot.slane %v11667_v16, 2  ;;  %v6973_v31 = vrot.slane %v11661_v62, 1  ;;  %v6572_v59 = vsel %vm3039_vm3, %v11562_v3, 0.0 }
 0x4e4   : > { %v6569_v9 = vadd.f32 %v6568_v29, %v6567_v4  ;;  %v6970_v48 = vsel %vm6841_vm11, %v6969_v40, %v6968_v57  ;;  %v6976_v61 = vrot.slane %v11632_v56, 7  ;;  %v6574_v11 = vsel %vm3039_vm3, %v11564_v55, 0.0  ;;  %v6589_v55 = vld [vmem:[%s11864_s4] sm:$0x1] }
 0x4e5   : > { %v6972_v34 = vsel %vm6844_vm12, %v6971_v43, %v6970_v48  ;;  %v6576_v62 = vsel %vm3039_vm3, %v11566_v45, 0.0  ;;  %v6665_v45 = vld [vmem:[%s11866_s6] sm:$0x1]  ;;  %v7002_v0 = vlaneseq }
 0x4e6   : > { %v6571_v23 = vadd.f32 %v6570_v60, %v6569_v9  ;;  %v6974_v13 = vsel %vm6847_vm13, %v6973_v31, %v6972_v34 }
 0x4e7   : > { %v6975_v16 = vsel %vm6850_vm14, %v11663_v5, %v6974_v13  ;;  %v7003_v36 = vshrl.u32 %v7002_v0, 7 }
 0x4e8   : > { %v6573_v21 = vadd.f32 %v6572_v59, %v6571_v23  ;;  %v6977_v35 = vsel %vm6853_vm15, %v6976_v61, %v6975_v16 }
 0x4e9   : > { %v7004_v27 = vsub.s32 0, %v7003_v36 }
 0x4ea   : > { %v6575_v51 = vadd.f32 %v6574_v11, %v6573_v21 }
 0x4ec   : > { %v6577_v3 = vadd.f32 %v6576_v62, %v6575_v51 }
 0x4ee   : > { %v6578_v6 = vrot.slane %v6577_v3, 4 }
 0x4f0   : > { %v6579_v39 = vadd.f32 %v6578_v6, %v6577_v3 }
 0x4f2   : > { %v6580_v7 = vrot.slane %v6579_v39, 2 }
 0x4f4   : > { %v6581_v41 = vadd.f32 %v6580_v7, %v6579_v39 }
 0x4f6   : > { %v6582_v32 = vrot.slane %v6581_v41, 1 }
 0x4f8   : > { %v6583_v38 = vadd.f32 %v6582_v32, %v6581_v41 }
 0x4fa   : > { %v6584_v56 = vmul.f32 0.00390625, %v6583_v38 }
 0x4fc   : > { %8513 = vmatmul.mubr.msk.f32.vlgmr.msra.gmra.mxu0 %vm3039_vm3, %v6584_v56 }
 0x540   : > { %v6962_v54 = vpop.permute.xlu0 %6961 }
 0x546   : > { %v6871_v46 = vpop.permute.xlu1 %6870 }
 0x547   : > { %v6981_v52 = vsel %vm3039_vm3, %v11804_v20, %v6871_v46 }
 0x54a   : > { %v6945_v25 = vpop.permute.xlu1 %6944 }
 0x54b   : > { %v6986_v42 = vsel %vm3039_vm3, %v11815_v63, %v6945_v25 }
 0x54c   : > { %v6987_v37 = vsel %vm6982_vm1, %v6986_v42, %v6962_v54 }
 0x54e   : > { %v6888_v28 = vpop.permute.xlu1 %6887 }
 0x54f   : > { %v6983_v1 = vsel %vm6982_vm1, %v6981_v52, %v6888_v28 }
 0x552   : > { %v6905_v58 = vpop.permute.xlu1 %6904 }
 0x553   : > { %v6985_v4 = vsel %vm6984_vm2, %v6983_v1, %v6905_v58 }
 0x5bc   : > { %v6659_v5 = vpop.f32.mrf.mxu0 }
 0x5bd   : > { %v6660_v44 = vadd.f32 %v6659_v5, %v6589_v55 }
 0x5be   : > { %v8514_v30 = vpop.f32.mrf.mxu0 }
 0x5bf   : > { %v6663_v2 = vmax.f32 %v6660_v44, 0.0 }
 0x5c1   : > { %8518 = vmatmul.mubr.msk.f32.vlgmr.msra.gmra.mxu1 %vm6666_vm0, %v6663_v2 }
 0x681   : > { %v6736_v50 = vpop.f32.mrf.mxu1 }
 0x682   : > { %v6737_v49 = vadd.f32 %v6736_v50, %v6665_v45 }
 0x683   : > { %v8519_v26 = vpop.f32.mrf.mxu1 }
 0x684   : > { %v7466_v47 = vmul.f32 -1.442695, %v6737_v49 }
 0x686   : > { %8628 = vpow2.f32 %v7466_v47 }
 0x693   : > { %v8629_v22 = vpop.eup %8628 }
 0x694   : > { %v6743_v19 = vadd.f32 1.0, %v8629_v22 }
 0x696   : > { %8630 = vrcp.f32 %v6743_v19 }
 0x6a3   : > { %v8631_v8 = vpop.eup %8630 }
 0x6a4   : > { %6990 = vrot.lane.b32.xlu0 %v8631_v8, %s8647_s9 }
 0x6a8   : > { %6993 = vrot.lane.b32.xlu0 %v8631_v8, %s8646_s29 }
 0x6ac   : > { %6996 = vrot.lane.b32.xlu0 %v8631_v8, %s8648_s10 }
 0x6b0   : > { %6978 = vrot.lane.b32.xlu0 %v6977_v35, %s8648_s10 }
 0x716   : > { %v6991_v24 = vpop.permute.xlu0 %6990 }
 0x717   : > { %v6999_v14 = vsel %vm3039_vm3, %v8631_v8, %v6991_v24 }
 0x71a   : > { %v6994_v10 = vpop.permute.xlu0 %6993 }
 0x71b   : > { %v7000_v53 = vsel %vm6982_vm1, %v6999_v14, %v6994_v10 }
 0x71e   : > { %v6997_v33 = vpop.permute.xlu0 %6996 }
 0x71f   : > { %v7001_v17 = vsel %vm6984_vm2, %v7000_v53, %v6997_v33 }
 0x720   : > { %v7005_v18 = vrot.slane %v7001_v17, %v7004_v27 }
 0x722   : > { %v7006_v15 = vmul.f32 %v7005_v18, %v6985_v4  ;;  %v6979_v29 = vpop.permute.xlu0 %6978 }
 0x723   : > { %v6988_v12 = vsel %vm6984_vm2, %v6987_v37, %v6979_v29 }
 0x724   : > { %v7010_v9 = vmin.f32 %v7006_v15, 0.0  ;;  %v7007_v40 = vmul.f32 %v7005_v18, %v6988_v12  ;;  %vm7008_vm3 = vcmp.gt.f32.partialorder %v7006_v15, 0.0 }
 0x726   : > { %v7012_v60 = vmul.f32 1.442695, %v7010_v9  ;;  %v7011_v57 = vmin.f32 %v7007_v40, 0.0  ;;  %vm7009_vm4 = vcmp.gt.f32.partialorder %v7007_v40, 0.0 }
 0x728   : > { %8632 = vpow2.f32 %v7012_v60  ;;  %v7014_v43 = vmul.f32 1.442695, %v7011_v57 }
 0x72a   : > { %8634 = vpow2.f32 %v7014_v43 }
 0x735   : > { %v8633_v20 = vpop.eup %8632 }
 0x736   : > { %v7467_v23 = vadd.f32 -1.0, %v8633_v20 }
 0x737   : > { %v8635_v63 = vpop.eup %8634 }
 0x738   : > { %v7018_v48 = vsel %vm7008_vm3, %v7006_v15, %v7467_v23  ;;  %v7468_v31 = vadd.f32 -1.0, %v8635_v63 }
 0x739   : > { %7020 = vst [vmem:[%s278_s18] sm:$0xff] %v7018_v48 }
 0x73a   : > { %v7019_v59 = vsel %vm7009_vm4, %v7007_v40, %v7468_v31 }
 0x73b   : > { %7021 = vst [vmem:[%s278_s18 + $0x8] sm:$0xff] %v7019_v59 }
 0x73c PF: > { %s17_s24 = sadd.s32 1, %s8642_s24  }
 0x73d   : > { %p14_p4 = scmp.ge.s32.totalorder %s17_s24, 4  }
 0x73f   :  { %16 = sbr.rel (!%p14_p4) target bundleno = 1 (0x1), region = 100 }

</bundles_post_ra>
